<compile_context>
chip_gen: v5e
topology: v5e:2x2
jax: 0.10.0
libtpu: 0.0.40
codegen_flags: <defaults>
</compile_context>

<pallas_src>
import functools

import jax
import jax.numpy as jnp
from jax import lax
from jax.experimental import pallas as pl
from jax.experimental.pallas import tpu as pltpu


# --------------------------------------------------------------------------
# Pallas kernel: fused conv-tap GEMM accumulation + bias + LeakyReLU
# --------------------------------------------------------------------------
def _conv_tap_kernel(*refs, kk, th, wo, neg_slope):
    """refs = [row_0 .. row_{th+kk-2}, weights, bias, out].

    row_j  : (1, 1, WpK, Cpk)  bf16  -- packed padded input row (hb*th + j)
    weights: (kk, kk, Cpk, Coutp) bf16
    bias   : (1, Coutp) f32
    out    : (1, th, wo, Coutp)
    """
    n_rows = th + kk - 1
    x_rows = refs[:n_rows]
    w_ref = refs[n_rows]
    b_ref = refs[n_rows + 1]
    o_ref = refs[n_rows + 2]

    bias = b_ref[...]                                   # (1, Coutp) f32

    for t in range(th):                                 # output rows in this tile
        acc = None
        for r in range(kk):                             # vertical packed taps
            row = x_rows[t + r][0, 0]                   # (WpK, Cpk) bf16
            for c in range(kk):                         # horizontal packed taps
                seg = row[c:c + wo, :]                  # static shifted window
                prod = jnp.dot(seg, w_ref[r, c],
                               preferred_element_type=jnp.float32)
                acc = prod if acc is None else acc + prod
        y = acc + bias                                  # f32 epilogue
        y = jnp.where(y >= 0.0, y, neg_slope * y)       # LeakyReLU
        o_ref[0, t] = y.astype(o_ref.dtype)             # lane-dense (wo, 128) store


# --------------------------------------------------------------------------
# Conv2d + (folded BN) + LeakyReLU, one fused Pallas call
# --------------------------------------------------------------------------
def conv_bn_lrelu_pallas(x, w, b, *, stride, pad, neg_slope, out_dtype):
    """x: (N,H,W,Cin); w: (k,k,Cin,Cout) HWIO (BN already folded); b: (Cout,) f32."""
    n, h, wd, cin = x.shape
    k = w.shape[0]
    cout = w.shape[-1]
    s = stride

    ho = (h + 2 * pad - k) // s + 1
    wo = (wd + 2 * pad - k) // s + 1
    kk = pl.cdiv(k, s)                      # packed taps per axis (after space-to-depth)
    cpk = s * s * cin                       # packed input channels
    coutp = pl.cdiv(cout, 128) * 128        # lane-dense output channels (pad to 128)

    # --- spatial pad + space-to-depth pack by the stride (cheap XLA; no im2col) ---
    hpk = ho + kk - 1                       # packed rows the conv actually reads
    wpk = wo + kk - 1
    hp_t, wp_t = s * hpk, s * wpk
    xp = jnp.pad(x, ((0, 0),
                     (pad, pad + max(0, hp_t - (h + 2 * pad))),
                     (pad, pad + max(0, wp_t - (wd + 2 * pad))),
                     (0, 0)))
    xp = xp[:, :hp_t, :wp_t, :]
    xpk = xp.reshape(n, hpk, s, wpk, s, cin).transpose(0, 1, 3, 2, 4, 5)
    xpk = xpk.reshape(n, hpk, wpk, cpk).astype(jnp.bfloat16)

    # --- pack weights the same way: (k,k,Cin,Cout) -> (kk,kk,Cpk,Coutp) bf16 ---
    wq = jnp.pad(w, ((0, kk * s - k), (0, kk * s - k), (0, 0), (0, coutp - cout)))
    wq = wq.reshape(kk, s, kk, s, cin, coutp).transpose(0, 2, 1, 3, 4, 5)
    wq = wq.reshape(kk, kk, cpk, coutp).astype(jnp.bfloat16)

    bq = jnp.pad(b, (0, coutp - cout)).reshape(1, coutp).astype(jnp.float32)

    # --- row tiling: th output rows per grid step ---
    th = 1
    for cand in (8, 4, 2):
        if ho % cand == 0:
            th = cand
            break
    n_rows = th + kk - 1                    # packed input rows needed per step

    in_specs = [
        pl.BlockSpec((1, 1, wpk, cpk),
                     lambda ni, hb, j=j: (ni, hb * th + j, 0, 0))
        for j in range(n_rows)
    ]
    in_specs += [
        pl.BlockSpec((kk, kk, cpk, coutp), lambda ni, hb: (0, 0, 0, 0)),  # resident
        pl.BlockSpec((1, coutp), lambda ni, hb: (0, 0)),                  # resident
    ]
    out_spec = pl.BlockSpec((1, th, wo, coutp), lambda ni, hb: (ni, hb, 0, 0))

    kern = functools.partial(_conv_tap_kernel, kk=kk, th=th, wo=wo,
                             neg_slope=neg_slope)

    flops = 2 * n * ho * wo * kk * kk * cpk * coutp
    bytes_accessed = int(xpk.size * 2 * (th + kk - 1) // th
                         + wq.size * 2 + bq.size * 4
                         + n * ho * wo * coutp * jnp.dtype(out_dtype).itemsize)

    out = pl.pallas_call(
        kern,
        grid=(n, ho // th),
        in_specs=in_specs,
        out_specs=out_spec,
        out_shape=jax.ShapeDtypeStruct((n, ho, wo, coutp), out_dtype),
        compiler_params=pltpu.CompilerParams(
            dimension_semantics=("parallel", "parallel"),
            vmem_limit_bytes=32 * 1024 * 1024),
        cost_estimate=pl.CostEstimate(flops=flops, transcendentals=0,
                                      bytes_accessed=bytes_accessed),
    )(*([xpk] * n_rows), wq, bq)

    return out[..., :cout]                  # drop lane-padding channels


# --------------------------------------------------------------------------
# Parameters / BN folding
# --------------------------------------------------------------------------
def _init_conv(kw, kb, cin, cout, k):
    fan_in = cin * k * k
    w = jax.random.normal(kw, (k, k, cin, cout), jnp.float32) / jnp.sqrt(float(fan_in))
    b = 0.05 * jax.random.normal(kb, (cout,), jnp.float32)
    return w, b


def _init_bn(kg, kb, km, kv, c):
    return {"gamma": 1.0 + 0.1 * jax.random.normal(kg, (c,), jnp.float32),
            "beta": 0.1 * jax.random.normal(kb, (c,), jnp.float32),
            "mean": 0.1 * jax.random.normal(km, (c,), jnp.float32),
            "var": jax.random.uniform(kv, (c,), jnp.float32, minval=0.5, maxval=1.5),
            "eps": 1e-5}


def init_params(keys, in_chan, out_chan, k_feat):
    w1, b1 = _init_conv(keys[0], keys[1], in_chan, out_chan, k_feat)
    bn1 = _init_bn(keys[2], keys[3], keys[4], keys[5], out_chan)
    w2, b2 = _init_conv(keys[6], keys[7], out_chan, out_chan, 4)
    bn2 = _init_bn(keys[8], keys[9], keys[10], keys[11] if len(keys) > 11 else keys[10],
                   out_chan)
    return {"w1": w1, "b1": b1, "bn1": bn1, "w2": w2, "b2": b2, "bn2": bn2}


def _fold_bn(w, b, bn):
    """Fold eval-mode BatchNorm into conv weight/bias (per output channel)."""
    scale = bn["gamma"] / jnp.sqrt(bn["var"] + bn["eps"])
    wf = w * scale[None, None, None, :]
    bf = (b - bn["mean"]) * scale + bn["beta"]
    return wf, bf


# --------------------------------------------------------------------------
# Module forward (Pallas-backed), NCHW in / NCHW out
# --------------------------------------------------------------------------
def strided_down_conv2x_forward(x_nchw, p, *, neg_slope=0.2, feat_kern_size=3):
    if feat_kern_size == 3:
        pad1 = 1
    elif feat_kern_size == 5:
        pad1 = 2
    else:
        raise NotImplementedError("Only supported kern sizes are 3 and 5")

    x = jnp.transpose(x_nchw, (0, 2, 3, 1))            # NCHW -> NHWC

    w1f, b1f = _fold_bn(p["w1"], p["b1"], p["bn1"])
    y = conv_bn_lrelu_pallas(x, w1f, b1f, stride=1, pad=pad1,
                             neg_slope=neg_slope, out_dtype=jnp.bfloat16)

    w2f, b2f = _fold_bn(p["w2"], p["b2"], p["bn2"])
    y = conv_bn_lrelu_pallas(y, w2f, b2f, stride=2, pad=1,
                             neg_slope=neg_slope, out_dtype=jnp.float32)

    return jnp.transpose(y, (0, 3, 1, 2))              # NHWC -> NCHW


# --------------------------------------------------------------------------
# Pure-JAX f32 reference (explicit conv + eval-BN + LeakyReLU)
# --------------------------------------------------------------------------
def _bn_eval(y, bn):
    inv = lax.rsqrt(bn["var"] + bn["eps"])
    return (y - bn["mean"]) * (bn["gamma"] * inv) + bn["beta"]


def _leaky(y, s):
    return jnp.where(y >= 0.0, y, s * y)


def _ref_forward(x_nhwc, p, neg_slope, feat_kern_size):
    pad1 = 1 if feat_kern_size == 3 else 2
    dn = ("NHWC", "HWIO", "NHWC")
    y = lax.conv_general_dilated(x_nhwc, p["w1"], (1, 1),
                                 [(pad1, pad1), (pad1, pad1)],
                                 dimension_numbers=dn) + p["b1"]
    y = _leaky(_bn_eval(y, p["bn1"]), neg_slope)
    y = lax.conv_general_dilated(y, p["w2"], (2, 2),
                                 [(1, 1), (1, 1)],
                                 dimension_numbers=dn) + p["b2"]
    y = _leaky(_bn_eval(y, p["bn2"]), neg_slope)
    return y


# --------------------------------------------------------------------------
if __name__ == "__main__":
    in_chan, out_chan, k_feat = 4, 8, 3
    N, H, W = 2, 16, 16
    neg_slope = 0.2

    key = jax.random.PRNGKey(0)
    keys = jax.random.split(key, 13)
    x_nchw = jax.random.normal(keys[0], (N, in_chan, H, W), jnp.float32)
    params = init_params(list(keys[1:]), in_chan, out_chan, k_feat)

    y = strided_down_conv2x_forward(x_nchw, params,
                                    neg_slope=neg_slope, feat_kern_size=k_feat)
    jax.block_until_ready(y)
    assert y.shape == (N, out_chan, H // 2, W // 2), y.shape

    x_nhwc = jnp.transpose(x_nchw, (0, 2, 3, 1))
    y_ref = jnp.transpose(_ref_forward(x_nhwc, params, neg_slope, k_feat),
                          (0, 3, 1, 2))
    max_err = float(jnp.max(jnp.abs(y - y_ref)))
    # bf16 matmul inputs / f32 accumulation vs full-f32 reference -> loose-ish tolerance.
    assert jnp.allclose(y, y_ref, rtol=5e-2, atol=5e-2), \
        f"mismatch vs reference (max abs err {max_err})"

    print("KERNEL_OK")
</pallas_src>

<mosaic_0001>
module attributes {stable_mosaic.version = 11 : i64} {
  func.func @_conv_tap_kernel(%arg0: i32, %arg1: i32, %arg2: memref<1x1x18x4xbf16, #tpu.memory_space<vmem>>, %arg3: memref<1x1x18x4xbf16, #tpu.memory_space<vmem>>, %arg4: memref<1x1x18x4xbf16, #tpu.memory_space<vmem>>, %arg5: memref<1x1x18x4xbf16, #tpu.memory_space<vmem>>, %arg6: memref<1x1x18x4xbf16, #tpu.memory_space<vmem>>, %arg7: memref<1x1x18x4xbf16, #tpu.memory_space<vmem>>, %arg8: memref<1x1x18x4xbf16, #tpu.memory_space<vmem>>, %arg9: memref<1x1x18x4xbf16, #tpu.memory_space<vmem>>, %arg10: memref<1x1x18x4xbf16, #tpu.memory_space<vmem>>, %arg11: memref<1x1x18x4xbf16, #tpu.memory_space<vmem>>, %arg12: memref<3x3x4x128xbf16, #tpu.memory_space<vmem>>, %arg13: memref<1x128xf32, #tpu.memory_space<vmem>>, %arg14: memref<1x8x16x128xbf16, #tpu.memory_space<vmem>>) attributes {dimension_semantics = [#tpu.dimension_semantics<parallel>, #tpu.dimension_semantics<parallel>], iteration_bounds = array<i64: 2, 2>, scalar_prefetch = 0 : i64, scratch_operands = 0 : i64, tpu.core_type = #tpu.core_type<tc>, window_params = [{transform_indices = @transform_0, window_bounds = array<i64: 1, 1, 18, 4>}, {transform_indices = @transform_1, window_bounds = array<i64: 1, 1, 18, 4>}, {transform_indices = @transform_2, window_bounds = array<i64: 1, 1, 18, 4>}, {transform_indices = @transform_3, window_bounds = array<i64: 1, 1, 18, 4>}, {transform_indices = @transform_4, window_bounds = array<i64: 1, 1, 18, 4>}, {transform_indices = @transform_5, window_bounds = array<i64: 1, 1, 18, 4>}, {transform_indices = @transform_6, window_bounds = array<i64: 1, 1, 18, 4>}, {transform_indices = @transform_7, window_bounds = array<i64: 1, 1, 18, 4>}, {transform_indices = @transform_8, window_bounds = array<i64: 1, 1, 18, 4>}, {transform_indices = @transform_9, window_bounds = array<i64: 1, 1, 18, 4>}, {pipeline_mode = #tpu.pipeline_mode<synchronous>, transform_indices = @transform_10, window_bounds = array<i64: 3, 3, 4, 128>}, {pipeline_mode = #tpu.pipeline_mode<synchronous>, transform_indices = @transform_11, window_bounds = array<i64: 1, 128>}, {transform_indices = @transform_12, window_bounds = array<i64: 1, 8, 16, 128>}]} {
    %c0 = arith.constant 0 : index
    %c0_0 = arith.constant 0 : index
    %0 = vector.load %arg13[%c0, %c0_0] : memref<1x128xf32, #tpu.memory_space<vmem>>, vector<1x128xf32>
    %c0_1 = arith.constant 0 : index
    %c0_2 = arith.constant 0 : index
    %c0_3 = arith.constant 0 : index
    %c0_4 = arith.constant 0 : index
    %1 = vector.load %arg2[%c0_1, %c0_2, %c0_3, %c0_4] : memref<1x1x18x4xbf16, #tpu.memory_space<vmem>>, vector<1x1x18x4xbf16>
    %2 = vector.shape_cast %1 : vector<1x1x18x4xbf16> to vector<18x4xbf16>
    %3 = vector.extract_strided_slice %2 {offsets = [0, 0], sizes = [16, 4], strides = [1, 1]} : vector<18x4xbf16> to vector<16x4xbf16>
    %c0_5 = arith.constant 0 : index
    %c0_6 = arith.constant 0 : index
    %c0_7 = arith.constant 0 : index
    %c0_8 = arith.constant 0 : index
    %4 = vector.load %arg12[%c0_5, %c0_6, %c0_7, %c0_8] : memref<3x3x4x128xbf16, #tpu.memory_space<vmem>>, vector<1x1x4x128xbf16>
    %5 = vector.shape_cast %4 : vector<1x1x4x128xbf16> to vector<4x128xbf16>
    %cst = arith.constant dense<0.000000e+00> : vector<16x128xf32>
    %6 = tpu.matmul %3, %5, %cst {dimension_numbers = #tpu.dot_dimension_numbers<[1], [0], [0], [1], [0, 0, 1, 1], [], []>} : vector<16x4xbf16>, vector<4x128xbf16>, vector<16x128xf32> -> vector<16x128xf32>
    %7 = vector.extract_strided_slice %2 {offsets = [1, 0], sizes = [16, 4], strides = [1, 1]} : vector<18x4xbf16> to vector<16x4xbf16>
    %c0_9 = arith.constant 0 : index
    %c1 = arith.constant 1 : index
    %c0_10 = arith.constant 0 : index
    %c0_11 = arith.constant 0 : index
    %8 = vector.load %arg12[%c0_9, %c1, %c0_10, %c0_11] : memref<3x3x4x128xbf16, #tpu.memory_space<vmem>>, vector<1x1x4x128xbf16>
    %9 = vector.shape_cast %8 : vector<1x1x4x128xbf16> to vector<4x128xbf16>
    %cst_12 = arith.constant dense<0.000000e+00> : vector<16x128xf32>
    %10 = tpu.matmul %7, %9, %cst_12 {dimension_numbers = #tpu.dot_dimension_numbers<[1], [0], [0], [1], [0, 0, 1, 1], [], []>} : vector<16x4xbf16>, vector<4x128xbf16>, vector<16x128xf32> -> vector<16x128xf32>
    %11 = arith.addf %6, %10 : vector<16x128xf32>
    %12 = vector.extract_strided_slice %2 {offsets = [2, 0], sizes = [16, 4], strides = [1, 1]} : vector<18x4xbf16> to vector<16x4xbf16>
    %c0_13 = arith.constant 0 : index
    %c2 = arith.constant 2 : index
    %c0_14 = arith.constant 0 : index
    %c0_15 = arith.constant 0 : index
    %13 = vector.load %arg12[%c0_13, %c2, %c0_14, %c0_15] : memref<3x3x4x128xbf16, #tpu.memory_space<vmem>>, vector<1x1x4x128xbf16>
    %14 = vector.shape_cast %13 : vector<1x1x4x128xbf16> to vector<4x128xbf16>
    %cst_16 = arith.constant dense<0.000000e+00> : vector<16x128xf32>
    %15 = tpu.matmul %12, %14, %cst_16 {dimension_numbers = #tpu.dot_dimension_numbers<[1], [0], [0], [1], [0, 0, 1, 1], [], []>} : vector<16x4xbf16>, vector<4x128xbf16>, vector<16x128xf32> -> vector<16x128xf32>
    %16 = arith.addf %11, %15 : vector<16x128xf32>
    %c0_17 = arith.constant 0 : index
    %c0_18 = arith.constant 0 : index
    %c0_19 = arith.constant 0 : index
    %c0_20 = arith.constant 0 : index
    %17 = vector.load %arg3[%c0_17, %c0_18, %c0_19, %c0_20] : memref<1x1x18x4xbf16, #tpu.memory_space<vmem>>, vector<1x1x18x4xbf16>
    %18 = vector.shape_cast %17 : vector<1x1x18x4xbf16> to vector<18x4xbf16>
    %19 = vector.extract_strided_slice %18 {offsets = [0, 0], sizes = [16, 4], strides = [1, 1]} : vector<18x4xbf16> to vector<16x4xbf16>
    %c1_21 = arith.constant 1 : index
    %c0_22 = arith.constant 0 : index
    %c0_23 = arith.constant 0 : index
    %c0_24 = arith.constant 0 : index
    %20 = vector.load %arg12[%c1_21, %c0_22, %c0_23, %c0_24] : memref<3x3x4x128xbf16, #tpu.memory_space<vmem>>, vector<1x1x4x128xbf16>
    %21 = vector.shape_cast %20 : vector<1x1x4x128xbf16> to vector<4x128xbf16>
    %cst_25 = arith.constant dense<0.000000e+00> : vector<16x128xf32>
    %22 = tpu.matmul %19, %21, %cst_25 {dimension_numbers = #tpu.dot_dimension_numbers<[1], [0], [0], [1], [0, 0, 1, 1], [], []>} : vector<16x4xbf16>, vector<4x128xbf16>, vector<16x128xf32> -> vector<16x128xf32>
    %23 = arith.addf %16, %22 : vector<16x128xf32>
    %24 = vector.extract_strided_slice %18 {offsets = [1, 0], sizes = [16, 4], strides = [1, 1]} : vector<18x4xbf16> to vector<16x4xbf16>
    %c1_26 = arith.constant 1 : index
    %c1_27 = arith.constant 1 : index
    %c0_28 = arith.constant 0 : index
    %c0_29 = arith.constant 0 : index
    %25 = vector.load %arg12[%c1_26, %c1_27, %c0_28, %c0_29] : memref<3x3x4x128xbf16, #tpu.memory_space<vmem>>, vector<1x1x4x128xbf16>
    %26 = vector.shape_cast %25 : vector<1x1x4x128xbf16> to vector<4x128xbf16>
    %cst_30 = arith.constant dense<0.000000e+00> : vector<16x128xf32>
    %27 = tpu.matmul %24, %26, %cst_30 {dimension_numbers = #tpu.dot_dimension_numbers<[1], [0], [0], [1], [0, 0, 1, 1], [], []>} : vector<16x4xbf16>, vector<4x128xbf16>, vector<16x128xf32> -> vector<16x128xf32>
    %28 = arith.addf %23, %27 : vector<16x128xf32>
    %29 = vector.extract_strided_slice %18 {offsets = [2, 0], sizes = [16, 4], strides = [1, 1]} : vector<18x4xbf16> to vector<16x4xbf16>
    %c1_31 = arith.constant 1 : index
    %c2_32 = arith.constant 2 : index
    %c0_33 = arith.constant 0 : index
    %c0_34 = arith.constant 0 : index
    %30 = vector.load %arg12[%c1_31, %c2_32, %c0_33, %c0_34] : memref<3x3x4x128xbf16, #tpu.memory_space<vmem>>, vector<1x1x4x128xbf16>
    %31 = vector.shape_cast %30 : vector<1x1x4x128xbf16> to vector<4x128xbf16>
    %cst_35 = arith.constant dense<0.000000e+00> : vector<16x128xf32>
    %32 = tpu.matmul %29, %31, %cst_35 {dimension_numbers = #tpu.dot_dimension_numbers<[1], [0], [0], [1], [0, 0, 1, 1], [], []>} : vector<16x4xbf16>, vector<4x128xbf16>, vector<16x128xf32> -> vector<16x128xf32>
    %33 = arith.addf %28, %32 : vector<16x128xf32>
    %c0_36 = arith.constant 0 : index
    %c0_37 = arith.constant 0 : index
    %c0_38 = arith.constant 0 : index
    %c0_39 = arith.constant 0 : index
    %34 = vector.load %arg4[%c0_36, %c0_37, %c0_38, %c0_39] : memref<1x1x18x4xbf16, #tpu.memory_space<vmem>>, vector<1x1x18x4xbf16>
    %35 = vector.shape_cast %34 : vector<1x1x18x4xbf16> to vector<18x4xbf16>
    %36 = vector.extract_strided_slice %35 {offsets = [0, 0], sizes = [16, 4], strides = [1, 1]} : vector<18x4xbf16> to vector<16x4xbf16>
    %c2_40 = arith.constant 2 : index
    %c0_41 = arith.constant 0 : index
    %c0_42 = arith.constant 0 : index
    %c0_43 = arith.constant 0 : index
    %37 = vector.load %arg12[%c2_40, %c0_41, %c0_42, %c0_43] : memref<3x3x4x128xbf16, #tpu.memory_space<vmem>>, vector<1x1x4x128xbf16>
    %38 = vector.shape_cast %37 : vector<1x1x4x128xbf16> to vector<4x128xbf16>
    %cst_44 = arith.constant dense<0.000000e+00> : vector<16x128xf32>
    %39 = tpu.matmul %36, %38, %cst_44 {dimension_numbers = #tpu.dot_dimension_numbers<[1], [0], [0], [1], [0, 0, 1, 1], [], []>} : vector<16x4xbf16>, vector<4x128xbf16>, vector<16x128xf32> -> vector<16x128xf32>
    %40 = arith.addf %33, %39 : vector<16x128xf32>
    %41 = vector.extract_strided_slice %35 {offsets = [1, 0], sizes = [16, 4], strides = [1, 1]} : vector<18x4xbf16> to vector<16x4xbf16>
    %c2_45 = arith.constant 2 : index
    %c1_46 = arith.constant 1 : index
    %c0_47 = arith.constant 0 : index
    %c0_48 = arith.constant 0 : index
    %42 = vector.load %arg12[%c2_45, %c1_46, %c0_47, %c0_48] : memref<3x3x4x128xbf16, #tpu.memory_space<vmem>>, vector<1x1x4x128xbf16>
    %43 = vector.shape_cast %42 : vector<1x1x4x128xbf16> to vector<4x128xbf16>
    %cst_49 = arith.constant dense<0.000000e+00> : vector<16x128xf32>
    %44 = tpu.matmul %41, %43, %cst_49 {dimension_numbers = #tpu.dot_dimension_numbers<[1], [0], [0], [1], [0, 0, 1, 1], [], []>} : vector<16x4xbf16>, vector<4x128xbf16>, vector<16x128xf32> -> vector<16x128xf32>
    %45 = arith.addf %40, %44 : vector<16x128xf32>
    %46 = vector.extract_strided_slice %35 {offsets = [2, 0], sizes = [16, 4], strides = [1, 1]} : vector<18x4xbf16> to vector<16x4xbf16>
    %c2_50 = arith.constant 2 : index
    %c2_51 = arith.constant 2 : index
    %c0_52 = arith.constant 0 : index
    %c0_53 = arith.constant 0 : index
    %47 = vector.load %arg12[%c2_50, %c2_51, %c0_52, %c0_53] : memref<3x3x4x128xbf16, #tpu.memory_space<vmem>>, vector<1x1x4x128xbf16>
    %48 = vector.shape_cast %47 : vector<1x1x4x128xbf16> to vector<4x128xbf16>
    %cst_54 = arith.constant dense<0.000000e+00> : vector<16x128xf32>
    %49 = tpu.matmul %46, %48, %cst_54 {dimension_numbers = #tpu.dot_dimension_numbers<[1], [0], [0], [1], [0, 0, 1, 1], [], []>} : vector<16x4xbf16>, vector<4x128xbf16>, vector<16x128xf32> -> vector<16x128xf32>
    %50 = arith.addf %45, %49 : vector<16x128xf32>
    %51 = vector.broadcast %0 : vector<1x128xf32> to vector<16x128xf32>
    %52 = arith.addf %50, %51 : vector<16x128xf32>
    %cst_55 = arith.constant 0.000000e+00 : f32
    %53 = vector.broadcast %cst_55 : f32 to vector<16x128xf32>
    %54 = arith.cmpf oge, %52, %53 : vector<16x128xf32>
    %cst_56 = arith.constant 2.000000e-01 : f32
    %55 = vector.broadcast %cst_56 : f32 to vector<16x128xf32>
    %56 = arith.mulf %55, %52 : vector<16x128xf32>
    %57 = arith.select %54, %52, %56 : vector<16x128xi1>, vector<16x128xf32>
    %58 = arith.truncf %57 : vector<16x128xf32> to vector<16x128xbf16>
    %c0_57 = arith.constant 0 : index
    %c0_58 = arith.constant 0 : index
    %c0_59 = arith.constant 0 : index
    %c0_60 = arith.constant 0 : index
    %59 = vector.load %arg14[%c0_57, %c0_58, %c0_59, %c0_60] : memref<1x8x16x128xbf16, #tpu.memory_space<vmem>>, vector<1x1x16x128xbf16>
    %60 = vector.shape_cast %59 : vector<1x1x16x128xbf16> to vector<16x128xbf16>
    %61 = vector.shape_cast %58 : vector<16x128xbf16> to vector<1x1x16x128xbf16>
    tpu.vector_store %arg14[%c0_57, %c0_58, %c0_59, %c0_60], %61 {strides = array<i32>} : memref<1x8x16x128xbf16, #tpu.memory_space<vmem>>, vector<1x1x16x128xbf16>,
    %c0_61 = arith.constant 0 : index
    %c0_62 = arith.constant 0 : index
    %c0_63 = arith.constant 0 : index
    %c0_64 = arith.constant 0 : index
    %62 = vector.load %arg3[%c0_61, %c0_62, %c0_63, %c0_64] : memref<1x1x18x4xbf16, #tpu.memory_space<vmem>>, vector<1x1x18x4xbf16>
    %63 = vector.shape_cast %62 : vector<1x1x18x4xbf16> to vector<18x4xbf16>
    %64 = vector.extract_strided_slice %63 {offsets = [0, 0], sizes = [16, 4], strides = [1, 1]} : vector<18x4xbf16> to vector<16x4xbf16>
    %c0_65 = arith.constant 0 : index
    %c0_66 = arith.constant 0 : index
    %c0_67 = arith.constant 0 : index
    %c0_68 = arith.constant 0 : index
    %65 = vector.load %arg12[%c0_65, %c0_66, %c0_67, %c0_68] : memref<3x3x4x128xbf16, #tpu.memory_space<vmem>>, vector<1x1x4x128xbf16>
    %66 = vector.shape_cast %65 : vector<1x1x4x128xbf16> to vector<4x128xbf16>
    %cst_69 = arith.constant dense<0.000000e+00> : vector<16x128xf32>
    %67 = tpu.matmul %64, %66, %cst_69 {dimension_numbers = #tpu.dot_dimension_numbers<[1], [0], [0], [1], [0, 0, 1, 1], [], []>} : vector<16x4xbf16>, vector<4x128xbf16>, vector<16x128xf32> -> vector<16x128xf32>
    %68 = vector.extract_strided_slice %63 {offsets = [1, 0], sizes = [16, 4], strides = [1, 1]} : vector<18x4xbf16> to vector<16x4xbf16>
    %c0_70 = arith.constant 0 : index
    %c1_71 = arith.constant 1 : index
    %c0_72 = arith.constant 0 : index
    %c0_73 = arith.constant 0 : index
    %69 = vector.load %arg12[%c0_70, %c1_71, %c0_72, %c0_73] : memref<3x3x4x128xbf16, #tpu.memory_space<vmem>>, vector<1x1x4x128xbf16>
    %70 = vector.shape_cast %69 : vector<1x1x4x128xbf16> to vector<4x128xbf16>
    %cst_74 = arith.constant dense<0.000000e+00> : vector<16x128xf32>
    %71 = tpu.matmul %68, %70, %cst_74 {dimension_numbers = #tpu.dot_dimension_numbers<[1], [0], [0], [1], [0, 0, 1, 1], [], []>} : vector<16x4xbf16>, vector<4x128xbf16>, vector<16x128xf32> -> vector<16x128xf32>
    %72 = arith.addf %67, %71 : vector<16x128xf32>
    %73 = vector.extract_strided_slice %63 {offsets = [2, 0], sizes = [16, 4], strides = [1, 1]} : vector<18x4xbf16> to vector<16x4xbf16>
    %c0_75 = arith.constant 0 : index
    %c2_76 = arith.constant 2 : index
    %c0_77 = arith.constant 0 : index
    %c0_78 = arith.constant 0 : index
    %74 = vector.load %arg12[%c0_75, %c2_76, %c0_77, %c0_78] : memref<3x3x4x128xbf16, #tpu.memory_space<vmem>>, vector<1x1x4x128xbf16>
    %75 = vector.shape_cast %74 : vector<1x1x4x128xbf16> to vector<4x128xbf16>
    %cst_79 = arith.constant dense<0.000000e+00> : vector<16x128xf32>
    %76 = tpu.matmul %73, %75, %cst_79 {dimension_numbers = #tpu.dot_dimension_numbers<[1], [0], [0], [1], [0, 0, 1, 1], [], []>} : vector<16x4xbf16>, vector<4x128xbf16>, vector<16x128xf32> -> vector<16x128xf32>
    %77 = arith.addf %72, %76 : vector<16x128xf32>
    %c0_80 = arith.constant 0 : index
    %c0_81 = arith.constant 0 : index
    %c0_82 = arith.constant 0 : index
    %c0_83 = arith.constant 0 : index
    %78 = vector.load %arg4[%c0_80, %c0_81, %c0_82, %c0_83] : memref<1x1x18x4xbf16, #tpu.memory_space<vmem>>, vector<1x1x18x4xbf16>
    %79 = vector.shape_cast %78 : vector<1x1x18x4xbf16> to vector<18x4xbf16>
    %80 = vector.extract_strided_slice %79 {offsets = [0, 0], sizes = [16, 4], strides = [1, 1]} : vector<18x4xbf16> to vector<16x4xbf16>
    %c1_84 = arith.constant 1 : index
    %c0_85 = arith.constant 0 : index
    %c0_86 = arith.constant 0 : index
    %c0_87 = arith.constant 0 : index
    %81 = vector.load %arg12[%c1_84, %c0_85, %c0_86, %c0_87] : memref<3x3x4x128xbf16, #tpu.memory_space<vmem>>, vector<1x1x4x128xbf16>
    %82 = vector.shape_cast %81 : vector<1x1x4x128xbf16> to vector<4x128xbf16>
    %cst_88 = arith.constant dense<0.000000e+00> : vector<16x128xf32>
    %83 = tpu.matmul %80, %82, %cst_88 {dimension_numbers = #tpu.dot_dimension_numbers<[1], [0], [0], [1], [0, 0, 1, 1], [], []>} : vector<16x4xbf16>, vector<4x128xbf16>, vector<16x128xf32> -> vector<16x128xf32>
    %84 = arith.addf %77, %83 : vector<16x128xf32>
    %85 = vector.extract_strided_slice %79 {offsets = [1, 0], sizes = [16, 4], strides = [1, 1]} : vector<18x4xbf16> to vector<16x4xbf16>
    %c1_89 = arith.constant 1 : index
    %c1_90 = arith.constant 1 : index
    %c0_91 = arith.constant 0 : index
    %c0_92 = arith.constant 0 : index
    %86 = vector.load %arg12[%c1_89, %c1_90, %c0_91, %c0_92] : memref<3x3x4x128xbf16, #tpu.memory_space<vmem>>, vector<1x1x4x128xbf16>
    %87 = vector.shape_cast %86 : vector<1x1x4x128xbf16> to vector<4x128xbf16>
    %cst_93 = arith.constant dense<0.000000e+00> : vector<16x128xf32>
    %88 = tpu.matmul %85, %87, %cst_93 {dimension_numbers = #tpu.dot_dimension_numbers<[1], [0], [0], [1], [0, 0, 1, 1], [], []>} : vector<16x4xbf16>, vector<4x128xbf16>, vector<16x128xf32> -> vector<16x128xf32>
    %89 = arith.addf %84, %88 : vector<16x128xf32>
    %90 = vector.extract_strided_slice %79 {offsets = [2, 0], sizes = [16, 4], strides = [1, 1]} : vector<18x4xbf16> to vector<16x4xbf16>
    %c1_94 = arith.constant 1 : index
    %c2_95 = arith.constant 2 : index
    %c0_96 = arith.constant 0 : index
    %c0_97 = arith.constant 0 : index
    %91 = vector.load %arg12[%c1_94, %c2_95, %c0_96, %c0_97] : memref<3x3x4x128xbf16, #tpu.memory_space<vmem>>, vector<1x1x4x128xbf16>
    %92 = vector.shape_cast %91 : vector<1x1x4x128xbf16> to vector<4x128xbf16>
    %cst_98 = arith.constant dense<0.000000e+00> : vector<16x128xf32>
    %93 = tpu.matmul %90, %92, %cst_98 {dimension_numbers = #tpu.dot_dimension_numbers<[1], [0], [0], [1], [0, 0, 1, 1], [], []>} : vector<16x4xbf16>, vector<4x128xbf16>, vector<16x128xf32> -> vector<16x128xf32>
    %94 = arith.addf %89, %93 : vector<16x128xf32>
    %c0_99 = arith.constant 0 : index
    %c0_100 = arith.constant 0 : index
    %c0_101 = arith.constant 0 : index
    %c0_102 = arith.constant 0 : index
    %95 = vector.load %arg5[%c0_99, %c0_100, %c0_101, %c0_102] : memref<1x1x18x4xbf16, #tpu.memory_space<vmem>>, vector<1x1x18x4xbf16>
    %96 = vector.shape_cast %95 : vector<1x1x18x4xbf16> to vector<18x4xbf16>
    %97 = vector.extract_strided_slice %96 {offsets = [0, 0], sizes = [16, 4], strides = [1, 1]} : vector<18x4xbf16> to vector<16x4xbf16>
    %c2_103 = arith.constant 2 : index
    %c0_104 = arith.constant 0 : index
    %c0_105 = arith.constant 0 : index
    %c0_106 = arith.constant 0 : index
    %98 = vector.load %arg12[%c2_103, %c0_104, %c0_105, %c0_106] : memref<3x3x4x128xbf16, #tpu.memory_space<vmem>>, vector<1x1x4x128xbf16>
    %99 = vector.shape_cast %98 : vector<1x1x4x128xbf16> to vector<4x128xbf16>
    %cst_107 = arith.constant dense<0.000000e+00> : vector<16x128xf32>
    %100 = tpu.matmul %97, %99, %cst_107 {dimension_numbers = #tpu.dot_dimension_numbers<[1], [0], [0], [1], [0, 0, 1, 1], [], []>} : vector<16x4xbf16>, vector<4x128xbf16>, vector<16x128xf32> -> vector<16x128xf32>
    %101 = arith.addf %94, %100 : vector<16x128xf32>
    %102 = vector.extract_strided_slice %96 {offsets = [1, 0], sizes = [16, 4], strides = [1, 1]} : vector<18x4xbf16> to vector<16x4xbf16>
    %c2_108 = arith.constant 2 : index
    %c1_109 = arith.constant 1 : index
    %c0_110 = arith.constant 0 : index
    %c0_111 = arith.constant 0 : index
    %103 = vector.load %arg12[%c2_108, %c1_109, %c0_110, %c0_111] : memref<3x3x4x128xbf16, #tpu.memory_space<vmem>>, vector<1x1x4x128xbf16>
    %104 = vector.shape_cast %103 : vector<1x1x4x128xbf16> to vector<4x128xbf16>
    %cst_112 = arith.constant dense<0.000000e+00> : vector<16x128xf32>
    %105 = tpu.matmul %102, %104, %cst_112 {dimension_numbers = #tpu.dot_dimension_numbers<[1], [0], [0], [1], [0, 0, 1, 1], [], []>} : vector<16x4xbf16>, vector<4x128xbf16>, vector<16x128xf32> -> vector<16x128xf32>
    %106 = arith.addf %101, %105 : vector<16x128xf32>
    %107 = vector.extract_strided_slice %96 {offsets = [2, 0], sizes = [16, 4], strides = [1, 1]} : vector<18x4xbf16> to vector<16x4xbf16>
    %c2_113 = arith.constant 2 : index
    %c2_114 = arith.constant 2 : index
    %c0_115 = arith.constant 0 : index
    %c0_116 = arith.constant 0 : index
    %108 = vector.load %arg12[%c2_113, %c2_114, %c0_115, %c0_116] : memref<3x3x4x128xbf16, #tpu.memory_space<vmem>>, vector<1x1x4x128xbf16>
    %109 = vector.shape_cast %108 : vector<1x1x4x128xbf16> to vector<4x128xbf16>
    %cst_117 = arith.constant dense<0.000000e+00> : vector<16x128xf32>
    %110 = tpu.matmul %107, %109, %cst_117 {dimension_numbers = #tpu.dot_dimension_numbers<[1], [0], [0], [1], [0, 0, 1, 1], [], []>} : vector<16x4xbf16>, vector<4x128xbf16>, vector<16x128xf32> -> vector<16x128xf32>
    %111 = arith.addf %106, %110 : vector<16x128xf32>
    %112 = vector.broadcast %0 : vector<1x128xf32> to vector<16x128xf32>
    %113 = arith.addf %111, %112 : vector<16x128xf32>
    %cst_118 = arith.constant 0.000000e+00 : f32
    %114 = vector.broadcast %cst_118 : f32 to vector<16x128xf32>
    %115 = arith.cmpf oge, %113, %114 : vector<16x128xf32>
    %cst_119 = arith.constant 2.000000e-01 : f32
    %116 = vector.broadcast %cst_119 : f32 to vector<16x128xf32>
    %117 = arith.mulf %116, %113 : vector<16x128xf32>
    %118 = arith.select %115, %113, %117 : vector<16x128xi1>, vector<16x128xf32>
    %119 = arith.truncf %118 : vector<16x128xf32> to vector<16x128xbf16>
    %c0_120 = arith.constant 0 : index
    %c1_121 = arith.constant 1 : index
    %c0_122 = arith.constant 0 : index
    %c0_123 = arith.constant 0 : index
    %120 = vector.load %arg14[%c0_120, %c1_121, %c0_122, %c0_123] : memref<1x8x16x128xbf16, #tpu.memory_space<vmem>>, vector<1x1x16x128xbf16>
    %121 = vector.shape_cast %120 : vector<1x1x16x128xbf16> to vector<16x128xbf16>
    %122 = vector.shape_cast %119 : vector<16x128xbf16> to vector<1x1x16x128xbf16>
    tpu.vector_store %arg14[%c0_120, %c1_121, %c0_122, %c0_123], %122 {strides = array<i32>} : memref<1x8x16x128xbf16, #tpu.memory_space<vmem>>, vector<1x1x16x128xbf16>,
    %c0_124 = arith.constant 0 : index
    %c0_125 = arith.constant 0 : index
    %c0_126 = arith.constant 0 : index
    %c0_127 = arith.constant 0 : index
    %123 = vector.load %arg4[%c0_124, %c0_125, %c0_126, %c0_127] : memref<1x1x18x4xbf16, #tpu.memory_space<vmem>>, vector<1x1x18x4xbf16>
    %124 = vector.shape_cast %123 : vector<1x1x18x4xbf16> to vector<18x4xbf16>
    %125 = vector.extract_strided_slice %124 {offsets = [0, 0], sizes = [16, 4], strides = [1, 1]} : vector<18x4xbf16> to vector<16x4xbf16>
    %c0_128 = arith.constant 0 : index
    %c0_129 = arith.constant 0 : index
    %c0_130 = arith.constant 0 : index
    %c0_131 = arith.constant 0 : index
    %126 = vector.load %arg12[%c0_128, %c0_129, %c0_130, %c0_131] : memref<3x3x4x128xbf16, #tpu.memory_space<vmem>>, vector<1x1x4x128xbf16>
    %127 = vector.shape_cast %126 : vector<1x1x4x128xbf16> to vector<4x128xbf16>
    %cst_132 = arith.constant dense<0.000000e+00> : vector<16x128xf32>
    %128 = tpu.matmul %125, %127, %cst_132 {dimension_numbers = #tpu.dot_dimension_numbers<[1], [0], [0], [1], [0, 0, 1, 1], [], []>} : vector<16x4xbf16>, vector<4x128xbf16>, vector<16x128xf32> -> vector<16x128xf32>
    %129 = vector.extract_strided_slice %124 {offsets = [1, 0], sizes = [16, 4], strides = [1, 1]} : vector<18x4xbf16> to vector<16x4xbf16>
    %c0_133 = arith.constant 0 : index
    %c1_134 = arith.constant 1 : index
    %c0_135 = arith.constant 0 : index
    %c0_136 = arith.constant 0 : index
    %130 = vector.load %arg12[%c0_133, %c1_134, %c0_135, %c0_136] : memref<3x3x4x128xbf16, #tpu.memory_space<vmem>>, vector<1x1x4x128xbf16>
    %131 = vector.shape_cast %130 : vector<1x1x4x128xbf16> to vector<4x128xbf16>
    %cst_137 = arith.constant dense<0.000000e+00> : vector<16x128xf32>
    %132 = tpu.matmul %129, %131, %cst_137 {dimension_numbers = #tpu.dot_dimension_numbers<[1], [0], [0], [1], [0, 0, 1, 1], [], []>} : vector<16x4xbf16>, vector<4x128xbf16>, vector<16x128xf32> -> vector<16x128xf32>
    %133 = arith.addf %128, %132 : vector<16x128xf32>
    %134 = vector.extract_strided_slice %124 {offsets = [2, 0], sizes = [16, 4], strides = [1, 1]} : vector<18x4xbf16> to vector<16x4xbf16>
    %c0_138 = arith.constant 0 : index
    %c2_139 = arith.constant 2 : index
    %c0_140 = arith.constant 0 : index
    %c0_141 = arith.constant 0 : index
    %135 = vector.load %arg12[%c0_138, %c2_139, %c0_140, %c0_141] : memref<3x3x4x128xbf16, #tpu.memory_space<vmem>>, vector<1x1x4x128xbf16>
    %136 = vector.shape_cast %135 : vector<1x1x4x128xbf16> to vector<4x128xbf16>
    %cst_142 = arith.constant dense<0.000000e+00> : vector<16x128xf32>
    %137 = tpu.matmul %134, %136, %cst_142 {dimension_numbers = #tpu.dot_dimension_numbers<[1], [0], [0], [1], [0, 0, 1, 1], [], []>} : vector<16x4xbf16>, vector<4x128xbf16>, vector<16x128xf32> -> vector<16x128xf32>
    %138 = arith.addf %133, %137 : vector<16x128xf32>
    %c0_143 = arith.constant 0 : index
    %c0_144 = arith.constant 0 : index
    %c0_145 = arith.constant 0 : index
    %c0_146 = arith.constant 0 : index
    %139 = vector.load %arg5[%c0_143, %c0_144, %c0_145, %c0_146] : memref<1x1x18x4xbf16, #tpu.memory_space<vmem>>, vector<1x1x18x4xbf16>
    %140 = vector.shape_cast %139 : vector<1x1x18x4xbf16> to vector<18x4xbf16>
    %141 = vector.extract_strided_slice %140 {offsets = [0, 0], sizes = [16, 4], strides = [1, 1]} : vector<18x4xbf16> to vector<16x4xbf16>
    %c1_147 = arith.constant 1 : index
    %c0_148 = arith.constant 0 : index
    %c0_149 = arith.constant 0 : index
    %c0_150 = arith.constant 0 : index
    %142 = vector.load %arg12[%c1_147, %c0_148, %c0_149, %c0_150] : memref<3x3x4x128xbf16, #tpu.memory_space<vmem>>, vector<1x1x4x128xbf16>
    %143 = vector.shape_cast %142 : vector<1x1x4x128xbf16> to vector<4x128xbf16>
    %cst_151 = arith.constant dense<0.000000e+00> : vector<16x128xf32>
    %144 = tpu.matmul %141, %143, %cst_151 {dimension_numbers = #tpu.dot_dimension_numbers<[1], [0], [0], [1], [0, 0, 1, 1], [], []>} : vector<16x4xbf16>, vector<4x128xbf16>, vector<16x128xf32> -> vector<16x128xf32>
    %145 = arith.addf %138, %144 : vector<16x128xf32>
    %146 = vector.extract_strided_slice %140 {offsets = [1, 0], sizes = [16, 4], strides = [1, 1]} : vector<18x4xbf16> to vector<16x4xbf16>
    %c1_152 = arith.constant 1 : index
    %c1_153 = arith.constant 1 : index
    %c0_154 = arith.constant 0 : index
    %c0_155 = arith.constant 0 : index
    %147 = vector.load %arg12[%c1_152, %c1_153, %c0_154, %c0_155] : memref<3x3x4x128xbf16, #tpu.memory_space<vmem>>, vector<1x1x4x128xbf16>
    %148 = vector.shape_cast %147 : vector<1x1x4x128xbf16> to vector<4x128xbf16>
    %cst_156 = arith.constant dense<0.000000e+00> : vector<16x128xf32>
    %149 = tpu.matmul %146, %148, %cst_156 {dimension_numbers = #tpu.dot_dimension_numbers<[1], [0], [0], [1], [0, 0, 1, 1], [], []>} : vector<16x4xbf16>, vector<4x128xbf16>, vector<16x128xf32> -> vector<16x128xf32>
    %150 = arith.addf %145, %149 : vector<16x128xf32>
    %151 = vector.extract_strided_slice %140 {offsets = [2, 0], sizes = [16, 4], strides = [1, 1]} : vector<18x4xbf16> to vector<16x4xbf16>
    %c1_157 = arith.constant 1 : index
    %c2_158 = arith.constant 2 : index
    %c0_159 = arith.constant 0 : index
    %c0_160 = arith.constant 0 : index
    %152 = vector.load %arg12[%c1_157, %c2_158, %c0_159, %c0_160] : memref<3x3x4x128xbf16, #tpu.memory_space<vmem>>, vector<1x1x4x128xbf16>
    %153 = vector.shape_cast %152 : vector<1x1x4x128xbf16> to vector<4x128xbf16>
    %cst_161 = arith.constant dense<0.000000e+00> : vector<16x128xf32>
    %154 = tpu.matmul %151, %153, %cst_161 {dimension_numbers = #tpu.dot_dimension_numbers<[1], [0], [0], [1], [0, 0, 1, 1], [], []>} : vector<16x4xbf16>, vector<4x128xbf16>, vector<16x128xf32> -> vector<16x128xf32>
    %155 = arith.addf %150, %154 : vector<16x128xf32>
    %c0_162 = arith.constant 0 : index
    %c0_163 = arith.constant 0 : index
    %c0_164 = arith.constant 0 : index
    %c0_165 = arith.constant 0 : index
    %156 = vector.load %arg6[%c0_162, %c0_163, %c0_164, %c0_165] : memref<1x1x18x4xbf16, #tpu.memory_space<vmem>>, vector<1x1x18x4xbf16>
    %157 = vector.shape_cast %156 : vector<1x1x18x4xbf16> to vector<18x4xbf16>
    %158 = vector.extract_strided_slice %157 {offsets = [0, 0], sizes = [16, 4], strides = [1, 1]} : vector<18x4xbf16> to vector<16x4xbf16>
    %c2_166 = arith.constant 2 : index
    %c0_167 = arith.constant 0 : index
    %c0_168 = arith.constant 0 : index
    %c0_169 = arith.constant 0 : index
    %159 = vector.load %arg12[%c2_166, %c0_167, %c0_168, %c0_169] : memref<3x3x4x128xbf16, #tpu.memory_space<vmem>>, vector<1x1x4x128xbf16>
    %160 = vector.shape_cast %159 : vector<1x1x4x128xbf16> to vector<4x128xbf16>
    %cst_170 = arith.constant dense<0.000000e+00> : vector<16x128xf32>
    %161 = tpu.matmul %158, %160, %cst_170 {dimension_numbers = #tpu.dot_dimension_numbers<[1], [0], [0], [1], [0, 0, 1, 1], [], []>} : vector<16x4xbf16>, vector<4x128xbf16>, vector<16x128xf32> -> vector<16x128xf32>
    %162 = arith.addf %155, %161 : vector<16x128xf32>
    %163 = vector.extract_strided_slice %157 {offsets = [1, 0], sizes = [16, 4], strides = [1, 1]} : vector<18x4xbf16> to vector<16x4xbf16>
    %c2_171 = arith.constant 2 : index
    %c1_172 = arith.constant 1 : index
    %c0_173 = arith.constant 0 : index
    %c0_174 = arith.constant 0 : index
    %164 = vector.load %arg12[%c2_171, %c1_172, %c0_173, %c0_174] : memref<3x3x4x128xbf16, #tpu.memory_space<vmem>>, vector<1x1x4x128xbf16>
    %165 = vector.shape_cast %164 : vector<1x1x4x128xbf16> to vector<4x128xbf16>
    %cst_175 = arith.constant dense<0.000000e+00> : vector<16x128xf32>
    %166 = tpu.matmul %163, %165, %cst_175 {dimension_numbers = #tpu.dot_dimension_numbers<[1], [0], [0], [1], [0, 0, 1, 1], [], []>} : vector<16x4xbf16>, vector<4x128xbf16>, vector<16x128xf32> -> vector<16x128xf32>
    %167 = arith.addf %162, %166 : vector<16x128xf32>
    %168 = vector.extract_strided_slice %157 {offsets = [2, 0], sizes = [16, 4], strides = [1, 1]} : vector<18x4xbf16> to vector<16x4xbf16>
    %c2_176 = arith.constant 2 : index
    %c2_177 = arith.constant 2 : index
    %c0_178 = arith.constant 0 : index
    %c0_179 = arith.constant 0 : index
    %169 = vector.load %arg12[%c2_176, %c2_177, %c0_178, %c0_179] : memref<3x3x4x128xbf16, #tpu.memory_space<vmem>>, vector<1x1x4x128xbf16>
    %170 = vector.shape_cast %169 : vector<1x1x4x128xbf16> to vector<4x128xbf16>
    %cst_180 = arith.constant dense<0.000000e+00> : vector<16x128xf32>
    %171 = tpu.matmul %168, %170, %cst_180 {dimension_numbers = #tpu.dot_dimension_numbers<[1], [0], [0], [1], [0, 0, 1, 1], [], []>} : vector<16x4xbf16>, vector<4x128xbf16>, vector<16x128xf32> -> vector<16x128xf32>
    %172 = arith.addf %167, %171 : vector<16x128xf32>
    %173 = vector.broadcast %0 : vector<1x128xf32> to vector<16x128xf32>
    %174 = arith.addf %172, %173 : vector<16x128xf32>
    %cst_181 = arith.constant 0.000000e+00 : f32
    %175 = vector.broadcast %cst_181 : f32 to vector<16x128xf32>
    %176 = arith.cmpf oge, %174, %175 : vector<16x128xf32>
    %cst_182 = arith.constant 2.000000e-01 : f32
    %177 = vector.broadcast %cst_182 : f32 to vector<16x128xf32>
    %178 = arith.mulf %177, %174 : vector<16x128xf32>
    %179 = arith.select %176, %174, %178 : vector<16x128xi1>, vector<16x128xf32>
    %180 = arith.truncf %179 : vector<16x128xf32> to vector<16x128xbf16>
    %c0_183 = arith.constant 0 : index
    %c2_184 = arith.constant 2 : index
    %c0_185 = arith.constant 0 : index
    %c0_186 = arith.constant 0 : index
    %181 = vector.load %arg14[%c0_183, %c2_184, %c0_185, %c0_186] : memref<1x8x16x128xbf16, #tpu.memory_space<vmem>>, vector<1x1x16x128xbf16>
    %182 = vector.shape_cast %181 : vector<1x1x16x128xbf16> to vector<16x128xbf16>
    %183 = vector.shape_cast %180 : vector<16x128xbf16> to vector<1x1x16x128xbf16>
    tpu.vector_store %arg14[%c0_183, %c2_184, %c0_185, %c0_186], %183 {strides = array<i32>} : memref<1x8x16x128xbf16, #tpu.memory_space<vmem>>, vector<1x1x16x128xbf16>,
    %c0_187 = arith.constant 0 : index
    %c0_188 = arith.constant 0 : index
    %c0_189 = arith.constant 0 : index
    %c0_190 = arith.constant 0 : index
    %184 = vector.load %arg5[%c0_187, %c0_188, %c0_189, %c0_190] : memref<1x1x18x4xbf16, #tpu.memory_space<vmem>>, vector<1x1x18x4xbf16>
    %185 = vector.shape_cast %184 : vector<1x1x18x4xbf16> to vector<18x4xbf16>
    %186 = vector.extract_strided_slice %185 {offsets = [0, 0], sizes = [16, 4], strides = [1, 1]} : vector<18x4xbf16> to vector<16x4xbf16>
    %c0_191 = arith.constant 0 : index
    %c0_192 = arith.constant 0 : index
    %c0_193 = arith.constant 0 : index
    %c0_194 = arith.constant 0 : index
    %187 = vector.load %arg12[%c0_191, %c0_192, %c0_193, %c0_194] : memref<3x3x4x128xbf16, #tpu.memory_space<vmem>>, vector<1x1x4x128xbf16>
    %188 = vector.shape_cast %187 : vector<1x1x4x128xbf16> to vector<4x128xbf16>
    %cst_195 = arith.constant dense<0.000000e+00> : vector<16x128xf32>
    %189 = tpu.matmul %186, %188, %cst_195 {dimension_numbers = #tpu.dot_dimension_numbers<[1], [0], [0], [1], [0, 0, 1, 1], [], []>} : vector<16x4xbf16>, vector<4x128xbf16>, vector<16x128xf32> -> vector<16x128xf32>
    %190 = vector.extract_strided_slice %185 {offsets = [1, 0], sizes = [16, 4], strides = [1, 1]} : vector<18x4xbf16> to vector<16x4xbf16>
    %c0_196 = arith.constant 0 : index
    %c1_197 = arith.constant 1 : index
    %c0_198 = arith.constant 0 : index
    %c0_199 = arith.constant 0 : index
    %191 = vector.load %arg12[%c0_196, %c1_197, %c0_198, %c0_199] : memref<3x3x4x128xbf16, #tpu.memory_space<vmem>>, vector<1x1x4x128xbf16>
    %192 = vector.shape_cast %191 : vector<1x1x4x128xbf16> to vector<4x128xbf16>
    %cst_200 = arith.constant dense<0.000000e+00> : vector<16x128xf32>
    %193 = tpu.matmul %190, %192, %cst_200 {dimension_numbers = #tpu.dot_dimension_numbers<[1], [0], [0], [1], [0, 0, 1, 1], [], []>} : vector<16x4xbf16>, vector<4x128xbf16>, vector<16x128xf32> -> vector<16x128xf32>
    %194 = arith.addf %189, %193 : vector<16x128xf32>
    %195 = vector.extract_strided_slice %185 {offsets = [2, 0], sizes = [16, 4], strides = [1, 1]} : vector<18x4xbf16> to vector<16x4xbf16>
    %c0_201 = arith.constant 0 : index
    %c2_202 = arith.constant 2 : index
    %c0_203 = arith.constant 0 : index
    %c0_204 = arith.constant 0 : index
    %196 = vector.load %arg12[%c0_201, %c2_202, %c0_203, %c0_204] : memref<3x3x4x128xbf16, #tpu.memory_space<vmem>>, vector<1x1x4x128xbf16>
    %197 = vector.shape_cast %196 : vector<1x1x4x128xbf16> to vector<4x128xbf16>
    %cst_205 = arith.constant dense<0.000000e+00> : vector<16x128xf32>
    %198 = tpu.matmul %195, %197, %cst_205 {dimension_numbers = #tpu.dot_dimension_numbers<[1], [0], [0], [1], [0, 0, 1, 1], [], []>} : vector<16x4xbf16>, vector<4x128xbf16>, vector<16x128xf32> -> vector<16x128xf32>
    %199 = arith.addf %194, %198 : vector<16x128xf32>
    %c0_206 = arith.constant 0 : index
    %c0_207 = arith.constant 0 : index
    %c0_208 = arith.constant 0 : index
    %c0_209 = arith.constant 0 : index
    %200 = vector.load %arg6[%c0_206, %c0_207, %c0_208, %c0_209] : memref<1x1x18x4xbf16, #tpu.memory_space<vmem>>, vector<1x1x18x4xbf16>
    %201 = vector.shape_cast %200 : vector<1x1x18x4xbf16> to vector<18x4xbf16>
    %202 = vector.extract_strided_slice %201 {offsets = [0, 0], sizes = [16, 4], strides = [1, 1]} : vector<18x4xbf16> to vector<16x4xbf16>
    %c1_210 = arith.constant 1 : index
    %c0_211 = arith.constant 0 : index
    %c0_212 = arith.constant 0 : index
    %c0_213 = arith.constant 0 : index
    %203 = vector.load %arg12[%c1_210, %c0_211, %c0_212, %c0_213] : memref<3x3x4x128xbf16, #tpu.memory_space<vmem>>, vector<1x1x4x128xbf16>
    %204 = vector.shape_cast %203 : vector<1x1x4x128xbf16> to vector<4x128xbf16>
    %cst_214 = arith.constant dense<0.000000e+00> : vector<16x128xf32>
    %205 = tpu.matmul %202, %204, %cst_214 {dimension_numbers = #tpu.dot_dimension_numbers<[1], [0], [0], [1], [0, 0, 1, 1], [], []>} : vector<16x4xbf16>, vector<4x128xbf16>, vector<16x128xf32> -> vector<16x128xf32>
    %206 = arith.addf %199, %205 : vector<16x128xf32>
    %207 = vector.extract_strided_slice %201 {offsets = [1, 0], sizes = [16, 4], strides = [1, 1]} : vector<18x4xbf16> to vector<16x4xbf16>
    %c1_215 = arith.constant 1 : index
    %c1_216 = arith.constant 1 : index
    %c0_217 = arith.constant 0 : index
    %c0_218 = arith.constant 0 : index
    %208 = vector.load %arg12[%c1_215, %c1_216, %c0_217, %c0_218] : memref<3x3x4x128xbf16, #tpu.memory_space<vmem>>, vector<1x1x4x128xbf16>
    %209 = vector.shape_cast %208 : vector<1x1x4x128xbf16> to vector<4x128xbf16>
    %cst_219 = arith.constant dense<0.000000e+00> : vector<16x128xf32>
    %210 = tpu.matmul %207, %209, %cst_219 {dimension_numbers = #tpu.dot_dimension_numbers<[1], [0], [0], [1], [0, 0, 1, 1], [], []>} : vector<16x4xbf16>, vector<4x128xbf16>, vector<16x128xf32> -> vector<16x128xf32>
    %211 = arith.addf %206, %210 : vector<16x128xf32>
    %212 = vector.extract_strided_slice %201 {offsets = [2, 0], sizes = [16, 4], strides = [1, 1]} : vector<18x4xbf16> to vector<16x4xbf16>
    %c1_220 = arith.constant 1 : index
    %c2_221 = arith.constant 2 : index
    %c0_222 = arith.constant 0 : index
    %c0_223 = arith.constant 0 : index
    %213 = vector.load %arg12[%c1_220, %c2_221, %c0_222, %c0_223] : memref<3x3x4x128xbf16, #tpu.memory_space<vmem>>, vector<1x1x4x128xbf16>
    %214 = vector.shape_cast %213 : vector<1x1x4x128xbf16> to vector<4x128xbf16>
    %cst_224 = arith.constant dense<0.000000e+00> : vector<16x128xf32>
    %215 = tpu.matmul %212, %214, %cst_224 {dimension_numbers = #tpu.dot_dimension_numbers<[1], [0], [0], [1], [0, 0, 1, 1], [], []>} : vector<16x4xbf16>, vector<4x128xbf16>, vector<16x128xf32> -> vector<16x128xf32>
    %216 = arith.addf %211, %215 : vector<16x128xf32>
    %c0_225 = arith.constant 0 : index
    %c0_226 = arith.constant 0 : index
    %c0_227 = arith.constant 0 : index
    %c0_228 = arith.constant 0 : index
    %217 = vector.load %arg7[%c0_225, %c0_226, %c0_227, %c0_228] : memref<1x1x18x4xbf16, #tpu.memory_space<vmem>>, vector<1x1x18x4xbf16>
    %218 = vector.shape_cast %217 : vector<1x1x18x4xbf16> to vector<18x4xbf16>
    %219 = vector.extract_strided_slice %218 {offsets = [0, 0], sizes = [16, 4], strides = [1, 1]} : vector<18x4xbf16> to vector<16x4xbf16>
    %c2_229 = arith.constant 2 : index
    %c0_230 = arith.constant 0 : index
    %c0_231 = arith.constant 0 : index
    %c0_232 = arith.constant 0 : index
    %220 = vector.load %arg12[%c2_229, %c0_230, %c0_231, %c0_232] : memref<3x3x4x128xbf16, #tpu.memory_space<vmem>>, vector<1x1x4x128xbf16>
    %221 = vector.shape_cast %220 : vector<1x1x4x128xbf16> to vector<4x128xbf16>
    %cst_233 = arith.constant dense<0.000000e+00> : vector<16x128xf32>
    %222 = tpu.matmul %219, %221, %cst_233 {dimension_numbers = #tpu.dot_dimension_numbers<[1], [0], [0], [1], [0, 0, 1, 1], [], []>} : vector<16x4xbf16>, vector<4x128xbf16>, vector<16x128xf32> -> vector<16x128xf32>
    %223 = arith.addf %216, %222 : vector<16x128xf32>
    %224 = vector.extract_strided_slice %218 {offsets = [1, 0], sizes = [16, 4], strides = [1, 1]} : vector<18x4xbf16> to vector<16x4xbf16>
    %c2_234 = arith.constant 2 : index
    %c1_235 = arith.constant 1 : index
    %c0_236 = arith.constant 0 : index
    %c0_237 = arith.constant 0 : index
    %225 = vector.load %arg12[%c2_234, %c1_235, %c0_236, %c0_237] : memref<3x3x4x128xbf16, #tpu.memory_space<vmem>>, vector<1x1x4x128xbf16>
    %226 = vector.shape_cast %225 : vector<1x1x4x128xbf16> to vector<4x128xbf16>
    %cst_238 = arith.constant dense<0.000000e+00> : vector<16x128xf32>
    %227 = tpu.matmul %224, %226, %cst_238 {dimension_numbers = #tpu.dot_dimension_numbers<[1], [0], [0], [1], [0, 0, 1, 1], [], []>} : vector<16x4xbf16>, vector<4x128xbf16>, vector<16x128xf32> -> vector<16x128xf32>
    %228 = arith.addf %223, %227 : vector<16x128xf32>
    %229 = vector.extract_strided_slice %218 {offsets = [2, 0], sizes = [16, 4], strides = [1, 1]} : vector<18x4xbf16> to vector<16x4xbf16>
    %c2_239 = arith.constant 2 : index
    %c2_240 = arith.constant 2 : index
    %c0_241 = arith.constant 0 : index
    %c0_242 = arith.constant 0 : index
    %230 = vector.load %arg12[%c2_239, %c2_240, %c0_241, %c0_242] : memref<3x3x4x128xbf16, #tpu.memory_space<vmem>>, vector<1x1x4x128xbf16>
    %231 = vector.shape_cast %230 : vector<1x1x4x128xbf16> to vector<4x128xbf16>
    %cst_243 = arith.constant dense<0.000000e+00> : vector<16x128xf32>
    %232 = tpu.matmul %229, %231, %cst_243 {dimension_numbers = #tpu.dot_dimension_numbers<[1], [0], [0], [1], [0, 0, 1, 1], [], []>} : vector<16x4xbf16>, vector<4x128xbf16>, vector<16x128xf32> -> vector<16x128xf32>
    %233 = arith.addf %228, %232 : vector<16x128xf32>
    %234 = vector.broadcast %0 : vector<1x128xf32> to vector<16x128xf32>
    %235 = arith.addf %233, %234 : vector<16x128xf32>
    %cst_244 = arith.constant 0.000000e+00 : f32
    %236 = vector.broadcast %cst_244 : f32 to vector<16x128xf32>
    %237 = arith.cmpf oge, %235, %236 : vector<16x128xf32>
    %cst_245 = arith.constant 2.000000e-01 : f32
    %238 = vector.broadcast %cst_245 : f32 to vector<16x128xf32>
    %239 = arith.mulf %238, %235 : vector<16x128xf32>
    %240 = arith.select %237, %235, %239 : vector<16x128xi1>, vector<16x128xf32>
    %241 = arith.truncf %240 : vector<16x128xf32> to vector<16x128xbf16>
    %c0_246 = arith.constant 0 : index
    %c3 = arith.constant 3 : index
    %c0_247 = arith.constant 0 : index
    %c0_248 = arith.constant 0 : index
    %242 = vector.load %arg14[%c0_246, %c3, %c0_247, %c0_248] : memref<1x8x16x128xbf16, #tpu.memory_space<vmem>>, vector<1x1x16x128xbf16>
    %243 = vector.shape_cast %242 : vector<1x1x16x128xbf16> to vector<16x128xbf16>
    %244 = vector.shape_cast %241 : vector<16x128xbf16> to vector<1x1x16x128xbf16>
    tpu.vector_store %arg14[%c0_246, %c3, %c0_247, %c0_248], %244 {strides = array<i32>} : memref<1x8x16x128xbf16, #tpu.memory_space<vmem>>, vector<1x1x16x128xbf16>,
    %c0_249 = arith.constant 0 : index
    %c0_250 = arith.constant 0 : index
    %c0_251 = arith.constant 0 : index
    %c0_252 = arith.constant 0 : index
    %245 = vector.load %arg6[%c0_249, %c0_250, %c0_251, %c0_252] : memref<1x1x18x4xbf16, #tpu.memory_space<vmem>>, vector<1x1x18x4xbf16>
    %246 = vector.shape_cast %245 : vector<1x1x18x4xbf16> to vector<18x4xbf16>
    %247 = vector.extract_strided_slice %246 {offsets = [0, 0], sizes = [16, 4], strides = [1, 1]} : vector<18x4xbf16> to vector<16x4xbf16>
    %c0_253 = arith.constant 0 : index
    %c0_254 = arith.constant 0 : index
    %c0_255 = arith.constant 0 : index
    %c0_256 = arith.constant 0 : index
    %248 = vector.load %arg12[%c0_253, %c0_254, %c0_255, %c0_256] : memref<3x3x4x128xbf16, #tpu.memory_space<vmem>>, vector<1x1x4x128xbf16>
    %249 = vector.shape_cast %248 : vector<1x1x4x128xbf16> to vector<4x128xbf16>
    %cst_257 = arith.constant dense<0.000000e+00> : vector<16x128xf32>
    %250 = tpu.matmul %247, %249, %cst_257 {dimension_numbers = #tpu.dot_dimension_numbers<[1], [0], [0], [1], [0, 0, 1, 1], [], []>} : vector<16x4xbf16>, vector<4x128xbf16>, vector<16x128xf32> -> vector<16x128xf32>
    %251 = vector.extract_strided_slice %246 {offsets = [1, 0], sizes = [16, 4], strides = [1, 1]} : vector<18x4xbf16> to vector<16x4xbf16>
    %c0_258 = arith.constant 0 : index
    %c1_259 = arith.constant 1 : index
    %c0_260 = arith.constant 0 : index
    %c0_261 = arith.constant 0 : index
    %252 = vector.load %arg12[%c0_258, %c1_259, %c0_260, %c0_261] : memref<3x3x4x128xbf16, #tpu.memory_space<vmem>>, vector<1x1x4x128xbf16>
    %253 = vector.shape_cast %252 : vector<1x1x4x128xbf16> to vector<4x128xbf16>
    %cst_262 = arith.constant dense<0.000000e+00> : vector<16x128xf32>
    %254 = tpu.matmul %251, %253, %cst_262 {dimension_numbers = #tpu.dot_dimension_numbers<[1], [0], [0], [1], [0, 0, 1, 1], [], []>} : vector<16x4xbf16>, vector<4x128xbf16>, vector<16x128xf32> -> vector<16x128xf32>
    %255 = arith.addf %250, %254 : vector<16x128xf32>
    %256 = vector.extract_strided_slice %246 {offsets = [2, 0], sizes = [16, 4], strides = [1, 1]} : vector<18x4xbf16> to vector<16x4xbf16>
    %c0_263 = arith.constant 0 : index
    %c2_264 = arith.constant 2 : index
    %c0_265 = arith.constant 0 : index
    %c0_266 = arith.constant 0 : index
    %257 = vector.load %arg12[%c0_263, %c2_264, %c0_265, %c0_266] : memref<3x3x4x128xbf16, #tpu.memory_space<vmem>>, vector<1x1x4x128xbf16>
    %258 = vector.shape_cast %257 : vector<1x1x4x128xbf16> to vector<4x128xbf16>
    %cst_267 = arith.constant dense<0.000000e+00> : vector<16x128xf32>
    %259 = tpu.matmul %256, %258, %cst_267 {dimension_numbers = #tpu.dot_dimension_numbers<[1], [0], [0], [1], [0, 0, 1, 1], [], []>} : vector<16x4xbf16>, vector<4x128xbf16>, vector<16x128xf32> -> vector<16x128xf32>
    %260 = arith.addf %255, %259 : vector<16x128xf32>
    %c0_268 = arith.constant 0 : index
    %c0_269 = arith.constant 0 : index
    %c0_270 = arith.constant 0 : index
    %c0_271 = arith.constant 0 : index
    %261 = vector.load %arg7[%c0_268, %c0_269, %c0_270, %c0_271] : memref<1x1x18x4xbf16, #tpu.memory_space<vmem>>, vector<1x1x18x4xbf16>
    %262 = vector.shape_cast %261 : vector<1x1x18x4xbf16> to vector<18x4xbf16>
    %263 = vector.extract_strided_slice %262 {offsets = [0, 0], sizes = [16, 4], strides = [1, 1]} : vector<18x4xbf16> to vector<16x4xbf16>
    %c1_272 = arith.constant 1 : index
    %c0_273 = arith.constant 0 : index
    %c0_274 = arith.constant 0 : index
    %c0_275 = arith.constant 0 : index
    %264 = vector.load %arg12[%c1_272, %c0_273, %c0_274, %c0_275] : memref<3x3x4x128xbf16, #tpu.memory_space<vmem>>, vector<1x1x4x128xbf16>
    %265 = vector.shape_cast %264 : vector<1x1x4x128xbf16> to vector<4x128xbf16>
    %cst_276 = arith.constant dense<0.000000e+00> : vector<16x128xf32>
    %266 = tpu.matmul %263, %265, %cst_276 {dimension_numbers = #tpu.dot_dimension_numbers<[1], [0], [0], [1], [0, 0, 1, 1], [], []>} : vector<16x4xbf16>, vector<4x128xbf16>, vector<16x128xf32> -> vector<16x128xf32>
    %267 = arith.addf %260, %266 : vector<16x128xf32>
    %268 = vector.extract_strided_slice %262 {offsets = [1, 0], sizes = [16, 4], strides = [1, 1]} : vector<18x4xbf16> to vector<16x4xbf16>
    %c1_277 = arith.constant 1 : index
    %c1_278 = arith.constant 1 : index
    %c0_279 = arith.constant 0 : index
    %c0_280 = arith.constant 0 : index
    %269 = vector.load %arg12[%c1_277, %c1_278, %c0_279, %c0_280] : memref<3x3x4x128xbf16, #tpu.memory_space<vmem>>, vector<1x1x4x128xbf16>
    %270 = vector.shape_cast %269 : vector<1x1x4x128xbf16> to vector<4x128xbf16>
    %cst_281 = arith.constant dense<0.000000e+00> : vector<16x128xf32>
    %271 = tpu.matmul %268, %270, %cst_281 {dimension_numbers = #tpu.dot_dimension_numbers<[1], [0], [0], [1], [0, 0, 1, 1], [], []>} : vector<16x4xbf16>, vector<4x128xbf16>, vector<16x128xf32> -> vector<16x128xf32>
    %272 = arith.addf %267, %271 : vector<16x128xf32>
    %273 = vector.extract_strided_slice %262 {offsets = [2, 0], sizes = [16, 4], strides = [1, 1]} : vector<18x4xbf16> to vector<16x4xbf16>
    %c1_282 = arith.constant 1 : index
    %c2_283 = arith.constant 2 : index
    %c0_284 = arith.constant 0 : index
    %c0_285 = arith.constant 0 : index
    %274 = vector.load %arg12[%c1_282, %c2_283, %c0_284, %c0_285] : memref<3x3x4x128xbf16, #tpu.memory_space<vmem>>, vector<1x1x4x128xbf16>
    %275 = vector.shape_cast %274 : vector<1x1x4x128xbf16> to vector<4x128xbf16>
    %cst_286 = arith.constant dense<0.000000e+00> : vector<16x128xf32>
    %276 = tpu.matmul %273, %275, %cst_286 {dimension_numbers = #tpu.dot_dimension_numbers<[1], [0], [0], [1], [0, 0, 1, 1], [], []>} : vector<16x4xbf16>, vector<4x128xbf16>, vector<16x128xf32> -> vector<16x128xf32>
    %277 = arith.addf %272, %276 : vector<16x128xf32>
    %c0_287 = arith.constant 0 : index
    %c0_288 = arith.constant 0 : index
    %c0_289 = arith.constant 0 : index
    %c0_290 = arith.constant 0 : index
    %278 = vector.load %arg8[%c0_287, %c0_288, %c0_289, %c0_290] : memref<1x1x18x4xbf16, #tpu.memory_space<vmem>>, vector<1x1x18x4xbf16>
    %279 = vector.shape_cast %278 : vector<1x1x18x4xbf16> to vector<18x4xbf16>
    %280 = vector.extract_strided_slice %279 {offsets = [0, 0], sizes = [16, 4], strides = [1, 1]} : vector<18x4xbf16> to vector<16x4xbf16>
    %c2_291 = arith.constant 2 : index
    %c0_292 = arith.constant 0 : index
    %c0_293 = arith.constant 0 : index
    %c0_294 = arith.constant 0 : index
    %281 = vector.load %arg12[%c2_291, %c0_292, %c0_293, %c0_294] : memref<3x3x4x128xbf16, #tpu.memory_space<vmem>>, vector<1x1x4x128xbf16>
    %282 = vector.shape_cast %281 : vector<1x1x4x128xbf16> to vector<4x128xbf16>
    %cst_295 = arith.constant dense<0.000000e+00> : vector<16x128xf32>
    %283 = tpu.matmul %280, %282, %cst_295 {dimension_numbers = #tpu.dot_dimension_numbers<[1], [0], [0], [1], [0, 0, 1, 1], [], []>} : vector<16x4xbf16>, vector<4x128xbf16>, vector<16x128xf32> -> vector<16x128xf32>
    %284 = arith.addf %277, %283 : vector<16x128xf32>
    %285 = vector.extract_strided_slice %279 {offsets = [1, 0], sizes = [16, 4], strides = [1, 1]} : vector<18x4xbf16> to vector<16x4xbf16>
    %c2_296 = arith.constant 2 : index
    %c1_297 = arith.constant 1 : index
    %c0_298 = arith.constant 0 : index
    %c0_299 = arith.constant 0 : index
    %286 = vector.load %arg12[%c2_296, %c1_297, %c0_298, %c0_299] : memref<3x3x4x128xbf16, #tpu.memory_space<vmem>>, vector<1x1x4x128xbf16>
    %287 = vector.shape_cast %286 : vector<1x1x4x128xbf16> to vector<4x128xbf16>
    %cst_300 = arith.constant dense<0.000000e+00> : vector<16x128xf32>
    %288 = tpu.matmul %285, %287, %cst_300 {dimension_numbers = #tpu.dot_dimension_numbers<[1], [0], [0], [1], [0, 0, 1, 1], [], []>} : vector<16x4xbf16>, vector<4x128xbf16>, vector<16x128xf32> -> vector<16x128xf32>
    %289 = arith.addf %284, %288 : vector<16x128xf32>
    %290 = vector.extract_strided_slice %279 {offsets = [2, 0], sizes = [16, 4], strides = [1, 1]} : vector<18x4xbf16> to vector<16x4xbf16>
    %c2_301 = arith.constant 2 : index
    %c2_302 = arith.constant 2 : index
    %c0_303 = arith.constant 0 : index
    %c0_304 = arith.constant 0 : index
    %291 = vector.load %arg12[%c2_301, %c2_302, %c0_303, %c0_304] : memref<3x3x4x128xbf16, #tpu.memory_space<vmem>>, vector<1x1x4x128xbf16>
    %292 = vector.shape_cast %291 : vector<1x1x4x128xbf16> to vector<4x128xbf16>
    %cst_305 = arith.constant dense<0.000000e+00> : vector<16x128xf32>
    %293 = tpu.matmul %290, %292, %cst_305 {dimension_numbers = #tpu.dot_dimension_numbers<[1], [0], [0], [1], [0, 0, 1, 1], [], []>} : vector<16x4xbf16>, vector<4x128xbf16>, vector<16x128xf32> -> vector<16x128xf32>
    %294 = arith.addf %289, %293 : vector<16x128xf32>
    %295 = vector.broadcast %0 : vector<1x128xf32> to vector<16x128xf32>
    %296 = arith.addf %294, %295 : vector<16x128xf32>
    %cst_306 = arith.constant 0.000000e+00 : f32
    %297 = vector.broadcast %cst_306 : f32 to vector<16x128xf32>
    %298 = arith.cmpf oge, %296, %297 : vector<16x128xf32>
    %cst_307 = arith.constant 2.000000e-01 : f32
    %299 = vector.broadcast %cst_307 : f32 to vector<16x128xf32>
    %300 = arith.mulf %299, %296 : vector<16x128xf32>
    %301 = arith.select %298, %296, %300 : vector<16x128xi1>, vector<16x128xf32>
    %302 = arith.truncf %301 : vector<16x128xf32> to vector<16x128xbf16>
    %c0_308 = arith.constant 0 : index
    %c4 = arith.constant 4 : index
    %c0_309 = arith.constant 0 : index
    %c0_310 = arith.constant 0 : index
    %303 = vector.load %arg14[%c0_308, %c4, %c0_309, %c0_310] : memref<1x8x16x128xbf16, #tpu.memory_space<vmem>>, vector<1x1x16x128xbf16>
    %304 = vector.shape_cast %303 : vector<1x1x16x128xbf16> to vector<16x128xbf16>
    %305 = vector.shape_cast %302 : vector<16x128xbf16> to vector<1x1x16x128xbf16>
    tpu.vector_store %arg14[%c0_308, %c4, %c0_309, %c0_310], %305 {strides = array<i32>} : memref<1x8x16x128xbf16, #tpu.memory_space<vmem>>, vector<1x1x16x128xbf16>,
    %c0_311 = arith.constant 0 : index
    %c0_312 = arith.constant 0 : index
    %c0_313 = arith.constant 0 : index
    %c0_314 = arith.constant 0 : index
    %306 = vector.load %arg7[%c0_311, %c0_312, %c0_313, %c0_314] : memref<1x1x18x4xbf16, #tpu.memory_space<vmem>>, vector<1x1x18x4xbf16>
    %307 = vector.shape_cast %306 : vector<1x1x18x4xbf16> to vector<18x4xbf16>
    %308 = vector.extract_strided_slice %307 {offsets = [0, 0], sizes = [16, 4], strides = [1, 1]} : vector<18x4xbf16> to vector<16x4xbf16>
    %c0_315 = arith.constant 0 : index
    %c0_316 = arith.constant 0 : index
    %c0_317 = arith.constant 0 : index
    %c0_318 = arith.constant 0 : index
    %309 = vector.load %arg12[%c0_315, %c0_316, %c0_317, %c0_318] : memref<3x3x4x128xbf16, #tpu.memory_space<vmem>>, vector<1x1x4x128xbf16>
    %310 = vector.shape_cast %309 : vector<1x1x4x128xbf16> to vector<4x128xbf16>
    %cst_319 = arith.constant dense<0.000000e+00> : vector<16x128xf32>
    %311 = tpu.matmul %308, %310, %cst_319 {dimension_numbers = #tpu.dot_dimension_numbers<[1], [0], [0], [1], [0, 0, 1, 1], [], []>} : vector<16x4xbf16>, vector<4x128xbf16>, vector<16x128xf32> -> vector<16x128xf32>
    %312 = vector.extract_strided_slice %307 {offsets = [1, 0], sizes = [16, 4], strides = [1, 1]} : vector<18x4xbf16> to vector<16x4xbf16>
    %c0_320 = arith.constant 0 : index
    %c1_321 = arith.constant 1 : index
    %c0_322 = arith.constant 0 : index
    %c0_323 = arith.constant 0 : index
    %313 = vector.load %arg12[%c0_320, %c1_321, %c0_322, %c0_323] : memref<3x3x4x128xbf16, #tpu.memory_space<vmem>>, vector<1x1x4x128xbf16>
    %314 = vector.shape_cast %313 : vector<1x1x4x128xbf16> to vector<4x128xbf16>
    %cst_324 = arith.constant dense<0.000000e+00> : vector<16x128xf32>
    %315 = tpu.matmul %312, %314, %cst_324 {dimension_numbers = #tpu.dot_dimension_numbers<[1], [0], [0], [1], [0, 0, 1, 1], [], []>} : vector<16x4xbf16>, vector<4x128xbf16>, vector<16x128xf32> -> vector<16x128xf32>
    %316 = arith.addf %311, %315 : vector<16x128xf32>
    %317 = vector.extract_strided_slice %307 {offsets = [2, 0], sizes = [16, 4], strides = [1, 1]} : vector<18x4xbf16> to vector<16x4xbf16>
    %c0_325 = arith.constant 0 : index
    %c2_326 = arith.constant 2 : index
    %c0_327 = arith.constant 0 : index
    %c0_328 = arith.constant 0 : index
    %318 = vector.load %arg12[%c0_325, %c2_326, %c0_327, %c0_328] : memref<3x3x4x128xbf16, #tpu.memory_space<vmem>>, vector<1x1x4x128xbf16>
    %319 = vector.shape_cast %318 : vector<1x1x4x128xbf16> to vector<4x128xbf16>
    %cst_329 = arith.constant dense<0.000000e+00> : vector<16x128xf32>
    %320 = tpu.matmul %317, %319, %cst_329 {dimension_numbers = #tpu.dot_dimension_numbers<[1], [0], [0], [1], [0, 0, 1, 1], [], []>} : vector<16x4xbf16>, vector<4x128xbf16>, vector<16x128xf32> -> vector<16x128xf32>
    %321 = arith.addf %316, %320 : vector<16x128xf32>
    %c0_330 = arith.constant 0 : index
    %c0_331 = arith.constant 0 : index
    %c0_332 = arith.constant 0 : index
    %c0_333 = arith.constant 0 : index
    %322 = vector.load %arg8[%c0_330, %c0_331, %c0_332, %c0_333] : memref<1x1x18x4xbf16, #tpu.memory_space<vmem>>, vector<1x1x18x4xbf16>
    %323 = vector.shape_cast %322 : vector<1x1x18x4xbf16> to vector<18x4xbf16>
    %324 = vector.extract_strided_slice %323 {offsets = [0, 0], sizes = [16, 4], strides = [1, 1]} : vector<18x4xbf16> to vector<16x4xbf16>
    %c1_334 = arith.constant 1 : index
    %c0_335 = arith.constant 0 : index
    %c0_336 = arith.constant 0 : index
    %c0_337 = arith.constant 0 : index
    %325 = vector.load %arg12[%c1_334, %c0_335, %c0_336, %c0_337] : memref<3x3x4x128xbf16, #tpu.memory_space<vmem>>, vector<1x1x4x128xbf16>
    %326 = vector.shape_cast %325 : vector<1x1x4x128xbf16> to vector<4x128xbf16>
    %cst_338 = arith.constant dense<0.000000e+00> : vector<16x128xf32>
    %327 = tpu.matmul %324, %326, %cst_338 {dimension_numbers = #tpu.dot_dimension_numbers<[1], [0], [0], [1], [0, 0, 1, 1], [], []>} : vector<16x4xbf16>, vector<4x128xbf16>, vector<16x128xf32> -> vector<16x128xf32>
    %328 = arith.addf %321, %327 : vector<16x128xf32>
    %329 = vector.extract_strided_slice %323 {offsets = [1, 0], sizes = [16, 4], strides = [1, 1]} : vector<18x4xbf16> to vector<16x4xbf16>
    %c1_339 = arith.constant 1 : index
    %c1_340 = arith.constant 1 : index
    %c0_341 = arith.constant 0 : index
    %c0_342 = arith.constant 0 : index
    %330 = vector.load %arg12[%c1_339, %c1_340, %c0_341, %c0_342] : memref<3x3x4x128xbf16, #tpu.memory_space<vmem>>, vector<1x1x4x128xbf16>
    %331 = vector.shape_cast %330 : vector<1x1x4x128xbf16> to vector<4x128xbf16>
    %cst_343 = arith.constant dense<0.000000e+00> : vector<16x128xf32>
    %332 = tpu.matmul %329, %331, %cst_343 {dimension_numbers = #tpu.dot_dimension_numbers<[1], [0], [0], [1], [0, 0, 1, 1], [], []>} : vector<16x4xbf16>, vector<4x128xbf16>, vector<16x128xf32> -> vector<16x128xf32>
    %333 = arith.addf %328, %332 : vector<16x128xf32>
    %334 = vector.extract_strided_slice %323 {offsets = [2, 0], sizes = [16, 4], strides = [1, 1]} : vector<18x4xbf16> to vector<16x4xbf16>
    %c1_344 = arith.constant 1 : index
    %c2_345 = arith.constant 2 : index
    %c0_346 = arith.constant 0 : index
    %c0_347 = arith.constant 0 : index
    %335 = vector.load %arg12[%c1_344, %c2_345, %c0_346, %c0_347] : memref<3x3x4x128xbf16, #tpu.memory_space<vmem>>, vector<1x1x4x128xbf16>
    %336 = vector.shape_cast %335 : vector<1x1x4x128xbf16> to vector<4x128xbf16>
    %cst_348 = arith.constant dense<0.000000e+00> : vector<16x128xf32>
    %337 = tpu.matmul %334, %336, %cst_348 {dimension_numbers = #tpu.dot_dimension_numbers<[1], [0], [0], [1], [0, 0, 1, 1], [], []>} : vector<16x4xbf16>, vector<4x128xbf16>, vector<16x128xf32> -> vector<16x128xf32>
    %338 = arith.addf %333, %337 : vector<16x128xf32>
    %c0_349 = arith.constant 0 : index
    %c0_350 = arith.constant 0 : index
    %c0_351 = arith.constant 0 : index
    %c0_352 = arith.constant 0 : index
    %339 = vector.load %arg9[%c0_349, %c0_350, %c0_351, %c0_352] : memref<1x1x18x4xbf16, #tpu.memory_space<vmem>>, vector<1x1x18x4xbf16>
    %340 = vector.shape_cast %339 : vector<1x1x18x4xbf16> to vector<18x4xbf16>
    %341 = vector.extract_strided_slice %340 {offsets = [0, 0], sizes = [16, 4], strides = [1, 1]} : vector<18x4xbf16> to vector<16x4xbf16>
    %c2_353 = arith.constant 2 : index
    %c0_354 = arith.constant 0 : index
    %c0_355 = arith.constant 0 : index
    %c0_356 = arith.constant 0 : index
    %342 = vector.load %arg12[%c2_353, %c0_354, %c0_355, %c0_356] : memref<3x3x4x128xbf16, #tpu.memory_space<vmem>>, vector<1x1x4x128xbf16>
    %343 = vector.shape_cast %342 : vector<1x1x4x128xbf16> to vector<4x128xbf16>
    %cst_357 = arith.constant dense<0.000000e+00> : vector<16x128xf32>
    %344 = tpu.matmul %341, %343, %cst_357 {dimension_numbers = #tpu.dot_dimension_numbers<[1], [0], [0], [1], [0, 0, 1, 1], [], []>} : vector<16x4xbf16>, vector<4x128xbf16>, vector<16x128xf32> -> vector<16x128xf32>
    %345 = arith.addf %338, %344 : vector<16x128xf32>
    %346 = vector.extract_strided_slice %340 {offsets = [1, 0], sizes = [16, 4], strides = [1, 1]} : vector<18x4xbf16> to vector<16x4xbf16>
    %c2_358 = arith.constant 2 : index
    %c1_359 = arith.constant 1 : index
    %c0_360 = arith.constant 0 : index
    %c0_361 = arith.constant 0 : index
    %347 = vector.load %arg12[%c2_358, %c1_359, %c0_360, %c0_361] : memref<3x3x4x128xbf16, #tpu.memory_space<vmem>>, vector<1x1x4x128xbf16>
    %348 = vector.shape_cast %347 : vector<1x1x4x128xbf16> to vector<4x128xbf16>
    %cst_362 = arith.constant dense<0.000000e+00> : vector<16x128xf32>
    %349 = tpu.matmul %346, %348, %cst_362 {dimension_numbers = #tpu.dot_dimension_numbers<[1], [0], [0], [1], [0, 0, 1, 1], [], []>} : vector<16x4xbf16>, vector<4x128xbf16>, vector<16x128xf32> -> vector<16x128xf32>
    %350 = arith.addf %345, %349 : vector<16x128xf32>
    %351 = vector.extract_strided_slice %340 {offsets = [2, 0], sizes = [16, 4], strides = [1, 1]} : vector<18x4xbf16> to vector<16x4xbf16>
    %c2_363 = arith.constant 2 : index
    %c2_364 = arith.constant 2 : index
    %c0_365 = arith.constant 0 : index
    %c0_366 = arith.constant 0 : index
    %352 = vector.load %arg12[%c2_363, %c2_364, %c0_365, %c0_366] : memref<3x3x4x128xbf16, #tpu.memory_space<vmem>>, vector<1x1x4x128xbf16>
    %353 = vector.shape_cast %352 : vector<1x1x4x128xbf16> to vector<4x128xbf16>
    %cst_367 = arith.constant dense<0.000000e+00> : vector<16x128xf32>
    %354 = tpu.matmul %351, %353, %cst_367 {dimension_numbers = #tpu.dot_dimension_numbers<[1], [0], [0], [1], [0, 0, 1, 1], [], []>} : vector<16x4xbf16>, vector<4x128xbf16>, vector<16x128xf32> -> vector<16x128xf32>
    %355 = arith.addf %350, %354 : vector<16x128xf32>
    %356 = vector.broadcast %0 : vector<1x128xf32> to vector<16x128xf32>
    %357 = arith.addf %355, %356 : vector<16x128xf32>
    %cst_368 = arith.constant 0.000000e+00 : f32
    %358 = vector.broadcast %cst_368 : f32 to vector<16x128xf32>
    %359 = arith.cmpf oge, %357, %358 : vector<16x128xf32>
    %cst_369 = arith.constant 2.000000e-01 : f32
    %360 = vector.broadcast %cst_369 : f32 to vector<16x128xf32>
    %361 = arith.mulf %360, %357 : vector<16x128xf32>
    %362 = arith.select %359, %357, %361 : vector<16x128xi1>, vector<16x128xf32>
    %363 = arith.truncf %362 : vector<16x128xf32> to vector<16x128xbf16>
    %c0_370 = arith.constant 0 : index
    %c5 = arith.constant 5 : index
    %c0_371 = arith.constant 0 : index
    %c0_372 = arith.constant 0 : index
    %364 = vector.load %arg14[%c0_370, %c5, %c0_371, %c0_372] : memref<1x8x16x128xbf16, #tpu.memory_space<vmem>>, vector<1x1x16x128xbf16>
    %365 = vector.shape_cast %364 : vector<1x1x16x128xbf16> to vector<16x128xbf16>
    %366 = vector.shape_cast %363 : vector<16x128xbf16> to vector<1x1x16x128xbf16>
    tpu.vector_store %arg14[%c0_370, %c5, %c0_371, %c0_372], %366 {strides = array<i32>} : memref<1x8x16x128xbf16, #tpu.memory_space<vmem>>, vector<1x1x16x128xbf16>,
    %c0_373 = arith.constant 0 : index
    %c0_374 = arith.constant 0 : index
    %c0_375 = arith.constant 0 : index
    %c0_376 = arith.constant 0 : index
    %367 = vector.load %arg8[%c0_373, %c0_374, %c0_375, %c0_376] : memref<1x1x18x4xbf16, #tpu.memory_space<vmem>>, vector<1x1x18x4xbf16>
    %368 = vector.shape_cast %367 : vector<1x1x18x4xbf16> to vector<18x4xbf16>
    %369 = vector.extract_strided_slice %368 {offsets = [0, 0], sizes = [16, 4], strides = [1, 1]} : vector<18x4xbf16> to vector<16x4xbf16>
    %c0_377 = arith.constant 0 : index
    %c0_378 = arith.constant 0 : index
    %c0_379 = arith.constant 0 : index
    %c0_380 = arith.constant 0 : index
    %370 = vector.load %arg12[%c0_377, %c0_378, %c0_379, %c0_380] : memref<3x3x4x128xbf16, #tpu.memory_space<vmem>>, vector<1x1x4x128xbf16>
    %371 = vector.shape_cast %370 : vector<1x1x4x128xbf16> to vector<4x128xbf16>
    %cst_381 = arith.constant dense<0.000000e+00> : vector<16x128xf32>
    %372 = tpu.matmul %369, %371, %cst_381 {dimension_numbers = #tpu.dot_dimension_numbers<[1], [0], [0], [1], [0, 0, 1, 1], [], []>} : vector<16x4xbf16>, vector<4x128xbf16>, vector<16x128xf32> -> vector<16x128xf32>
    %373 = vector.extract_strided_slice %368 {offsets = [1, 0], sizes = [16, 4], strides = [1, 1]} : vector<18x4xbf16> to vector<16x4xbf16>
    %c0_382 = arith.constant 0 : index
    %c1_383 = arith.constant 1 : index
    %c0_384 = arith.constant 0 : index
    %c0_385 = arith.constant 0 : index
    %374 = vector.load %arg12[%c0_382, %c1_383, %c0_384, %c0_385] : memref<3x3x4x128xbf16, #tpu.memory_space<vmem>>, vector<1x1x4x128xbf16>
    %375 = vector.shape_cast %374 : vector<1x1x4x128xbf16> to vector<4x128xbf16>
    %cst_386 = arith.constant dense<0.000000e+00> : vector<16x128xf32>
    %376 = tpu.matmul %373, %375, %cst_386 {dimension_numbers = #tpu.dot_dimension_numbers<[1], [0], [0], [1], [0, 0, 1, 1], [], []>} : vector<16x4xbf16>, vector<4x128xbf16>, vector<16x128xf32> -> vector<16x128xf32>
    %377 = arith.addf %372, %376 : vector<16x128xf32>
    %378 = vector.extract_strided_slice %368 {offsets = [2, 0], sizes = [16, 4], strides = [1, 1]} : vector<18x4xbf16> to vector<16x4xbf16>
    %c0_387 = arith.constant 0 : index
    %c2_388 = arith.constant 2 : index
    %c0_389 = arith.constant 0 : index
    %c0_390 = arith.constant 0 : index
    %379 = vector.load %arg12[%c0_387, %c2_388, %c0_389, %c0_390] : memref<3x3x4x128xbf16, #tpu.memory_space<vmem>>, vector<1x1x4x128xbf16>
    %380 = vector.shape_cast %379 : vector<1x1x4x128xbf16> to vector<4x128xbf16>
    %cst_391 = arith.constant dense<0.000000e+00> : vector<16x128xf32>
    %381 = tpu.matmul %378, %380, %cst_391 {dimension_numbers = #tpu.dot_dimension_numbers<[1], [0], [0], [1], [0, 0, 1, 1], [], []>} : vector<16x4xbf16>, vector<4x128xbf16>, vector<16x128xf32> -> vector<16x128xf32>
    %382 = arith.addf %377, %381 : vector<16x128xf32>
    %c0_392 = arith.constant 0 : index
    %c0_393 = arith.constant 0 : index
    %c0_394 = arith.constant 0 : index
    %c0_395 = arith.constant 0 : index
    %383 = vector.load %arg9[%c0_392, %c0_393, %c0_394, %c0_395] : memref<1x1x18x4xbf16, #tpu.memory_space<vmem>>, vector<1x1x18x4xbf16>
    %384 = vector.shape_cast %383 : vector<1x1x18x4xbf16> to vector<18x4xbf16>
    %385 = vector.extract_strided_slice %384 {offsets = [0, 0], sizes = [16, 4], strides = [1, 1]} : vector<18x4xbf16> to vector<16x4xbf16>
    %c1_396 = arith.constant 1 : index
    %c0_397 = arith.constant 0 : index
    %c0_398 = arith.constant 0 : index
    %c0_399 = arith.constant 0 : index
    %386 = vector.load %arg12[%c1_396, %c0_397, %c0_398, %c0_399] : memref<3x3x4x128xbf16, #tpu.memory_space<vmem>>, vector<1x1x4x128xbf16>
    %387 = vector.shape_cast %386 : vector<1x1x4x128xbf16> to vector<4x128xbf16>
    %cst_400 = arith.constant dense<0.000000e+00> : vector<16x128xf32>
    %388 = tpu.matmul %385, %387, %cst_400 {dimension_numbers = #tpu.dot_dimension_numbers<[1], [0], [0], [1], [0, 0, 1, 1], [], []>} : vector<16x4xbf16>, vector<4x128xbf16>, vector<16x128xf32> -> vector<16x128xf32>
    %389 = arith.addf %382, %388 : vector<16x128xf32>
    %390 = vector.extract_strided_slice %384 {offsets = [1, 0], sizes = [16, 4], strides = [1, 1]} : vector<18x4xbf16> to vector<16x4xbf16>
    %c1_401 = arith.constant 1 : index
    %c1_402 = arith.constant 1 : index
    %c0_403 = arith.constant 0 : index
    %c0_404 = arith.constant 0 : index
    %391 = vector.load %arg12[%c1_401, %c1_402, %c0_403, %c0_404] : memref<3x3x4x128xbf16, #tpu.memory_space<vmem>>, vector<1x1x4x128xbf16>
    %392 = vector.shape_cast %391 : vector<1x1x4x128xbf16> to vector<4x128xbf16>
    %cst_405 = arith.constant dense<0.000000e+00> : vector<16x128xf32>
    %393 = tpu.matmul %390, %392, %cst_405 {dimension_numbers = #tpu.dot_dimension_numbers<[1], [0], [0], [1], [0, 0, 1, 1], [], []>} : vector<16x4xbf16>, vector<4x128xbf16>, vector<16x128xf32> -> vector<16x128xf32>
    %394 = arith.addf %389, %393 : vector<16x128xf32>
    %395 = vector.extract_strided_slice %384 {offsets = [2, 0], sizes = [16, 4], strides = [1, 1]} : vector<18x4xbf16> to vector<16x4xbf16>
    %c1_406 = arith.constant 1 : index
    %c2_407 = arith.constant 2 : index
    %c0_408 = arith.constant 0 : index
    %c0_409 = arith.constant 0 : index
    %396 = vector.load %arg12[%c1_406, %c2_407, %c0_408, %c0_409] : memref<3x3x4x128xbf16, #tpu.memory_space<vmem>>, vector<1x1x4x128xbf16>
    %397 = vector.shape_cast %396 : vector<1x1x4x128xbf16> to vector<4x128xbf16>
    %cst_410 = arith.constant dense<0.000000e+00> : vector<16x128xf32>
    %398 = tpu.matmul %395, %397, %cst_410 {dimension_numbers = #tpu.dot_dimension_numbers<[1], [0], [0], [1], [0, 0, 1, 1], [], []>} : vector<16x4xbf16>, vector<4x128xbf16>, vector<16x128xf32> -> vector<16x128xf32>
    %399 = arith.addf %394, %398 : vector<16x128xf32>
    %c0_411 = arith.constant 0 : index
    %c0_412 = arith.constant 0 : index
    %c0_413 = arith.constant 0 : index
    %c0_414 = arith.constant 0 : index
    %400 = vector.load %arg10[%c0_411, %c0_412, %c0_413, %c0_414] : memref<1x1x18x4xbf16, #tpu.memory_space<vmem>>, vector<1x1x18x4xbf16>
    %401 = vector.shape_cast %400 : vector<1x1x18x4xbf16> to vector<18x4xbf16>
    %402 = vector.extract_strided_slice %401 {offsets = [0, 0], sizes = [16, 4], strides = [1, 1]} : vector<18x4xbf16> to vector<16x4xbf16>
    %c2_415 = arith.constant 2 : index
    %c0_416 = arith.constant 0 : index
    %c0_417 = arith.constant 0 : index
    %c0_418 = arith.constant 0 : index
    %403 = vector.load %arg12[%c2_415, %c0_416, %c0_417, %c0_418] : memref<3x3x4x128xbf16, #tpu.memory_space<vmem>>, vector<1x1x4x128xbf16>
    %404 = vector.shape_cast %403 : vector<1x1x4x128xbf16> to vector<4x128xbf16>
    %cst_419 = arith.constant dense<0.000000e+00> : vector<16x128xf32>
    %405 = tpu.matmul %402, %404, %cst_419 {dimension_numbers = #tpu.dot_dimension_numbers<[1], [0], [0], [1], [0, 0, 1, 1], [], []>} : vector<16x4xbf16>, vector<4x128xbf16>, vector<16x128xf32> -> vector<16x128xf32>
    %406 = arith.addf %399, %405 : vector<16x128xf32>
    %407 = vector.extract_strided_slice %401 {offsets = [1, 0], sizes = [16, 4], strides = [1, 1]} : vector<18x4xbf16> to vector<16x4xbf16>
    %c2_420 = arith.constant 2 : index
    %c1_421 = arith.constant 1 : index
    %c0_422 = arith.constant 0 : index
    %c0_423 = arith.constant 0 : index
    %408 = vector.load %arg12[%c2_420, %c1_421, %c0_422, %c0_423] : memref<3x3x4x128xbf16, #tpu.memory_space<vmem>>, vector<1x1x4x128xbf16>
    %409 = vector.shape_cast %408 : vector<1x1x4x128xbf16> to vector<4x128xbf16>
    %cst_424 = arith.constant dense<0.000000e+00> : vector<16x128xf32>
    %410 = tpu.matmul %407, %409, %cst_424 {dimension_numbers = #tpu.dot_dimension_numbers<[1], [0], [0], [1], [0, 0, 1, 1], [], []>} : vector<16x4xbf16>, vector<4x128xbf16>, vector<16x128xf32> -> vector<16x128xf32>
    %411 = arith.addf %406, %410 : vector<16x128xf32>
    %412 = vector.extract_strided_slice %401 {offsets = [2, 0], sizes = [16, 4], strides = [1, 1]} : vector<18x4xbf16> to vector<16x4xbf16>
    %c2_425 = arith.constant 2 : index
    %c2_426 = arith.constant 2 : index
    %c0_427 = arith.constant 0 : index
    %c0_428 = arith.constant 0 : index
    %413 = vector.load %arg12[%c2_425, %c2_426, %c0_427, %c0_428] : memref<3x3x4x128xbf16, #tpu.memory_space<vmem>>, vector<1x1x4x128xbf16>
    %414 = vector.shape_cast %413 : vector<1x1x4x128xbf16> to vector<4x128xbf16>
    %cst_429 = arith.constant dense<0.000000e+00> : vector<16x128xf32>
    %415 = tpu.matmul %412, %414, %cst_429 {dimension_numbers = #tpu.dot_dimension_numbers<[1], [0], [0], [1], [0, 0, 1, 1], [], []>} : vector<16x4xbf16>, vector<4x128xbf16>, vector<16x128xf32> -> vector<16x128xf32>
    %416 = arith.addf %411, %415 : vector<16x128xf32>
    %417 = vector.broadcast %0 : vector<1x128xf32> to vector<16x128xf32>
    %418 = arith.addf %416, %417 : vector<16x128xf32>
    %cst_430 = arith.constant 0.000000e+00 : f32
    %419 = vector.broadcast %cst_430 : f32 to vector<16x128xf32>
    %420 = arith.cmpf oge, %418, %419 : vector<16x128xf32>
    %cst_431 = arith.constant 2.000000e-01 : f32
    %421 = vector.broadcast %cst_431 : f32 to vector<16x128xf32>
    %422 = arith.mulf %421, %418 : vector<16x128xf32>
    %423 = arith.select %420, %418, %422 : vector<16x128xi1>, vector<16x128xf32>
    %424 = arith.truncf %423 : vector<16x128xf32> to vector<16x128xbf16>
    %c0_432 = arith.constant 0 : index
    %c6 = arith.constant 6 : index
    %c0_433 = arith.constant 0 : index
    %c0_434 = arith.constant 0 : index
    %425 = vector.load %arg14[%c0_432, %c6, %c0_433, %c0_434] : memref<1x8x16x128xbf16, #tpu.memory_space<vmem>>, vector<1x1x16x128xbf16>
    %426 = vector.shape_cast %425 : vector<1x1x16x128xbf16> to vector<16x128xbf16>
    %427 = vector.shape_cast %424 : vector<16x128xbf16> to vector<1x1x16x128xbf16>
    tpu.vector_store %arg14[%c0_432, %c6, %c0_433, %c0_434], %427 {strides = array<i32>} : memref<1x8x16x128xbf16, #tpu.memory_space<vmem>>, vector<1x1x16x128xbf16>,
    %c0_435 = arith.constant 0 : index
    %c0_436 = arith.constant 0 : index
    %c0_437 = arith.constant 0 : index
    %c0_438 = arith.constant 0 : index
    %428 = vector.load %arg9[%c0_435, %c0_436, %c0_437, %c0_438] : memref<1x1x18x4xbf16, #tpu.memory_space<vmem>>, vector<1x1x18x4xbf16>
    %429 = vector.shape_cast %428 : vector<1x1x18x4xbf16> to vector<18x4xbf16>
    %430 = vector.extract_strided_slice %429 {offsets = [0, 0], sizes = [16, 4], strides = [1, 1]} : vector<18x4xbf16> to vector<16x4xbf16>
    %c0_439 = arith.constant 0 : index
    %c0_440 = arith.constant 0 : index
    %c0_441 = arith.constant 0 : index
    %c0_442 = arith.constant 0 : index
    %431 = vector.load %arg12[%c0_439, %c0_440, %c0_441, %c0_442] : memref<3x3x4x128xbf16, #tpu.memory_space<vmem>>, vector<1x1x4x128xbf16>
    %432 = vector.shape_cast %431 : vector<1x1x4x128xbf16> to vector<4x128xbf16>
    %cst_443 = arith.constant dense<0.000000e+00> : vector<16x128xf32>
    %433 = tpu.matmul %430, %432, %cst_443 {dimension_numbers = #tpu.dot_dimension_numbers<[1], [0], [0], [1], [0, 0, 1, 1], [], []>} : vector<16x4xbf16>, vector<4x128xbf16>, vector<16x128xf32> -> vector<16x128xf32>
    %434 = vector.extract_strided_slice %429 {offsets = [1, 0], sizes = [16, 4], strides = [1, 1]} : vector<18x4xbf16> to vector<16x4xbf16>
    %c0_444 = arith.constant 0 : index
    %c1_445 = arith.constant 1 : index
    %c0_446 = arith.constant 0 : index
    %c0_447 = arith.constant 0 : index
    %435 = vector.load %arg12[%c0_444, %c1_445, %c0_446, %c0_447] : memref<3x3x4x128xbf16, #tpu.memory_space<vmem>>, vector<1x1x4x128xbf16>
    %436 = vector.shape_cast %435 : vector<1x1x4x128xbf16> to vector<4x128xbf16>
    %cst_448 = arith.constant dense<0.000000e+00> : vector<16x128xf32>
    %437 = tpu.matmul %434, %436, %cst_448 {dimension_numbers = #tpu.dot_dimension_numbers<[1], [0], [0], [1], [0, 0, 1, 1], [], []>} : vector<16x4xbf16>, vector<4x128xbf16>, vector<16x128xf32> -> vector<16x128xf32>
    %438 = arith.addf %433, %437 : vector<16x128xf32>
    %439 = vector.extract_strided_slice %429 {offsets = [2, 0], sizes = [16, 4], strides = [1, 1]} : vector<18x4xbf16> to vector<16x4xbf16>
    %c0_449 = arith.constant 0 : index
    %c2_450 = arith.constant 2 : index
    %c0_451 = arith.constant 0 : index
    %c0_452 = arith.constant 0 : index
    %440 = vector.load %arg12[%c0_449, %c2_450, %c0_451, %c0_452] : memref<3x3x4x128xbf16, #tpu.memory_space<vmem>>, vector<1x1x4x128xbf16>
    %441 = vector.shape_cast %440 : vector<1x1x4x128xbf16> to vector<4x128xbf16>
    %cst_453 = arith.constant dense<0.000000e+00> : vector<16x128xf32>
    %442 = tpu.matmul %439, %441, %cst_453 {dimension_numbers = #tpu.dot_dimension_numbers<[1], [0], [0], [1], [0, 0, 1, 1], [], []>} : vector<16x4xbf16>, vector<4x128xbf16>, vector<16x128xf32> -> vector<16x128xf32>
    %443 = arith.addf %438, %442 : vector<16x128xf32>
    %c0_454 = arith.constant 0 : index
    %c0_455 = arith.constant 0 : index
    %c0_456 = arith.constant 0 : index
    %c0_457 = arith.constant 0 : index
    %444 = vector.load %arg10[%c0_454, %c0_455, %c0_456, %c0_457] : memref<1x1x18x4xbf16, #tpu.memory_space<vmem>>, vector<1x1x18x4xbf16>
    %445 = vector.shape_cast %444 : vector<1x1x18x4xbf16> to vector<18x4xbf16>
    %446 = vector.extract_strided_slice %445 {offsets = [0, 0], sizes = [16, 4], strides = [1, 1]} : vector<18x4xbf16> to vector<16x4xbf16>
    %c1_458 = arith.constant 1 : index
    %c0_459 = arith.constant 0 : index
    %c0_460 = arith.constant 0 : index
    %c0_461 = arith.constant 0 : index
    %447 = vector.load %arg12[%c1_458, %c0_459, %c0_460, %c0_461] : memref<3x3x4x128xbf16, #tpu.memory_space<vmem>>, vector<1x1x4x128xbf16>
    %448 = vector.shape_cast %447 : vector<1x1x4x128xbf16> to vector<4x128xbf16>
    %cst_462 = arith.constant dense<0.000000e+00> : vector<16x128xf32>
    %449 = tpu.matmul %446, %448, %cst_462 {dimension_numbers = #tpu.dot_dimension_numbers<[1], [0], [0], [1], [0, 0, 1, 1], [], []>} : vector<16x4xbf16>, vector<4x128xbf16>, vector<16x128xf32> -> vector<16x128xf32>
    %450 = arith.addf %443, %449 : vector<16x128xf32>
    %451 = vector.extract_strided_slice %445 {offsets = [1, 0], sizes = [16, 4], strides = [1, 1]} : vector<18x4xbf16> to vector<16x4xbf16>
    %c1_463 = arith.constant 1 : index
    %c1_464 = arith.constant 1 : index
    %c0_465 = arith.constant 0 : index
    %c0_466 = arith.constant 0 : index
    %452 = vector.load %arg12[%c1_463, %c1_464, %c0_465, %c0_466] : memref<3x3x4x128xbf16, #tpu.memory_space<vmem>>, vector<1x1x4x128xbf16>
    %453 = vector.shape_cast %452 : vector<1x1x4x128xbf16> to vector<4x128xbf16>
    %cst_467 = arith.constant dense<0.000000e+00> : vector<16x128xf32>
    %454 = tpu.matmul %451, %453, %cst_467 {dimension_numbers = #tpu.dot_dimension_numbers<[1], [0], [0], [1], [0, 0, 1, 1], [], []>} : vector<16x4xbf16>, vector<4x128xbf16>, vector<16x128xf32> -> vector<16x128xf32>
    %455 = arith.addf %450, %454 : vector<16x128xf32>
    %456 = vector.extract_strided_slice %445 {offsets = [2, 0], sizes = [16, 4], strides = [1, 1]} : vector<18x4xbf16> to vector<16x4xbf16>
    %c1_468 = arith.constant 1 : index
    %c2_469 = arith.constant 2 : index
    %c0_470 = arith.constant 0 : index
    %c0_471 = arith.constant 0 : index
    %457 = vector.load %arg12[%c1_468, %c2_469, %c0_470, %c0_471] : memref<3x3x4x128xbf16, #tpu.memory_space<vmem>>, vector<1x1x4x128xbf16>
    %458 = vector.shape_cast %457 : vector<1x1x4x128xbf16> to vector<4x128xbf16>
    %cst_472 = arith.constant dense<0.000000e+00> : vector<16x128xf32>
    %459 = tpu.matmul %456, %458, %cst_472 {dimension_numbers = #tpu.dot_dimension_numbers<[1], [0], [0], [1], [0, 0, 1, 1], [], []>} : vector<16x4xbf16>, vector<4x128xbf16>, vector<16x128xf32> -> vector<16x128xf32>
    %460 = arith.addf %455, %459 : vector<16x128xf32>
    %c0_473 = arith.constant 0 : index
    %c0_474 = arith.constant 0 : index
    %c0_475 = arith.constant 0 : index
    %c0_476 = arith.constant 0 : index
    %461 = vector.load %arg11[%c0_473, %c0_474, %c0_475, %c0_476] : memref<1x1x18x4xbf16, #tpu.memory_space<vmem>>, vector<1x1x18x4xbf16>
    %462 = vector.shape_cast %461 : vector<1x1x18x4xbf16> to vector<18x4xbf16>
    %463 = vector.extract_strided_slice %462 {offsets = [0, 0], sizes = [16, 4], strides = [1, 1]} : vector<18x4xbf16> to vector<16x4xbf16>
    %c2_477 = arith.constant 2 : index
    %c0_478 = arith.constant 0 : index
    %c0_479 = arith.constant 0 : index
    %c0_480 = arith.constant 0 : index
    %464 = vector.load %arg12[%c2_477, %c0_478, %c0_479, %c0_480] : memref<3x3x4x128xbf16, #tpu.memory_space<vmem>>, vector<1x1x4x128xbf16>
    %465 = vector.shape_cast %464 : vector<1x1x4x128xbf16> to vector<4x128xbf16>
    %cst_481 = arith.constant dense<0.000000e+00> : vector<16x128xf32>
    %466 = tpu.matmul %463, %465, %cst_481 {dimension_numbers = #tpu.dot_dimension_numbers<[1], [0], [0], [1], [0, 0, 1, 1], [], []>} : vector<16x4xbf16>, vector<4x128xbf16>, vector<16x128xf32> -> vector<16x128xf32>
    %467 = arith.addf %460, %466 : vector<16x128xf32>
    %468 = vector.extract_strided_slice %462 {offsets = [1, 0], sizes = [16, 4], strides = [1, 1]} : vector<18x4xbf16> to vector<16x4xbf16>
    %c2_482 = arith.constant 2 : index
    %c1_483 = arith.constant 1 : index
    %c0_484 = arith.constant 0 : index
    %c0_485 = arith.constant 0 : index
    %469 = vector.load %arg12[%c2_482, %c1_483, %c0_484, %c0_485] : memref<3x3x4x128xbf16, #tpu.memory_space<vmem>>, vector<1x1x4x128xbf16>
    %470 = vector.shape_cast %469 : vector<1x1x4x128xbf16> to vector<4x128xbf16>
    %cst_486 = arith.constant dense<0.000000e+00> : vector<16x128xf32>
    %471 = tpu.matmul %468, %470, %cst_486 {dimension_numbers = #tpu.dot_dimension_numbers<[1], [0], [0], [1], [0, 0, 1, 1], [], []>} : vector<16x4xbf16>, vector<4x128xbf16>, vector<16x128xf32> -> vector<16x128xf32>
    %472 = arith.addf %467, %471 : vector<16x128xf32>
    %473 = vector.extract_strided_slice %462 {offsets = [2, 0], sizes = [16, 4], strides = [1, 1]} : vector<18x4xbf16> to vector<16x4xbf16>
    %c2_487 = arith.constant 2 : index
    %c2_488 = arith.constant 2 : index
    %c0_489 = arith.constant 0 : index
    %c0_490 = arith.constant 0 : index
    %474 = vector.load %arg12[%c2_487, %c2_488, %c0_489, %c0_490] : memref<3x3x4x128xbf16, #tpu.memory_space<vmem>>, vector<1x1x4x128xbf16>
    %475 = vector.shape_cast %474 : vector<1x1x4x128xbf16> to vector<4x128xbf16>
    %cst_491 = arith.constant dense<0.000000e+00> : vector<16x128xf32>
    %476 = tpu.matmul %473, %475, %cst_491 {dimension_numbers = #tpu.dot_dimension_numbers<[1], [0], [0], [1], [0, 0, 1, 1], [], []>} : vector<16x4xbf16>, vector<4x128xbf16>, vector<16x128xf32> -> vector<16x128xf32>
    %477 = arith.addf %472, %476 : vector<16x128xf32>
    %478 = vector.broadcast %0 : vector<1x128xf32> to vector<16x128xf32>
    %479 = arith.addf %477, %478 : vector<16x128xf32>
    %cst_492 = arith.constant 0.000000e+00 : f32
    %480 = vector.broadcast %cst_492 : f32 to vector<16x128xf32>
    %481 = arith.cmpf oge, %479, %480 : vector<16x128xf32>
    %cst_493 = arith.constant 2.000000e-01 : f32
    %482 = vector.broadcast %cst_493 : f32 to vector<16x128xf32>
    %483 = arith.mulf %482, %479 : vector<16x128xf32>
    %484 = arith.select %481, %479, %483 : vector<16x128xi1>, vector<16x128xf32>
    %485 = arith.truncf %484 : vector<16x128xf32> to vector<16x128xbf16>
    %c0_494 = arith.constant 0 : index
    %c7 = arith.constant 7 : index
    %c0_495 = arith.constant 0 : index
    %c0_496 = arith.constant 0 : index
    %486 = vector.load %arg14[%c0_494, %c7, %c0_495, %c0_496] : memref<1x8x16x128xbf16, #tpu.memory_space<vmem>>, vector<1x1x16x128xbf16>
    %487 = vector.shape_cast %486 : vector<1x1x16x128xbf16> to vector<16x128xbf16>
    %488 = vector.shape_cast %485 : vector<16x128xbf16> to vector<1x1x16x128xbf16>
    tpu.vector_store %arg14[%c0_494, %c7, %c0_495, %c0_496], %488 {strides = array<i32>} : memref<1x8x16x128xbf16, #tpu.memory_space<vmem>>, vector<1x1x16x128xbf16>,
    return
  }
  func.func @transform_0(%arg0: i32, %arg1: i32) -> (i32, i32, i32, i32) {
    %c8_i32 = arith.constant 8 : i32
    %0 = arith.muli %arg1, %c8_i32 : i32
    %c0_i32 = arith.constant 0 : i32
    %1 = arith.addi %0, %c0_i32 : i32
    %c0_i32_0 = arith.constant 0 : i32
    %c0_i32_1 = arith.constant 0 : i32
    %c0_i32_2 = arith.constant 0 : i32
    return %arg0, %1, %c0_i32_0, %c0_i32_1 : i32, i32, i32, i32
  }
  func.func @transform_1(%arg0: i32, %arg1: i32) -> (i32, i32, i32, i32) {
    %c8_i32 = arith.constant 8 : i32
    %0 = arith.muli %arg1, %c8_i32 : i32
    %c1_i32 = arith.constant 1 : i32
    %1 = arith.addi %0, %c1_i32 : i32
    %c0_i32 = arith.constant 0 : i32
    %c0_i32_0 = arith.constant 0 : i32
    %c0_i32_1 = arith.constant 0 : i32
    return %arg0, %1, %c0_i32, %c0_i32_0 : i32, i32, i32, i32
  }
  func.func @transform_2(%arg0: i32, %arg1: i32) -> (i32, i32, i32, i32) {
    %c8_i32 = arith.constant 8 : i32
    %0 = arith.muli %arg1, %c8_i32 : i32
    %c2_i32 = arith.constant 2 : i32
    %1 = arith.addi %0, %c2_i32 : i32
    %c0_i32 = arith.constant 0 : i32
    %c0_i32_0 = arith.constant 0 : i32
    %c0_i32_1 = arith.constant 0 : i32
    return %arg0, %1, %c0_i32, %c0_i32_0 : i32, i32, i32, i32
  }
  func.func @transform_3(%arg0: i32, %arg1: i32) -> (i32, i32, i32, i32) {
    %c8_i32 = arith.constant 8 : i32
    %0 = arith.muli %arg1, %c8_i32 : i32
    %c3_i32 = arith.constant 3 : i32
    %1 = arith.addi %0, %c3_i32 : i32
    %c0_i32 = arith.constant 0 : i32
    %c0_i32_0 = arith.constant 0 : i32
    %c0_i32_1 = arith.constant 0 : i32
    return %arg0, %1, %c0_i32, %c0_i32_0 : i32, i32, i32, i32
  }
  func.func @transform_4(%arg0: i32, %arg1: i32) -> (i32, i32, i32, i32) {
    %c8_i32 = arith.constant 8 : i32
    %0 = arith.muli %arg1, %c8_i32 : i32
    %c4_i32 = arith.constant 4 : i32
    %1 = arith.addi %0, %c4_i32 : i32
    %c0_i32 = arith.constant 0 : i32
    %c0_i32_0 = arith.constant 0 : i32
    %c0_i32_1 = arith.constant 0 : i32
    return %arg0, %1, %c0_i32, %c0_i32_0 : i32, i32, i32, i32
  }
  func.func @transform_5(%arg0: i32, %arg1: i32) -> (i32, i32, i32, i32) {
    %c8_i32 = arith.constant 8 : i32
    %0 = arith.muli %arg1, %c8_i32 : i32
    %c5_i32 = arith.constant 5 : i32
    %1 = arith.addi %0, %c5_i32 : i32
    %c0_i32 = arith.constant 0 : i32
    %c0_i32_0 = arith.constant 0 : i32
    %c0_i32_1 = arith.constant 0 : i32
    return %arg0, %1, %c0_i32, %c0_i32_0 : i32, i32, i32, i32
  }
  func.func @transform_6(%arg0: i32, %arg1: i32) -> (i32, i32, i32, i32) {
    %c8_i32 = arith.constant 8 : i32
    %0 = arith.muli %arg1, %c8_i32 : i32
    %c6_i32 = arith.constant 6 : i32
    %1 = arith.addi %0, %c6_i32 : i32
    %c0_i32 = arith.constant 0 : i32
    %c0_i32_0 = arith.constant 0 : i32
    %c0_i32_1 = arith.constant 0 : i32
    return %arg0, %1, %c0_i32, %c0_i32_0 : i32, i32, i32, i32
  }
  func.func @transform_7(%arg0: i32, %arg1: i32) -> (i32, i32, i32, i32) {
    %c8_i32 = arith.constant 8 : i32
    %0 = arith.muli %arg1, %c8_i32 : i32
    %c7_i32 = arith.constant 7 : i32
    %1 = arith.addi %0, %c7_i32 : i32
    %c0_i32 = arith.constant 0 : i32
    %c0_i32_0 = arith.constant 0 : i32
    %c0_i32_1 = arith.constant 0 : i32
    return %arg0, %1, %c0_i32, %c0_i32_0 : i32, i32, i32, i32
  }
  func.func @transform_8(%arg0: i32, %arg1: i32) -> (i32, i32, i32, i32) {
    %c8_i32 = arith.constant 8 : i32
    %0 = arith.muli %arg1, %c8_i32 : i32
    %c8_i32_0 = arith.constant 8 : i32
    %1 = arith.addi %0, %c8_i32_0 : i32
    %c0_i32 = arith.constant 0 : i32
    %c0_i32_1 = arith.constant 0 : i32
    %c0_i32_2 = arith.constant 0 : i32
    return %arg0, %1, %c0_i32, %c0_i32_1 : i32, i32, i32, i32
  }
  func.func @transform_9(%arg0: i32, %arg1: i32) -> (i32, i32, i32, i32) {
    %c8_i32 = arith.constant 8 : i32
    %0 = arith.muli %arg1, %c8_i32 : i32
    %c9_i32 = arith.constant 9 : i32
    %1 = arith.addi %0, %c9_i32 : i32
    %c0_i32 = arith.constant 0 : i32
    %c0_i32_0 = arith.constant 0 : i32
    %c0_i32_1 = arith.constant 0 : i32
    return %arg0, %1, %c0_i32, %c0_i32_0 : i32, i32, i32, i32
  }
  func.func @transform_10(%arg0: i32, %arg1: i32) -> (i32, i32, i32, i32) {
    %c0_i32 = arith.constant 0 : i32
    %c0_i32_0 = arith.constant 0 : i32
    %c0_i32_1 = arith.constant 0 : i32
    %c0_i32_2 = arith.constant 0 : i32
    %c0_i32_3 = arith.constant 0 : i32
    return %c0_i32, %c0_i32_0, %c0_i32_1, %c0_i32_2 : i32, i32, i32, i32
  }
  func.func @transform_11(%arg0: i32, %arg1: i32) -> (i32, i32) {
    %c0_i32 = arith.constant 0 : i32
    %c0_i32_0 = arith.constant 0 : i32
    %c0_i32_1 = arith.constant 0 : i32
    return %c0_i32, %c0_i32_0 : i32, i32
  }
  func.func @transform_12(%arg0: i32, %arg1: i32) -> (i32, i32, i32, i32) {
    %c0_i32 = arith.constant 0 : i32
    %c0_i32_0 = arith.constant 0 : i32
    %c0_i32_1 = arith.constant 0 : i32
    return %arg0, %arg1, %c0_i32, %c0_i32_0 : i32, i32, i32, i32
  }
}

</mosaic_0001>

<bundles_post_ra>
// kernel: tpu_custom_call.1
= control target key start
LH: loop header
LB: loop body
LE: loop exit
PB: predicated region body
PF: predicated region fallthrough
CT: control target
= control target key end

     0   :  { %s4980_s0 = inlined_call_operand.vmem [shape: bf16[2,18,18,4], index: 0, kind: input, shape index: {}]   ;;  %s4981_s1 = inlined_call_operand.vmem [shape: bf16[2,18,18,4], index: 1, kind: input, shape index: {}]   ;;  %s4982_s2 = inlined_call_operand.vmem [shape: bf16[2,18,18,4], index: 2, kind: input, shape index: {}]   ;;  %s4983_s3 = inlined_call_operand.vmem [shape: bf16[2,18,18,4], index: 3, kind: input, shape index: {}]   ;;  %s4984_s4 = inlined_call_operand.vmem [shape: bf16[2,18,18,4], index: 4, kind: input, shape index: {}]   ;;  %s4985_s5 = inlined_call_operand.vmem [shape: bf16[2,18,18,4], index: 5, kind: input, shape index: {}]   ;;  %s4986_s6 = inlined_call_operand.vmem [shape: bf16[2,18,18,4], index: 6, kind: input, shape index: {}]   ;;  %s4987_s7 = inlined_call_operand.vmem [shape: bf16[2,18,18,4], index: 7, kind: input, shape index: {}]   ;;  %s4988_s8 = inlined_call_operand.vmem [shape: bf16[2,18,18,4], index: 8, kind: input, shape index: {}]   ;;  %s4989_s9 = inlined_call_operand.vmem [shape: bf16[2,18,18,4], index: 9, kind: input, shape index: {}]   ;;  %s4990_s10 = inlined_call_operand.vmem [shape: bf16[3,3,4,128], index: 10, kind: input, shape index: {}]   ;;  %s4991_s11 = inlined_call_operand.vmem [shape: f32[1,128], index: 11, kind: input, shape index: {}]   ;;  %s4992_s12 = inlined_call_operand.hbm [shape: bf16[2,16,16,128], index: 12, kind: output, shape index: {}]  }
   0x1   :  { %5005 = sst [smem:[#allocation15_spill]] %s4992_s12 }
   0x2   :  { %17 = vsyncpa [#allocation3], 0 }
   0x3   :  { %19 = vsyncpa [#allocation3 + $0x1], 0  ;;  %s4137_s21 = smov 0   ;;  %s4139_s22 = smov 0  }
   0x4   :  { %s4141_s23 = smov 0   ;;  %s4143_s24 = smov 0  }
   0x5   :  { %s4145_s25 = smov 0   ;;  %s4147_s26 = smov 0  }
   0x6   :  { %s4149_s27 = smov 0   ;;  %s4151_s28 = smov 0  }
   0x7 LB: > { %5006 = sst [smem:[#allocation5_spill]] %s4040_s21  ;;  %s3517_s29 = sadd.s32 4294967295, %s4068_s28   ;;  %s4068_s28 = sphi %s4151_s28, %s25_s28   ;;  %s4064_s27 = sphi %s4149_s27, %s5031_s27   ;;  %s4060_s26 = sphi %s4147_s26, %s5030_s26   ;;  %s4056_s25 = sphi %s4145_s25, %s5029_s25   ;;  %s4052_s24 = sphi %s4143_s24, %s5028_s24   ;;  %s4048_s23 = sphi %s4141_s23, %s5027_s23   ;;  %s4044_s22 = sphi %s4139_s22, %s5033_s22   ;;  %s4040_s21 = sphi %s4137_s21, %s5032_s21  }
   0x8   : > { %5007 = sst [smem:[#allocation6_spill]] %s4048_s23  ;;  %s3518_s30 = sadd.s32 4294967294, %s4068_s28  }
   0x9   : > { %5008 = sst [smem:[#allocation7_spill]] %s4060_s26  ;;  %s34_s13 = sadd.s32 1, %s4060_s26 }
   0xa   : > { %5009 = sst [smem:[#allocation8_spill]] %s4064_s27  ;;  %p35_p0 = scmp.ge.s32.totalorder %s34_s13, 2 }
   0xb   : > { %5010 = sst [smem:[#allocation9_spill]] %s4068_s28  ;;  %s37_s14 = sadd.s32 1, %s4064_s27 }
   0xc   : > { %p416_p1 = scmp.ne.s32.totalorder %s4048_s23, %s4044_s22  ;;  %p417_p2 = scmp.eq.s32.totalorder %s3517_s29, 3 }
   0xd   : > { %s5035_s13 = smov (%p35_p0, %s34_s13), 0  ;;  %s5037_s14 = smov (!%p35_p0, %s37_s14), %s4064_s27 }
   0xe   : > { %5011 = sst [smem:[#allocation10_spill]] %s5035_s13  ;;  %s402_s15 = ssub.s32 %s4060_s26, %s5035_s13 }
   0xf   : > { %p4188_p3 = por %p417_p2, %p416_p1  ;;  %p39_p4 = scmp.ge.s32.totalorder %s5037_s14, 2 }
  0x10   : > { %p422_p5 = scmp.ne.s32.totalorder %s4044_s22, %s4040_s21  ;;  %p423_p6 = scmp.eq.s32.totalorder %s3518_s30, 3 }
  0x11   : > { %s5012_s16 = scalar_select %p4188_p3, 1, 0 }
  0x12   : > { %p3541_p7 = scmp.ge.s32.totalorder %s4068_s28, 1  ;;  %s5039_s14 = smov (%p39_p4, %s5037_s14), 0 }
  0x13   : > { %5013 = sst [smem:[#allocation11_spill]] %s5012_s16  ;;  %p4197_p8 = por %p423_p6, %p422_p5 }
  0x14   : > { %5014 = sst [smem:[#allocation12_spill]] %s5039_s14  ;;  %p605_p9 = scmp.lt.s32.totalorder %s4068_s28, 5 }
  0x15   : > { %s5015_s17 = scalar_select %p4197_p8, 1, 0 }
  0x16   : > { %s401_s18 = ssub.s32 %s4064_s27, %s5039_s14  ;;  %s406_s19 = sadd.s32 1, %s4048_s23 }
  0x17   : > { %5016 = sst [smem:[#allocation13_spill]] %s5015_s17  ;;  %s403_s20 = sor.u32 %s402_s15, %s401_s18 }
  0x18   : > { %p606_p10 = pnand %p3541_p7, %p605_p9  ;;  %p404_p11 = scmp.eq.s32.totalorder %s403_s20, 0 }
  0x19   : > { %s4215_s14 = sshll.u32 (!%p606_p10), %s4052_s24, 3  ;;  %p752_p12 = scmp.lt.s32.totalorder (!%p606_p10), %s4056_s25, 1 }
  0x1a   : > { %s4206_s29 = scalar_select %p404_p11, %s4048_s23, %s406_s19  }
  0x1b   : > { %609 = sbr.rel (%p606_p10) target bundleno = 476 (0x1dc), region = 68  ;;  %p754_p13 = scmp.lt.s32.totalorder (!%p606_p10), %s4215_s14, 17 }
  0x1c   : > { %5017 = sst [smem:[#allocation14_spill]] %s4206_s29  ;;  %s763_s26 = sadd.s32 (!%p606_p10), 1, %s4215_s14 }
  0x1d   : > { %p766_p0 = scmp.lt.s32.totalorder (!%p606_p10), %s763_s26, 17  ;;  %s815_s28 = sadd.s32 (!%p606_p10), 5, %s4215_s14 }
  0x1e   : > { %p818_p5 = scmp.lt.s32.totalorder (!%p606_p10), %s815_s28, 17 }
  0x20   : > { %v885_v0 = vld [vmem:[%s4990_s10] sm:$0x3]  ;;  %vm913_vm0 = vcmask 1041408   ;;  %v3572_v1 = vld [vmem:[%s4990_s10 + $0x6] sm:$0x3]  ;;  %s753_s19 = scalar_select %p752_p12, %s4056_s25, 1 }
  0x21   : > { %v934_v2 = vsel %vm913_vm0, %v885_v0, 0  ;;  %v992_v3 = vsel %vm913_vm0, %v3572_v1, 0  ;;  %v3570_v4 = vld [vmem:[%s4990_s10 + $0x4] sm:$0x3]  ;;  %v3563_v5 = vld [vmem:[%s4990_s10 + $0x2] sm:$0x3] }
  0x22   : > { %943 = vmatpush.bf16.msra.mxu1 %v934_v2  ;;  %1001 = vmatpush.bf16.msra.mxu3 %v992_v3  ;;  %v960_v6 = vsel %vm913_vm0, %v3570_v4, 0  ;;  %v915_v7 = vsel %vm913_vm0, %v3563_v5, 0  ;;  %v3582_v8 = vld [vmem:[%s4990_s10 + $0xc] sm:$0x3]  ;;  %s755_s27 = scalar_select %p754_p13, %s4215_s14, 17  ;;  %vm909_vm1 = vcmask 31744  }
  0x23   : > { %969 = vmatpush.bf16.msra.mxu2 %v960_v6  ;;  %924 = vmatpush.bf16.msra.mxu0 %v915_v7  ;;  %v1089_v9 = vsel %vm913_vm0, %v3582_v8, 0  ;;  %v3578_v10 = vld [vmem:[%s4990_s10 + $0x8] sm:$0x3]  ;;  %s4239_s21 = smul.u32 54, %s753_s19  ;;  %v3588_v12 = vld [vmem:[%s4990_s10 + $0xe] sm:$0x3] }
  0x24   : > { %v1030_v11 = vsel %vm913_vm0, %v3578_v10, 0  ;;  %s3888_s30 = smul.u32 3, %s755_s27  ;;  %v1127_v13 = vsel %vm913_vm0, %v3588_v12, 0  ;;  %v3580_v14 = vld [vmem:[%s4990_s10 + $0xa] sm:$0x3]  ;;  %s776_s19 = sadd.s32 2, %s4215_s14 }
  0x25   : > { %s5041_s26 = smov (!%p766_p0, %s763_s26), 17  ;;  %v1057_v15 = vsel %vm913_vm0, %v3580_v14, 0  ;;  %v3592_v16 = vld [vmem:[%s4990_s10 + $0x2] sm:$0x3]  ;;  %p4258_p1 = scmp.lt.s32.totalorder %s776_s19, 17  ;;  %vm952_vm2 = vcmask 1046528  }
  0x26   : > { %1136 = vmatpush.bf16.msrb.mxu3 %v1127_v13  ;;  %s758_s13 = sadd.s32 %s4239_s21, %s3888_s30  ;;  %1066 = vmatpush.bf16.msrb.mxu1 %v1057_v15  ;;  %s3890_s18 = smul.u32 3, %s5041_s26  ;;  %v3599_v19 = vld [vmem:[%s4990_s10 + $0x4] sm:$0x3]  ;;  %v1216_v20 = vsel %vm913_vm0, %v3592_v16, 0  ;;  %v1190_v24 = vld [vmem:[%s4990_s10] sm:$0x3] }
  0x27   : > { %1098 = vmatpush.bf16.msrb.mxu2 %v1089_v9  ;;  %1039 = vmatpush.bf16.msrb.mxu0 %v1030_v11  ;;  %s3544_s27 = sshll.u32 %s758_s13, 2  ;;  %s5043_s19 = smov (!%p4258_p1, %s776_s19), 17  ;;  %v1259_v29 = vsel %vm913_vm0, %v3599_v19, 0  ;;  %v3590_v34 = vld [vmem:[%s4990_s10 + $0x10] sm:$0x3]  ;;  %v1235_v36 = vsel %vm913_vm0, %v1190_v24, 0 }
  0x28   : > { %s760_s16 = scalar_lea.vmem %s4980_s0, %s3544_s27  ;;  %s770_s29 = sadd.s32 %s3890_s18, %s4239_s21  ;;  %vm896_vm3 = vsmask.f32 7424  ;;  %v1154_v40 = vsel %vm913_vm0, %v3590_v34, 0  ;;  %v3607_v52 = vld [vmem:[%s4990_s10 + $0x8] sm:$0x3] }
  0x29   : > { %v3816_v17 = vld [vmem:[%s760_s16] sm:$0xff]  ;;  %v884_v18 = vld [vmem:[%s760_s16 + $0x8] sm:$0x1]  ;;  %s3546_s17 = sshll.u32 %s770_s29, 2  ;;  %s3891_s12 = smul.u32 3, %s5043_s19  ;;  %v1327_v63 = vsel %vm913_vm0, %v3607_v52, 0 }
  0x2a   : > { %v893_v21 = vunpack.c.l.b16 %v884_v18  ;;  %3569 = vmatmul.msk.bf16.vlgmr.msra.gmra.mxu1 %vm909_vm1, %v3816_v17  ;;  %s4271_s13 = scalar_lea.vmem %s4981_s1, %s3546_s17  ;;  %v898_v22 = vshrl.u32 %v3816_v17, 16  ;;  %v900_v23 = vshll.u32 %v3816_v17, 16  ;;  %v953_v27 = vrot.slane %v3816_v17, 1  ;;  %v3611_v62 = vld [vmem:[%s4990_s10 + $0xc] sm:$0x3]  ;;  %s789_s18 = sadd.s32 3, %s4215_s14 }
  0x2b   : > { %v3817_v25 = vld [vmem:[%s4271_s13] sm:$0xff]  ;;  %v980_v28 = vld [vmem:[%s4271_s13 + $0x8] sm:$0x1]  ;;  %1225 = vmatpush.bf16.msra.mxu1 %v1216_v20  ;;  %s783_s20 = sadd.s32 %s3891_s12, %s4239_s21  ;;  %v3609_v6 = vld [vmem:[%s4990_s10 + $0xa] sm:$0x3]  ;;  %v1384_v7 = vsel %vm913_vm0, %v3611_v62, 0 }
  0x2c   : > { %v895_v26 = vpack.c.b16 %v893_v21, %v893_v21  ;;  %v902_v30 = vrot.slane %v900_v23, 1  ;;  %v1013_v31 = vunpack.c.l.b16 %v980_v28  ;;  %3577 = vmatmul.msk.bf16.vlgmr.msra.gmra.mxu3 %vm909_vm1, %v3817_v25  ;;  %s3548_s23 = sshll.u32 %s783_s20, 2  ;;  %v1050_v44 = vrot.slane %v3817_v25, 1  ;;  %v1189_v48 = vld [vmem:[%s4271_s13 + $0x8] sm:$0x1]  ;;  %v4310_v55 = vld [vmem:[%s4271_s13] sm:$0xff] }
  0x2d   : > { %1268 = vmatpush.bf16.msra.mxu3 %v1259_v29  ;;  %s4294_s30 = scalar_lea.vmem %s4982_s2, %s3548_s23  ;;  %v1017_v47 = vshll.u32 %v3817_v25, 16  ;;  %v1015_v54 = vshrl.u32 %v3817_v25, 16  ;;  %v1197_v56 = vunpack.c.l.b16 %v1189_v48  ;;  %v1203_v2 = vshll.u32 %v4310_v55, 16  ;;  %v3601_v8 = vld [vmem:[%s4990_s10 + $0x6] sm:$0x3]  ;;  %p792_p2 = scmp.lt.s32.totalorder %s789_s18, 17 }
  0x2e   : > { %v954_v32 = vrot.slane %v895_v26, 1  ;;  %v905_v33 = vshll.u32 %v895_v26, 16  ;;  %v903_v35 = vor.u32 %v902_v30, %v898_v22  ;;  %v1014_v39 = vpack.c.b16 %v1013_v31, %v1013_v31  ;;  %v4298_v42 = vld [vmem:[%s4294_s30] sm:$0xff]  ;;  %v1077_v43 = vld [vmem:[%s4294_s30 + $0x8] sm:$0x1]  ;;  %s802_s16 = sadd.s32 4, %s4215_s14 }
  0x2f   : > { %v1110_v46 = vunpack.c.l.b16 %v1077_v43  ;;  %v1112_v49 = vshrl.u32 %v4298_v42, 16  ;;  %v1114_v50 = vshll.u32 %v4298_v42, 16  ;;  %v1019_v59 = vrot.slane %v1017_v47, 1  ;;  %v1279_v17 = vld [vmem:[%s4294_s30 + $0x8] sm:$0x1]  ;;  %v3820_v22 = vld [vmem:[%s4294_s30] sm:$0xff] }
  0x30   : > { %v955_v37 = vsel %vm952_vm2, %v953_v27, %v954_v32  ;;  %v907_v38 = vrot.slane %v905_v33, 1  ;;  %v1051_v45 = vrot.slane %v1014_v39, 1  ;;  %v1022_v60 = vshll.u32 %v1014_v39, 16  ;;  %v3619_v18 = vld [vmem:[%s4990_s10 + $0x10] sm:$0x3]  ;;  %s5045_s18 = smov (!%p792_p2, %s789_s18), 17 }
  0x31   : > { %3571 = vmatmul.msk.bf16.vlgmr.msra.gmra.mxu2 %vm909_vm1, %v955_v37  ;;  %v4304_v51 = vpack.c.b16 %v1110_v46, %v1110_v46  ;;  %v1116_v53 = vrot.slane %v1114_v50, 1  ;;  %v1199_v1 = vpack.c.b16 %v1197_v56, %v1197_v56  ;;  %v1020_v4 = vor.u32 %v1019_v59, %v1015_v54  ;;  %v1481_v24 = vld [vmem:[%s4990_s10] sm:$0x3]  ;;  %v3623_v31 = vld [vmem:[%s4990_s10 + $0x2] sm:$0x3]  ;;  %s3892_s26 = smul.u32 3, %s5045_s18 }
  0x32   : > { %v908_v41 = vsel %vm896_vm3, %v903_v35, %v907_v38  ;;  %1244 = vmatpush.bf16.msra.mxu2 %v1235_v36  ;;  %v1052_v57 = vsel %vm952_vm2, %v1050_v44, %v1051_v45  ;;  %v1024_v5 = vrot.slane %v1022_v60, 1  ;;  %v1353_v9 = vsel %vm913_vm0, %v3609_v6, 0  ;;  %v3617_v33 = vld [vmem:[%s4990_s10 + $0xe] sm:$0x3]  ;;  %v3640_v45 = vld [vmem:[%s4990_s10 + $0xa] sm:$0x3] }
  0x33   : > { %3568 = vmatmul.msk.bf16.vlgmr.msra.gmra.mxu0 %vm909_vm1, %v908_v41  ;;  %v1119_v58 = vshll.u32 %v4304_v51, 16  ;;  %v1117_v61 = vor.u32 %v1116_v53, %v1112_v49  ;;  %v1201_v11 = vshrl.u32 %v4310_v55, 16  ;;  %v1205_v12 = vrot.slane %v1203_v2, 1  ;;  %s796_s15 = sadd.s32 %s3892_s26, %s4239_s21  ;;  %v1480_v50 = vld [vmem:[%s4294_s30 + $0x8] sm:$0x1]  ;;  %p805_p4 = scmp.lt.s32.totalorder %s802_s16, 17 }
  0x34   : > { %1163 = vmatpush.bf16.msra.mxu0 %v1154_v40  ;;  %v1025_v10 = vsel %vm896_vm3, %v1020_v4, %v1024_v5  ;;  %v1208_v13 = vshll.u32 %v1199_v1, 16  ;;  %v1290_v14 = vsel %vm913_vm0, %v3601_v8, 0  ;;  %v1252_v19 = vrot.slane %v4310_v55, 1  ;;  %s3550_s12 = sshll.u32 %s796_s15, 2  ;;  %v3638_v52 = vld [vmem:[%s4990_s10 + $0x8] sm:$0x3] }
  0x35   : > { %v1121_v0 = vrot.slane %v1119_v58, 1  ;;  %v1206_v15 = vor.u32 %v1205_v12, %v1201_v11  ;;  %v1253_v20 = vrot.slane %v1199_v1, 1  ;;  %v1310_v23 = vunpack.c.l.b16 %v1279_v17  ;;  %s4373_s19 = scalar_lea.vmem %s4983_s3, %s3550_s12  ;;  %s5047_s16 = smov (!%p805_p4, %s802_s16), 17  ;;  %v3648_v5 = vld [vmem:[%s4990_s10 + $0xe] sm:$0x3] }
  0x36   : > { %v1210_v16 = vrot.slane %v1208_v13, 1  ;;  %v1447_v25 = vsel %vm913_vm0, %v3619_v18, 0  ;;  %v1147_v27 = vrot.slane %v4298_v42, 1  ;;  %v1148_v28 = vrot.slane %v4304_v51, 1  ;;  %v1373_v44 = vld [vmem:[%s4373_s19 + $0x8] sm:$0x1] }
  0x37   : > { %v1122_v3 = vsel %vm896_vm3, %v1117_v61, %v1121_v0  ;;  %v1254_v26 = vsel %vm952_vm2, %v1252_v19, %v1253_v20  ;;  %v1311_v29 = vpack.c.b16 %v1310_v23, %v1310_v23  ;;  %v1314_v30 = vshll.u32 %v3820_v22, 16  ;;  %v3821_v47 = vld [vmem:[%s4373_s19] sm:$0xff]  ;;  %s3893_s27 = smul.u32 3, %s5047_s16  ;;  %v3650_v17 = vld [vmem:[%s4990_s10 + $0x10] sm:$0x3]  ;;  %s5049_s28 = smov (!%p818_p5, %s815_s28), 17 }
  0x38   : > { %v1211_v21 = vsel %vm896_vm3, %v1206_v15, %v1210_v16  ;;  %v1526_v32 = vsel %vm913_vm0, %v1481_v24, 0  ;;  %v1507_v34 = vsel %vm913_vm0, %v3623_v31, 0  ;;  %v1149_v35 = vsel %vm952_vm2, %v1147_v27, %v1148_v28  ;;  %v1570_v16 = vld [vmem:[%s4373_s19 + $0x8] sm:$0x1]  ;;  %v3823_v20 = vld [vmem:[%s4373_s19] sm:$0xff]  ;;  %s3894_s23 = smul.u32 3, %s5049_s28 }
  0x39   : > { %v1312_v36 = vshrl.u32 %v3820_v22, 16  ;;  %v1316_v37 = vrot.slane %v1314_v30, 1  ;;  %v1319_v38 = vshll.u32 %v1311_v29, 16  ;;  %v1421_v39 = vsel %vm913_vm0, %v3617_v33, 0  ;;  %s809_s17 = sadd.s32 %s3893_s27, %s4239_s21  ;;  %s748_s27 = sand.u32 1, %s4044_s22  }
  0x3a   : > { %3581 = vmatmul.msk.bf16.vlgmr.msrb.gmra.mxu1 %vm909_vm1, %v1052_v57  ;;  %v1346_v48 = vrot.slane %v3820_v22, 1  ;;  %v1347_v49 = vrot.slane %v1311_v29, 1  ;;  %v1404_v51 = vunpack.c.l.b16 %v1373_v44  ;;  %v1644_v53 = vsel %vm913_vm0, %v3640_v45, 0  ;;  %v3630_v57 = vld [vmem:[%s4990_s10 + $0x4] sm:$0x3]  ;;  %s3552_s16 = sshll.u32 %s809_s17, 2  ;;  %s822_s29 = sadd.s32 %s3894_s23, %s4239_s21 }
  0x3b   : > { %1336 = vmatpush.bf16.msrb.mxu1 %v1327_v63  ;;  %v1317_v40 = vor.u32 %v1316_v37, %v1312_v36  ;;  %v1321_v41 = vrot.slane %v1319_v38, 1  ;;  %v1488_v56 = vunpack.c.l.b16 %v1480_v50  ;;  %v1618_v58 = vsel %vm913_vm0, %v3638_v52, 0  ;;  %v1771_v37 = vld [vmem:[%s4373_s19 + $0x8] sm:$0x1]  ;;  %v4454_v44 = vld [vmem:[%s4373_s19] sm:$0xff]  ;;  %s3554_s17 = sshll.u32 %s822_s29, 2 }
  0x3c   : > { %3589 = vmatmul.msk.bf16.vlgmr.msrb.gmra.mxu3 %vm909_vm1, %v1122_v3  ;;  %v1348_v54 = vsel %vm952_vm2, %v1346_v48, %v1347_v49  ;;  %v1405_v59 = vpack.c.b16 %v1404_v51, %v1404_v51  ;;  %v1550_v60 = vsel %vm913_vm0, %v3630_v57, 0  ;;  %v1440_v63 = vrot.slane %v3821_v47, 1  ;;  %v3669_v38 = vld [vmem:[%s4990_s10 + $0x8] sm:$0x3]  ;;  %v3663_v49 = vld [vmem:[%s4990_s10 + $0x6] sm:$0x3]  ;;  %s4519_s13 = scalar_lea.vmem %s4985_s5, %s3554_s17 }
  0x3d   : > { %1393 = vmatpush.bf16.msrb.mxu3 %v1384_v7  ;;  %v1322_v43 = vsel %vm896_vm3, %v1317_v40, %v1321_v41  ;;  %v4400_v61 = vpack.c.b16 %v1488_v56, %v1488_v56  ;;  %v1408_v1 = vshll.u32 %v3821_v47, 16  ;;  %v1406_v7 = vshrl.u32 %v3821_v47, 16  ;;  %v1772_v52 = vld [vmem:[%s4990_s10] sm:$0x3]  ;;  %s828_s29 = sadd.s32 6, %s4215_s14  ;;  %s3542_s17 = sshll.u32 %s748_s27, 6 }
  0x3e   : > { %v1441_v0 = vrot.slane %v1405_v59, 1  ;;  %v1712_v11 = vsel %vm913_vm0, %v3648_v5, 0  ;;  %v1738_v23 = vsel %vm913_vm0, %v3650_v17, 0  ;;  %v1603_v29 = vshrl.u32 %v3823_v20, 16  ;;  %v3671_v17 = vld [vmem:[%s4990_s10 + $0xa] sm:$0x3] }
  0x3f   : > { %v1499_v4 = vshll.u32 %v4400_v61, 16  ;;  %v1410_v8 = vrot.slane %v1408_v1, 1  ;;  %v1637_v33 = vrot.slane %v3823_v20, 1  ;;  %v1779_v45 = vunpack.c.l.b16 %v1771_v37  ;;  %v3827_v37 = vld [vmem:[%s4519_s13] sm:$0xff]  ;;  %p831_p6 = scmp.lt.s32.totalorder %s828_s29, 17  ;;  %s4704_s12 = scalar_lea.vmem [#allocation2], %s3542_s17 }
  0x40   : > { %v1442_v6 = vsel %vm952_vm2, %v1440_v63, %v1441_v0  ;;  %v1909_v50 = vsel %vm913_vm0, %v3669_v38, 0  ;;  %v3685_v38 = vld [vmem:[%s4990_s10 + $0x2] sm:$0x3]  ;;  %s3812_s19 = sshll.u32 %s4056_s25, 5  ;;  %s5021_s15 = sld [smem:[#allocation15_spill]] }
  0x41   : > { %3587 = vmatmul.msk.bf16.vlgmr.msrb.gmra.mxu2 %vm909_vm1, %v4298_v42  ;;  %v3632_v42 = vld [vmem:[%s4990_s10 + $0x6] sm:$0x3]  ;;  %v1501_v13 = vrot.slane %v1499_v4, 1  ;;  %s5051_s29 = smov (!%p831_p6, %s828_s29), 17 }
  0x42   : > { %1362 = vmatpush.bf16.msrb.mxu2 %v1353_v9  ;;  %v1581_v46 = vsel %vm913_vm0, %v3632_v42, 0  ;;  %v1413_v9 = vshll.u32 %v1405_v59, 16 }
  0x43   : > { %3579 = vmatmul.msk.bf16.vlgmr.msrb.gmra.mxu0 %vm909_vm1, %v1025_v10  ;;  %v3654_v10 = vld [vmem:[%s4990_s10 + $0x2] sm:$0x3] }
  0x44   : > { %1299 = vmatpush.bf16.msrb.mxu0 %v1290_v14  ;;  %v1411_v14 = vor.u32 %v1410_v8, %v1406_v7  ;;  %v1415_v15 = vrot.slane %v1413_v9, 1  ;;  %v1798_v18 = vsel %vm913_vm0, %v3654_v10, 0  ;;  %v3681_v7 = vld [vmem:[%s4990_s10 + $0x10] sm:$0x3] }
  0x46   : > { %v1416_v24 = vsel %vm896_vm3, %v1411_v14, %v1415_v15  ;;  %v3679_v14 = vld [vmem:[%s4990_s10 + $0xe] sm:$0x3]  ;;  %v2029_v15 = vsel %vm913_vm0, %v3681_v7, 0 }
  0x4a   : > { %3597 = vmatmul.msk.bf16.vlgmr.msra.gmra.mxu1 %vm909_vm1, %v1211_v21  ;;  %v3642_v21 = vld [vmem:[%s4990_s10 + $0xc] sm:$0x3] }
  0x4b   : > { %1456 = vmatpush.bf16.msra.mxu1 %v1447_v25  ;;  %v1675_v25 = vsel %vm913_vm0, %v3642_v21, 0  ;;  %v1935_v21 = vsel %vm913_vm0, %v3671_v17, 0 }
  0x4c   : > { %3600 = vmatmul.msk.bf16.vlgmr.msra.gmra.mxu3 %vm909_vm1, %v1254_v26  ;;  %v1605_v26 = vshll.u32 %v3823_v20, 16 }
  0x4d   : > { %1535 = vmatpush.bf16.msra.mxu3 %v1526_v32  ;;  %v3661_v32 = vld [vmem:[%s4990_s10 + $0x4] sm:$0x3] }
  0x4e   : > { %v1607_v30 = vrot.slane %v1605_v26, 1 }
  0x50   : > { %v1608_v40 = vor.u32 %v1607_v30, %v1603_v29 }
  0x51   : > { %3598 = vmatmul.msk.bf16.vlgmr.msra.gmra.mxu2 %vm909_vm1, %v4310_v55  ;;  %v4392_v55 = vld [vmem:[%s4294_s30] sm:$0xff]  ;;  %s4435_s30 = scalar_lea.vmem %s4984_s4, %s3552_s16  ;;  %s3895_s16 = smul.u32 3, %s5051_s29 }
  0x52   : > { %1516 = vmatpush.bf16.msra.mxu2 %v1507_v34  ;;  %v1494_v62 = vshll.u32 %v4392_v55, 16  ;;  %v1492_v2 = vshrl.u32 %v4392_v55, 16  ;;  %v1664_v28 = vld [vmem:[%s4435_s30 + $0x8] sm:$0x1]  ;;  %s3840_s29 = sshll.u32 %s4052_s24, 4 }
  0x53   : > { %3591 = vmatmul.msk.bf16.vlgmr.msra.gmra.mxu0 %vm909_vm1, %v1149_v35  ;;  %v4443_v35 = vld [vmem:[%s4435_s30] sm:$0xff]  ;;  %v1695_v36 = vunpack.c.l.b16 %v1664_v28  ;;  %s835_s20 = sadd.s32 %s3895_s16, %s4239_s21  ;;  %s841_s16 = sadd.s32 7, %s4215_s14 }
  0x54   : > { %1430 = vmatpush.bf16.msra.mxu0 %v1421_v39  ;;  %v1496_v3 = vrot.slane %v1494_v62, 1  ;;  %v1841_v39 = vsel %vm913_vm0, %v3661_v32, 0  ;;  %v1699_v48 = vshll.u32 %v4443_v35, 16  ;;  %v1697_v57 = vshrl.u32 %v4443_v35, 16  ;;  %s3556_s23 = sshll.u32 %s835_s20, 2  ;;  %p844_p7 = scmp.lt.s32.totalorder %s841_s16, 17 }
  0x55   : > { %v1731_v9 = vrot.slane %v4443_v35, 1 }
  0x56   : > { %v1497_v12 = vor.u32 %v1496_v3, %v1492_v2  ;;  %v3673_v2 = vld [vmem:[%s4990_s10 + $0xc] sm:$0x3]  ;;  %s5053_s16 = smov (!%p844_p7, %s841_s16), 17 }
  0x57   : > { %v1966_v8 = vsel %vm913_vm0, %v3673_v2, 0  ;;  %s3896_s28 = smul.u32 3, %s5053_s16 }
  0x58   : > { %v1502_v19 = vsel %vm896_vm3, %v1497_v12, %v1501_v13  ;;  %v4489_v12 = vld [vmem:[%s4435_s30] sm:$0xff] }
  0x59   : > { %s848_s16 = sadd.s32 %s3896_s28, %s4239_s21 }
  0x5a   : > { %3608 = vmatmul.msk.bf16.vlgmr.msrb.gmra.mxu1 %vm909_vm1, %v1322_v43  ;;  %v1543_v43 = vrot.slane %v4392_v55, 1  ;;  %s3558_s18 = sshll.u32 %s848_s16, 2  ;;  %s854_s16 = sadd.s32 8, %s4215_s14 }
  0x5b   : > { %1590 = vmatpush.bf16.msrb.mxu1 %v1581_v46  ;;  %v1544_v46 = vrot.slane %v4400_v61, 1  ;;  %v1783_v61 = vshrl.u32 %v4454_v44, 16  ;;  %p4745_p9 = scmp.lt.s32.totalorder %s854_s16, 17 }
  0x5c   : > { %3616 = vmatmul.msk.bf16.vlgmr.msrb.gmra.mxu3 %vm909_vm1, %v3821_v47  ;;  %v1696_v47 = vpack.c.b16 %v1695_v36, %v1695_v36 }
  0x5d   : > { %1653 = vmatpush.bf16.msrb.mxu3 %v1644_v53  ;;  %v1781_v53 = vpack.c.b16 %v1779_v45, %v1779_v45  ;;  %v1545_v56 = vsel %vm952_vm2, %v1543_v43, %v1544_v46  ;;  %v1988_v45 = vshrl.u32 %v3827_v37, 16  ;;  %s5055_s16 = smov (!%p4745_p9, %s854_s16), 17 }
  0x5e   : > { %v1704_v59 = vshll.u32 %v1696_v47, 16  ;;  %v1732_v10 = vrot.slane %v1696_v47, 1 }
  0x5f   : > { %v1790_v63 = vshll.u32 %v1781_v53, 16  ;;  %v1835_v26 = vrot.slane %v1781_v53, 1 }
  0x60   : > { %v1706_v1 = vrot.slane %v1704_v59, 1 }
  0x61   : > { %3610 = vmatmul.msk.bf16.vlgmr.msrb.gmra.mxu2 %vm909_vm1, %v1348_v54  ;;  %v1785_v54 = vshll.u32 %v4454_v44, 16  ;;  %v1792_v4 = vrot.slane %v1790_v63, 1 }
  0x62   : > { %1627 = vmatpush.bf16.msrb.mxu2 %v1618_v58  ;;  %v1701_v58 = vrot.slane %v1699_v48, 1  ;;  %v3702_v48 = vld [vmem:[%s4990_s10 + $0xa] sm:$0x3] }
  0x63   : > { %3606 = vmatmul.msk.bf16.vlgmr.msrb.gmra.mxu0 %vm909_vm1, %v3820_v22  ;;  %v1601_v22 = vunpack.c.l.b16 %v1570_v16  ;;  %v1787_v62 = vrot.slane %v1785_v54, 1  ;;  %v1733_v16 = vsel %vm952_vm2, %v1731_v9, %v1732_v10 }
  0x64   : > { %1559 = vmatpush.bf16.msrb.mxu0 %v1550_v60  ;;  %v1817_v60 = vsel %vm913_vm0, %v1772_v52, 0  ;;  %v1702_v0 = vor.u32 %v1701_v58, %v1697_v57  ;;  %v3710_v52 = vld [vmem:[%s4990_s10 + $0xe] sm:$0x3]  ;;  %v3704_v58 = vld [vmem:[%s4990_s10 + $0xc] sm:$0x3] }
  0x65   : > { %v1602_v27 = vpack.c.b16 %v1601_v22, %v1601_v22  ;;  %v1788_v3 = vor.u32 %v1787_v62, %v1783_v61  ;;  %v1894_v22 = vshrl.u32 %v4489_v12, 16  ;;  %v2294_v59 = vsel %vm913_vm0, %v3710_v52, 0  ;;  %v3700_v62 = vld [vmem:[%s4990_s10 + $0x8] sm:$0x3] }
  0x66   : > { %v1707_v5 = vsel %vm896_vm3, %v1702_v0, %v1706_v1  ;;  %v2257_v63 = vsel %vm913_vm0, %v3704_v58, 0 }
  0x67   : > { %v1610_v31 = vshll.u32 %v1602_v27, 16  ;;  %v1638_v34 = vrot.slane %v1602_v27, 1  ;;  %v2063_v27 = vld [vmem:[%s4990_s10] sm:$0x3] }
  0x68   : > { %v2108_v32 = vsel %vm913_vm0, %v2063_v27, 0 }
  0x69   : > { %v1612_v41 = vrot.slane %v1610_v31, 1  ;;  %v1639_v42 = vsel %vm952_vm2, %v1637_v33, %v1638_v34  ;;  %v3694_v31 = vld [vmem:[%s4990_s10 + $0x6] sm:$0x3]  ;;  %v1955_v34 = vld [vmem:[%s4519_s13 + $0x8] sm:$0x1] }
  0x6a   : > { %3620 = vmatmul.msk.bf16.vlgmr.msra.gmra.mxu1 %vm909_vm1, %v1442_v6  ;;  %v1861_v6 = vld [vmem:[%s4435_s30 + $0x8] sm:$0x1]  ;;  %v2163_v36 = vsel %vm913_vm0, %v3694_v31, 0 }
  0x6b   : > { %1721 = vmatpush.bf16.msra.mxu1 %v1712_v11  ;;  %v1613_v51 = vsel %vm896_vm3, %v1608_v40, %v1612_v41  ;;  %v1793_v11 = vsel %vm896_vm3, %v1788_v3, %v1792_v4  ;;  %v1892_v13 = vunpack.c.l.b16 %v1861_v6  ;;  %v2089_v41 = vsel %vm913_vm0, %v3685_v38, 0  ;;  %v3828_v3 = vld [vmem:[%s4435_s30] sm:$0xff] }
  0x6c   : > { %3629 = vmatmul.msk.bf16.vlgmr.msra.gmra.mxu3 %vm909_vm1, %v4392_v55  ;;  %v1872_v55 = vsel %vm913_vm0, %v3663_v49, 0  ;;  %v2022_v49 = vrot.slane %v3827_v37, 1  ;;  %v2200_v6 = vsel %vm913_vm0, %v3700_v62, 0  ;;  %v2076_v9 = vshll.u32 %v3828_v3, 16 }
  0x6d   : > { %1807 = vmatpush.bf16.msra.mxu3 %v1798_v18  ;;  %v4500_v18 = vpack.c.b16 %v1892_v13, %v1892_v13  ;;  %v2074_v10 = vshrl.u32 %v3828_v3, 16 }
  0x6e   : > { %v2078_v13 = vrot.slane %v2076_v9, 1 }
  0x6f   : > { %v1929_v57 = vrot.slane %v4500_v18, 1 }
  0x70   : > { %v2079_v27 = vor.u32 %v2078_v13, %v2074_v10 }
  0x71   : > { %3628 = vmatmul.msk.bf16.vlgmr.msra.gmra.mxu2 %vm909_vm1, %v1502_v19  ;;  %v1896_v19 = vshll.u32 %v4489_v12, 16 }
  0x72   : > { %1747 = vmatpush.bf16.msra.mxu2 %v1738_v23 }
  0x73   : > { %3618 = vmatmul.msk.bf16.vlgmr.msra.gmra.mxu0 %vm909_vm1, %v1416_v24  ;;  %v1898_v23 = vrot.slane %v1896_v19, 1  ;;  %v1901_v24 = vshll.u32 %v4500_v18, 16  ;;  %v2152_v18 = vld [vmem:[%s4519_s13 + $0x8] sm:$0x1]  ;;  %v3723_v19 = vld [vmem:[%s4990_s10 + $0x4] sm:$0x3] }
  0x74   : > { %1684 = vmatpush.bf16.msra.mxu0 %v1675_v25  ;;  %v1834_v25 = vrot.slane %v4454_v44, 1  ;;  %v2423_v31 = vsel %vm913_vm0, %v3723_v19, 0  ;;  %v3725_v19 = vld [vmem:[%s4990_s10 + $0x6] sm:$0x3] }
  0x75   : > { %v1899_v28 = vor.u32 %v1898_v23, %v1894_v22  ;;  %v1903_v29 = vrot.slane %v1901_v24, 1  ;;  %v2125_v22 = vrot.slane %v3828_v3, 1 }
  0x76   : > { %v1836_v30 = vsel %vm952_vm2, %v1834_v25, %v1835_v26 }
  0x77   : > { %v1904_v33 = vsel %vm896_vm3, %v1899_v28, %v1903_v29  ;;  %v2183_v29 = vunpack.c.l.b16 %v2152_v18 }
  0x7a   : > { %3637 = vmatmul.msk.bf16.vlgmr.msrb.gmra.mxu1 %vm909_vm1, %v3823_v20  ;;  %v2003_v20 = vsel %vm913_vm0, %v3679_v14, 0 }
  0x7b   : > { %1850 = vmatpush.bf16.msrb.mxu1 %v1841_v39  ;;  %v1986_v39 = vunpack.c.l.b16 %v1955_v34 }
  0x7c   : > { %3641 = vmatmul.msk.bf16.vlgmr.msrb.gmra.mxu3 %vm909_vm1, %v1639_v42  ;;  %v1990_v42 = vshll.u32 %v3827_v37, 16 }
  0x7d   : > { %1918 = vmatpush.bf16.msrb.mxu3 %v1909_v50  ;;  %v1987_v43 = vpack.c.b16 %v1986_v39, %v1986_v39 }
  0x7e   : > { %v1992_v46 = vrot.slane %v1990_v42, 1  ;;  %v2184_v42 = vpack.c.b16 %v2183_v29, %v2183_v29 }
  0x7f   : > { %v1995_v47 = vshll.u32 %v1987_v43, 16  ;;  %v2023_v50 = vrot.slane %v1987_v43, 1 }
  0x80   : > { %v1993_v53 = vor.u32 %v1992_v46, %v1988_v45 }
  0x81   : > { %3639 = vmatmul.msk.bf16.vlgmr.msrb.gmra.mxu2 %vm909_vm1, %v1613_v51  ;;  %v1997_v54 = vrot.slane %v1995_v47, 1 }
  0x82   : > { %1881 = vmatpush.bf16.msrb.mxu2 %v1872_v55  ;;  %v2024_v55 = vsel %vm952_vm2, %v2022_v49, %v2023_v50 }
  0x83   : > { %3631 = vmatmul.msk.bf16.vlgmr.msrb.gmra.mxu0 %vm909_vm1, %v1545_v56  ;;  %v1928_v56 = vrot.slane %v4489_v12, 1  ;;  %v1998_v61 = vsel %vm896_vm3, %v1993_v53, %v1997_v54  ;;  %v2220_v53 = vrot.slane %v2184_v42, 1 }
  0x84   : > { %1826 = vmatpush.bf16.msrb.mxu0 %v1817_v60  ;;  %v2062_v60 = vld [vmem:[%s4435_s30 + $0x8] sm:$0x1]  ;;  %s4575_s30 = scalar_lea.vmem %s4986_s6, %s3556_s23 }
  0x85   : > { %v1930_v2 = vsel %vm952_vm2, %v1928_v56, %v1929_v57  ;;  %v2070_v4 = vunpack.c.l.b16 %v2062_v60  ;;  %v4592_v24 = vld [vmem:[%s4575_s30] sm:$0xff]  ;;  %v2353_v56 = vld [vmem:[%s4519_s13 + $0x8] sm:$0x1] }
  0x86   : > { %v2281_v34 = vshll.u32 %v4592_v24, 16  ;;  %v2279_v46 = vshrl.u32 %v4592_v24, 16  ;;  %v3731_v57 = vld [vmem:[%s4990_s10 + $0x8] sm:$0x3] }
  0x88   : > { %v2283_v47 = vrot.slane %v2281_v34, 1  ;;  %v4656_v34 = vld [vmem:[%s4991_s11] ss:$0 sm:$0xff] }
  0x8a   : > { %3649 = vmatmul.msk.bf16.vlgmr.msra.gmra.mxu1 %vm909_vm1, %v1707_v5  ;;  %v2284_v58 = vor.u32 %v2283_v47, %v2279_v46 }
  0x8b   : > { %1975 = vmatpush.bf16.msra.mxu1 %v1966_v8  ;;  %v2072_v8 = vpack.c.b16 %v2070_v4, %v2070_v4 }
  0x8c   : > { %3659 = vmatmul.msk.bf16.vlgmr.msra.gmra.mxu3 %vm909_vm1, %v1793_v11 }
  0x8d   : > { %2038 = vmatpush.bf16.msra.mxu3 %v2029_v15  ;;  %v2081_v14 = vshll.u32 %v2072_v8, 16  ;;  %v2246_v15 = vld [vmem:[%s4575_s30 + $0x8] sm:$0x1]  ;;  %v2126_v23 = vrot.slane %v2072_v8, 1  ;;  %v2491_v8 = vsel %vm913_vm0, %v3731_v57, 0 }
  0x8e   : > { %v2277_v25 = vunpack.c.l.b16 %v2246_v15 }
  0x8f   : > { %v2083_v28 = vrot.slane %v2081_v14, 1 }
  0x91   : > { %3651 = vmatmul.msk.bf16.vlgmr.msra.gmra.mxu2 %vm909_vm1, %v1733_v16  ;;  %v3716_v16 = vld [vmem:[%s4990_s10 + $0x2] sm:$0x3] }
  0x92   : > { %2012 = vmatpush.bf16.msra.mxu2 %v2003_v20  ;;  %v2380_v20 = vsel %vm913_vm0, %v3716_v16, 0 }
  0x93   : > { %3647 = vmatmul.msk.bf16.vlgmr.msra.gmra.mxu0 %vm909_vm1, %v4443_v35  ;;  %v3692_v35 = vld [vmem:[%s4990_s10 + $0x4] sm:$0x3] }
  0x94   : > { %1944 = vmatpush.bf16.msra.mxu0 %v1935_v21  ;;  %v2132_v40 = vsel %vm913_vm0, %v3692_v35, 0  ;;  %v4589_v21 = vld [vmem:[%s4519_s13] sm:$0xff]  ;;  %v3712_v35 = vld [vmem:[%s4990_s10 + $0x10] sm:$0x3] }
  0x95   : > { %v2320_v45 = vsel %vm913_vm0, %v3712_v35, 0  ;;  %v2185_v60 = vshrl.u32 %v4589_v21, 16 }
  0x9a   : > { %3662 = vmatmul.msk.bf16.vlgmr.msrb.gmra.mxu1 %vm909_vm1, %v1836_v30  ;;  %v2354_v30 = vld [vmem:[%s4990_s10] sm:$0x3] }
  0x9b   : > { %2117 = vmatpush.bf16.msrb.mxu1 %v2108_v32  ;;  %v2399_v38 = vsel %vm913_vm0, %v2354_v30, 0 }
  0x9c   : > { %3670 = vmatmul.msk.bf16.vlgmr.msrb.gmra.mxu3 %vm909_vm1, %v1904_v33  ;;  %v2127_v33 = vsel %vm952_vm2, %v2125_v22, %v2126_v23 }
  0x9d   : > { %2172 = vmatpush.bf16.msrb.mxu3 %v2163_v36 }
  0xa1   : > { %3668 = vmatmul.msk.bf16.vlgmr.msrb.gmra.mxu2 %vm909_vm1, %v4489_v12 }
  0xa2   : > { %2141 = vmatpush.bf16.msrb.mxu2 %v2132_v40 }
  0xa3   : > { %3660 = vmatmul.msk.bf16.vlgmr.msrb.gmra.mxu0 %vm909_vm1, %v4454_v44  ;;  %v2226_v44 = vsel %vm913_vm0, %v3702_v48, 0 }
  0xa4   : > { %2098 = vmatpush.bf16.msrb.mxu0 %v2089_v41  ;;  %v2084_v41 = vsel %vm896_vm3, %v2079_v27, %v2083_v28 }
  0xa7   : > { %v945_v51 = vpop.f32.mrf.mxu1 }
  0xaa   : > { %3678 = vmatmul.msk.bf16.vlgmr.msra.gmra.mxu1 %vm909_vm1, %v3827_v37  ;;  %v4606_v37 = vpack.c.b16 %v2277_v25, %v2277_v25 }
  0xab   : > { %2235 = vmatpush.bf16.msra.mxu1 %v2226_v44  ;;  %v2219_v44 = vrot.slane %v4589_v21, 1 }
  0xac   : > { %3682 = vmatmul.msk.bf16.vlgmr.msra.gmra.mxu3 %vm909_vm1, %v2024_v55  ;;  %v2286_v50 = vshll.u32 %v4606_v37, 16  ;;  %v2314_v57 = vrot.slane %v4606_v37, 1 }
  0xad   : > { %2303 = vmatpush.bf16.msra.mxu3 %v2294_v59 }
  0xae   : > { %v2288_v59 = vrot.slane %v2286_v50, 1 }
  0xaf   : > { %v947_v1 = vpop.f32.mrf.mxu1  ;;  %v1003_v5 = vpop.f32.mrf.mxu3 }
  0xb0   : > { %v926_v0 = vpop.f32.mrf.mxu0  ;;  %v2289_v10 = vsel %vm896_vm3, %v2284_v58, %v2288_v59 }
  0xb1   : > { %3680 = vmatmul.msk.bf16.vlgmr.msra.gmra.mxu2 %vm909_vm1, %v1998_v61  ;;  %v946_v32 = vadd.f32 %v945_v51, %v926_v0  ;;  %v2187_v51 = vshll.u32 %v4589_v21, 16  ;;  %v2221_v0 = vsel %vm952_vm2, %v2219_v44, %v2220_v53  ;;  %v2313_v53 = vrot.slane %v4592_v24, 1 }
  0xb2   : > { %2266 = vmatpush.bf16.msra.mxu2 %v2257_v63 }
  0xb3   : > { %3672 = vmatmul.msk.bf16.vlgmr.msra.gmra.mxu0 %vm909_vm1, %v1930_v2  ;;  %v2189_v61 = vrot.slane %v2187_v51, 1  ;;  %v4626_v2 = vld [vmem:[%s4519_s13] sm:$0xff]  ;;  %s4715_s13 = scalar_lea.vmem %s4987_s7, %s3558_s18 }
  0xb4   : > { %v971_v7 = vpop.f32.mrf.mxu2  ;;  %2209 = vmatpush.bf16.msra.mxu0 %v2200_v6  ;;  %v2367_v16 = vshll.u32 %v4626_v2, 16 }
  0xb5   : > { %v976_v36 = vadd.f32 %v971_v7, %v946_v32  ;;  %v3735_v7 = vld [vmem:[%s4990_s10 + $0xc] sm:$0x3] }
  0xb6   : > { %v2369_v27 = vrot.slane %v2367_v16, 1 }
  0xb7   : > { %v4577_v12 = vpop.f32.mrf.mxu1  ;;  %v1005_v17 = vpop.f32.mrf.mxu3  ;;  %v1008_v49 = vadd.f32 %v1003_v5, %v976_v36 }
  0xb8   : > { %v928_v11 = vpop.f32.mrf.mxu0 }
  0xb9   : > { %v948_v48 = vadd.f32 %v947_v1, %v928_v11  ;;  %v2192_v1 = vshll.u32 %v2184_v42, 16  ;;  %v2190_v11 = vor.u32 %v2189_v61, %v2185_v60  ;;  %v3747_v61 = vld [vmem:[%s4990_s10 + $0x2] sm:$0x3] }
  0xba   : > { %3691 = vmatmul.msk.bf16.vlgmr.msrb.gmra.mxu1 %vm909_vm1, %v3828_v3  ;;  %v2361_v3 = vunpack.c.l.b16 %v2353_v56 }
  0xbb   : > { %2389 = vmatpush.bf16.msrb.mxu1 %v2380_v20  ;;  %v2194_v14 = vrot.slane %v2192_v1, 1  ;;  %v3741_v1 = vld [vmem:[%s4990_s10 + $0xe] sm:$0x3] }
  0xbc   : > { %v973_v26 = vpop.f32.mrf.mxu2  ;;  %3699 = vmatmul.msk.bf16.vlgmr.msrb.gmra.mxu3 %vm909_vm1, %v4589_v21  ;;  %v2363_v15 = vpack.c.b16 %v2361_v3, %v2361_v3 }
  0xbd   : > { %2432 = vmatpush.bf16.msrb.mxu3 %v2423_v31  ;;  %v977_v54 = vadd.f32 %v973_v26, %v948_v48  ;;  %v2195_v25 = vsel %vm896_vm3, %v2190_v11, %v2194_v14  ;;  %v2365_v26 = vshrl.u32 %v4626_v2, 16  ;;  %v2454_v31 = vsel %vm913_vm0, %v3725_v19, 0  ;;  %v4665_v48 = vld [vmem:[%s4575_s30] sm:$0xff] }
  0xbe   : > { %v2372_v28 = vshll.u32 %v2363_v15, 16 }
  0xbf   : > { %v1070_v40 = vpop.f32.mrf.mxu1  ;;  %v1138_v43 = vpop.f32.mrf.mxu3  ;;  %v1009_v5 = vadd.f32 %v1005_v17, %v977_v54  ;;  %v2548_v17 = vsel %vm913_vm0, %v3735_v7, 0  ;;  %v2370_v36 = vor.u32 %v2369_v27, %v2365_v26  ;;  %v3743_v54 = vld [vmem:[%s4990_s10 + $0x10] sm:$0x3] }
  0xc0   : > { %v1041_v39 = vpop.f32.mrf.mxu0  ;;  %v2611_v58 = vsel %vm913_vm0, %v3743_v54, 0 }
  0xc1   : > { %3693 = vmatmul.msk.bf16.vlgmr.msrb.gmra.mxu2 %vm909_vm1, %v2127_v33  ;;  %v1046_v55 = vadd.f32 %v1041_v39, %v1008_v49  ;;  %v2443_v39 = vld [vmem:[%s4575_s30 + $0x8] sm:$0x1] }
  0xc2   : > { %2408 = vmatpush.bf16.msrb.mxu2 %v2399_v38  ;;  %v2374_v38 = vrot.slane %v2372_v28, 1  ;;  %v2474_v49 = vunpack.c.l.b16 %v2443_v39  ;;  %v3764_v28 = vld [vmem:[%s4990_s10 + $0xa] sm:$0x3] }
  0xc3   : > { %3690 = vmatmul.msk.bf16.vlgmr.msrb.gmra.mxu0 %vm909_vm1, %v2084_v41  ;;  %v1073_v4 = vadd.f32 %v4577_v12, %v1046_v55  ;;  %v3733_v12 = vld [vmem:[%s4990_s10 + $0xa] sm:$0x3]  ;;  %v2417_v41 = vrot.slane %v2363_v15, 1  ;;  %v2585_v15 = vsel %vm913_vm0, %v3741_v1, 0 }
  0xc4   : > { %v1100_v52 = vpop.f32.mrf.mxu2  ;;  %2329 = vmatpush.bf16.msrb.mxu0 %v2320_v45  ;;  %v2517_v21 = vsel %vm913_vm0, %v3733_v12, 0  ;;  %v2375_v47 = vsel %vm896_vm3, %v2370_v36, %v2374_v38  ;;  %v4683_v60 = vpack.c.b16 %v2474_v49, %v2474_v49  ;;  %v2644_v36 = vld [vmem:[%s4575_s30 + $0x8] sm:$0x1] }
  0xc5   : > { %v1105_v18 = vadd.f32 %v1100_v52, %v1073_v4  ;;  %v2645_v52 = vld [vmem:[%s4990_s10] sm:$0x3] }
  0xc6   : > { %v2483_v11 = vshll.u32 %v4683_v60, 16 }
  0xc7   : > { %v4622_v63 = vpop.f32.mrf.mxu1  ;;  %v1140_v6 = vpop.f32.mrf.mxu3  ;;  %v1143_v29 = vadd.f32 %v1138_v43, %v1105_v18 }
  0xc8   : > { %v1043_v62 = vpop.f32.mrf.mxu0  ;;  %v2485_v18 = vrot.slane %v2483_v11, 1  ;;  %v3778_v11 = vld [vmem:[%s4990_s10 + $0x2] sm:$0x3] }
  0xc9   : > { %v1047_v9 = vadd.f32 %v1043_v62, %v1009_v5  ;;  %v2690_v62 = vsel %vm913_vm0, %v2645_v52, 0  ;;  %v2315_v5 = vsel %vm952_vm2, %v2313_v53, %v2314_v57 }
  0xca   : > { %3703 = vmatmul.msk.bf16.vlgmr.msra.gmra.mxu1 %vm909_vm1, %v2221_v0 }
  0xcb   : > { %2500 = vmatpush.bf16.msra.mxu1 %v2491_v8  ;;  %v1074_v20 = vadd.f32 %v1070_v40, %v1047_v9  ;;  %v2416_v40 = vrot.slane %v4626_v2, 1  ;;  %v2476_v9 = vshrl.u32 %v4665_v48, 16 }
  0xcc   : > { %v1102_v13 = vpop.f32.mrf.mxu2  ;;  %3711 = vmatmul.msk.bf16.vlgmr.msra.gmra.mxu3 %vm909_vm1, %v2289_v10 }
  0xcd   : > { %2557 = vmatpush.bf16.msra.mxu3 %v2548_v17  ;;  %v1106_v32 = vadd.f32 %v1102_v13, %v1074_v20  ;;  %v2418_v44 = vsel %vm952_vm2, %v2416_v40, %v2417_v41  ;;  %v3762_v40 = vld [vmem:[%s4990_s10 + $0x8] sm:$0x3]  ;;  %v2808_v41 = vsel %vm913_vm0, %v3764_v28, 0 }
  0xcf   : > { %v4645_v23 = vpop.f32.mrf.mxu1  ;;  %v1270_v30 = vpop.f32.mrf.mxu3  ;;  %v1144_v43 = vadd.f32 %v1140_v6, %v1106_v32  ;;  %v2671_v6 = vsel %vm913_vm0, %v3747_v61, 0  ;;  %v2511_v32 = vrot.slane %v4683_v60, 1 }
  0xd0   : > { %v1165_v22 = vpop.f32.mrf.mxu0 }
  0xd1   : > { %3709 = vmatmul.msk.bf16.vlgmr.msra.gmra.mxu2 %vm909_vm1, %v4592_v24  ;;  %v1170_v33 = vadd.f32 %v1165_v22, %v1143_v29  ;;  %v2478_v24 = vshll.u32 %v4665_v48, 16 }
  0xd2   : > { %2526 = vmatpush.bf16.msra.mxu2 %v2517_v21 }
  0xd3   : > { %3701 = vmatmul.msk.bf16.vlgmr.msra.gmra.mxu0 %vm909_vm1, %v2195_v25  ;;  %v1175_v42 = vadd.f32 %v4656_v34, %v1170_v33  ;;  %v2480_v10 = vrot.slane %v2478_v24, 1 }
  0xd4   : > { %v1246_v35 = vpop.f32.mrf.mxu2  ;;  %2463 = vmatpush.bf16.msra.mxu0 %v2454_v31  ;;  %v2510_v31 = vrot.slane %v4665_v48, 1 }
  0xd5   : > { %v1179_v55 = vmul.f32 0.2, %v1175_v42  ;;  %vm1177_vm4 = vcmp.ge.f32.partialorder %v1175_v42, 0.0  ;;  %v1247_v0 = vadd.f32 %v1246_v35, %v4622_v63  ;;  %v2481_v17 = vor.u32 %v2480_v10, %v2476_v9 }
  0xd7   : > { %v1338_v46 = vpop.f32.mrf.mxu1  ;;  %v1272_v51 = vpop.f32.mrf.mxu3  ;;  %v1181_v3 = vsel %vm1177_vm4, %v1175_v42, %v1179_v55  ;;  %v1275_v13 = vadd.f32 %v1270_v30, %v1247_v0  ;;  %v2486_v25 = vsel %vm896_vm3, %v2481_v17, %v2485_v18  ;;  %v4724_v30 = vld [vmem:[%s4715_s13] sm:$0xff]  ;;  %v2512_v42 = vsel %vm952_vm2, %v2510_v31, %v2511_v32 }
  0xd8   : > { %v1167_v45 = vpop.f32.mrf.mxu0  ;;  %v2604_v60 = vrot.slane %v4724_v30, 1  ;;  %v2572_v61 = vshll.u32 %v4724_v30, 16 }
  0xd9   : > { %v1171_v50 = vadd.f32 %v1167_v45, %v1144_v43  ;;  %v4739_v43 = vld [vmem:[%s4575_s30] sm:$0xff]  ;;  %v2652_v45 = vunpack.c.l.b16 %v2644_v36  ;;  %s3897_s30 = smul.u32 3, %s5055_s16 }
  0xda   : > { %3721 = vmatmul.msk.bf16.vlgmr.msrb.gmra.mxu1 %vm909_vm1, %v2375_v47  ;;  %v2658_v57 = vshll.u32 %v4739_v43, 16  ;;  %v2656_v0 = vshrl.u32 %v4739_v43, 16 }
  0xdb   : > { %v1176_v56 = vadd.f32 %v4656_v34, %v1171_v50  ;;  %2620 = vmatpush.bf16.msrb.mxu1 %v2611_v58  ;;  %v2782_v50 = vsel %vm913_vm0, %v3762_v40, 0  ;;  %s861_s16 = sadd.s32 %s3897_s30, %s4239_s21 }
  0xdc   : > { %v1248_v59 = vpop.f32.mrf.mxu2  ;;  %3724 = vmatmul.msk.bf16.vlgmr.msrb.gmra.mxu3 %vm909_vm1, %v2418_v44  ;;  %s3560_s23 = sshll.u32 %s861_s16, 2 }
  0xdd   : > { %vm1178_vm5 = vcmp.ge.f32.partialorder %v1176_v56, 0.0  ;;  %v1180_v37 = vmul.f32 0.2, %v1176_v56  ;;  %2699 = vmatpush.bf16.msrb.mxu3 %v2690_v62  ;;  %v1249_v19 = vadd.f32 %v1248_v59, %v4645_v23  ;;  %v2537_v23 = vld [vmem:[%s4715_s13 + $0x8] sm:$0x1]  ;;  %s4797_s17 = scalar_lea.vmem %s4988_s8, %s3560_s23  ;;  %s867_s23 = sadd.s32 9, %s4215_s14 }
  0xde   : > { %v2568_v39 = vunpack.c.l.b16 %v2537_v23  ;;  %v3766_v23 = vld [vmem:[%s4990_s10 + $0xc] sm:$0x3]  ;;  %p4847_p10 = scmp.lt.s32.totalorder %s867_s23, 17  ;;  %s3237_s14 = sadd.s32 %s3840_s29, %s3812_s19 }
  0xdf   : > { %v1182_v4 = vsel %vm1178_vm5, %v1176_v56, %v1180_v37  ;;  %v1340_v63 = vpop.f32.mrf.mxu1  ;;  %v1395_v14 = vpop.f32.mrf.mxu3  ;;  %v1276_v26 = vadd.f32 %v1272_v51, %v1249_v19  ;;  %v4751_v56 = vpack.c.b16 %v2652_v45, %v2652_v45  ;;  %v2660_v37 = vrot.slane %v2658_v57, 1  ;;  %v3785_v57 = vld [vmem:[%s4990_s10 + $0x4] sm:$0x3]  ;;  %s3813_s28 = sshll.u32 %s3237_s14, 2  ;;  %s3994_s14 = scalar_lea.hbm %s5021_s15, 256 }
  0xe0   : > { %v3844_v7 = vpack.c.bf16 %v1182_v4, %v1181_v3  ;;  %v1301_v8 = vpop.f32.mrf.mxu0  ;;  %v2569_v44 = vpack.c.b16 %v2568_v39, %v2568_v39  ;;  %v2839_v40 = vsel %vm913_vm0, %v3766_v23, 0  ;;  %s5057_s23 = smov (!%p4847_p10, %s867_s23), 17  ;;  %s3239_s16 = scalar_lea.hbm %s5021_s15, %s3813_s28 }
  0xe1   : > { %3722 = vmatmul.msk.bf16.vlgmr.msrb.gmra.mxu2 %vm909_vm1, %v4626_v2  ;;  %v1306_v16 = vadd.f32 %v1301_v8, %v1275_v13  ;;  %v3756_v2 = vld [vmem:[%s4990_s10 + $0x6] sm:$0x3]  ;;  %v2663_v1 = vshll.u32 %v4751_v56, 16  ;;  %v2661_v13 = vor.u32 %v2660_v37, %v2656_v0  ;;  %v3793_v0 = vld [vmem:[%s4990_s10 + $0x8] sm:$0x3]  ;;  %v3005_v37 = vsel %vm913_vm0, %v3785_v57, 0 }
  0xe2   : > { %3845 = vst [vmem:[%s4704_s12] sm:$0xff] %v3844_v7   ;;  %2680 = vmatpush.bf16.msrb.mxu2 %v2671_v6  ;;  %v2745_v29 = vsel %vm913_vm0, %v3756_v2, 0  ;;  %v2605_v24 = vrot.slane %v2569_v44, 1  ;;  %v2570_v6 = vshrl.u32 %v4724_v30, 16  ;;  %v2574_v7 = vrot.slane %v2572_v61, 1  ;;  %v2734_v2 = vld [vmem:[%s4715_s13 + $0x8] sm:$0x1] }
  0xe3   : > { %3713 = vmatmul.msk.bf16.vlgmr.msrb.gmra.mxu0 %vm909_vm1, %v2315_v5  ;;  %v1343_v20 = vadd.f32 %v1338_v46, %v1306_v16  ;;  %v3754_v46 = vld [vmem:[%s4990_s10 + $0x4] sm:$0x3]  ;;  %v2577_v8 = vshll.u32 %v2569_v44, 16  ;;  %s3898_s18 = smul.u32 3, %s5057_s23  ;;  %s3225_s23 = scalar_lea.sflag [#allocation3], %s748_s27 }
  0xe4   : > { %v1364_v12 = vpop.f32.mrf.mxu2  ;;  %2594 = vmatpush.bf16.msrb.mxu0 %v2585_v15  ;;  %v2714_v55 = vsel %vm913_vm0, %v3754_v46, 0  ;;  %v2606_v5 = vsel %vm952_vm2, %v2604_v60, %v2605_v24  ;;  %v3772_v15 = vld [vmem:[%s4990_s10 + $0xe] sm:$0x3]  ;;  %v2575_v18 = vor.u32 %v2574_v7, %v2570_v6  ;;  %v4807_v60 = vld [vmem:[%s4797_s17] sm:$0xff] }
  0xe5   : > { %v1369_v33 = vadd.f32 %v1364_v12, %v1343_v20  ;;  %v2876_v12 = vsel %vm913_vm0, %v3772_v15, 0  ;;  %v2579_v19 = vrot.slane %v2577_v8, 1  ;;  %v3774_v20 = vld [vmem:[%s4990_s10 + $0x10] sm:$0x3]  ;;  %v2707_v8 = vrot.slane %v4739_v43, 1 }
  0xe7   : > { %v1458_v22 = vpop.f32.mrf.mxu1  ;;  %v1397_v27 = vpop.f32.mrf.mxu3  ;;  %v1400_v49 = vadd.f32 %v1395_v14, %v1369_v33  ;;  %v2665_v14 = vrot.slane %v2663_v1, 1  ;;  %v2580_v33 = vsel %vm896_vm3, %v2575_v18, %v2579_v19 }
  0xe8   : > { %v1303_v21 = vpop.f32.mrf.mxu0 }
  0xe9   : > { %v1307_v35 = vadd.f32 %v1303_v21, %v1276_v26  ;;  %v2962_v21 = vsel %vm913_vm0, %v3778_v11, 0  ;;  %v2666_v26 = vsel %vm896_vm3, %v2661_v13, %v2665_v14  ;;  %v2863_v11 = vshll.u32 %v4807_v60, 16  ;;  %v3787_v13 = vld [vmem:[%s4990_s10 + $0x6] sm:$0x3] }
  0xea   : > { %3732 = vmatmul.msk.bf16.vlgmr.msra.gmra.mxu1 %vm909_vm1, %v2486_v25  ;;  %v3073_v14 = vsel %vm913_vm0, %v3793_v0, 0  ;;  %v3036_v18 = vsel %vm913_vm0, %v3787_v13, 0 }
  0xeb   : > { %2754 = vmatpush.bf16.msra.mxu1 %v2745_v29  ;;  %v1344_v47 = vadd.f32 %v1340_v63, %v1307_v35  ;;  %v2765_v29 = vunpack.c.l.b16 %v2734_v2 }
  0xec   : > { %v1366_v38 = vpop.f32.mrf.mxu2  ;;  %3740 = vmatmul.msk.bf16.vlgmr.msra.gmra.mxu3 %vm909_vm1, %v4724_v30  ;;  %v2902_v30 = vsel %vm913_vm0, %v3774_v20, 0 }
  0xed   : > { %2817 = vmatpush.bf16.msra.mxu3 %v2808_v41  ;;  %v1370_v58 = vadd.f32 %v1366_v38, %v1344_v47  ;;  %v2766_v46 = vpack.c.b16 %v2765_v29, %v2765_v29 }
  0xef   : > { %v1460_v52 = vpop.f32.mrf.mxu1  ;;  %v1537_v54 = vpop.f32.mrf.mxu3  ;;  %v1401_v3 = vadd.f32 %v1397_v27, %v1370_v58  ;;  %v3835_v27 = vld [vmem:[%s4715_s13] sm:$0xff] }
  0xf0   : > { %v1432_v51 = vpop.f32.mrf.mxu0 }
  0xf1   : > { %v1437_v53 = vadd.f32 %v1432_v51, %v1400_v49  ;;  %3734 = vmatmul.msk.bf16.vlgmr.msra.gmra.mxu2 %vm909_vm1, %v2512_v42  ;;  %v2769_v42 = vshll.u32 %v3835_v27, 16  ;;  %v2828_v49 = vld [vmem:[%s4797_s17 + $0x8] sm:$0x1] }
  0xf2   : > { %2791 = vmatpush.bf16.msra.mxu2 %v2782_v50  ;;  %v2767_v50 = vshrl.u32 %v3835_v27, 16  ;;  %v2859_v24 = vunpack.c.l.b16 %v2828_v49 }
  0xf3   : > { %3730 = vmatmul.msk.bf16.vlgmr.msra.gmra.mxu0 %vm909_vm1, %v4665_v48  ;;  %v1463_v62 = vadd.f32 %v1458_v22, %v1437_v53  ;;  %v2771_v51 = vrot.slane %v2769_v42, 1  ;;  %v2801_v53 = vrot.slane %v3835_v27, 1 }
  0xf4   : > { %v1518_v59 = vpop.f32.mrf.mxu2  ;;  %2723 = vmatpush.bf16.msra.mxu0 %v2714_v55  ;;  %v2935_v55 = vld [vmem:[%s4715_s13 + $0x8] sm:$0x1] }
  0xf5   : > { %v1465_v63 = vadd.f32 %v4656_v34, %v1463_v62  ;;  %v1538_v36 = vadd.f32 %v1537_v54, %v1518_v59  ;;  %v2802_v54 = vrot.slane %v2766_v46, 1  ;;  %v2772_v1 = vor.u32 %v2771_v51, %v2767_v50  ;;  %v3805_v51 = vld [vmem:[%s4990_s10 + $0x10] sm:$0x3] }
  0xf6   : > { %v3193_v0 = vsel %vm913_vm0, %v3805_v51, 0 }
  0xf7   : > { %v1592_v48 = vpop.f32.mrf.mxu1  ;;  %v1539_v10 = vpop.f32.mrf.mxu3  ;;  %v1469_v22 = vmul.f32 0.2, %v1465_v63  ;;  %vm1467_vm6 = vcmp.ge.f32.partialorder %v1465_v63, 0.0  ;;  %v2803_v7 = vsel %vm952_vm2, %v2801_v53, %v2802_v54  ;;  %v4860_v54 = vld [vmem:[%s4797_s17] sm:$0xff] }
  0xf8   : > { %v1434_v4 = vpop.f32.mrf.mxu0 }
  0xf9   : > { %v1438_v9 = vadd.f32 %v1434_v4, %v1401_v3  ;;  %v1471_v35 = vsel %vm1467_vm6, %v1465_v63, %v1469_v22  ;;  %v4814_v4 = vld [vmem:[%s4715_s13] sm:$0xff]  ;;  %v2865_v22 = vrot.slane %v2863_v11, 1  ;;  %s874_s13 = sadd.s32 %s3898_s18, %s4239_s21 }
  0xfa   : > { %3744 = vmatmul.msk.bf16.vlgmr.msrb.gmra.mxu1 %vm909_vm1, %v2606_v5  ;;  %s3562_s20 = sshll.u32 %s874_s13, 2  ;;  %s3240_s13 = sshll.u32 %s4704_s12, 4  ;;  %s3241_s13 = int_to_ptr.vmem [resolvable:$true] %s3240_s13 }
  0xfb   : > { %v1464_v16 = vadd.f32 %v1460_v52, %v1438_v9  ;;  %2885 = vmatpush.bf16.msrb.mxu1 %v2876_v12  ;;  %v2774_v52 = vshll.u32 %v2766_v46, 16  ;;  %v2708_v9 = vrot.slane %v4751_v56, 1  ;;  %v2936_v56 = vld [vmem:[%s4990_s10] sm:$0x3]  ;;  %s876_s21 = scalar_lea.vmem %s4989_s9, %s3562_s20  ;;  %s3242_s20 = sshll.u32 %s3239_s16, 4  ;;  %s3243_s20 = int_to_ptr.hbm [resolvable:$true] %s3242_s20 }
  0xfc   : > { %v1520_v17 = vpop.f32.mrf.mxu2  ;;  %3753 = vmatmul.msk.bf16.vlgmr.msrb.gmra.mxu3 %vm909_vm1, %v4739_v43  ;;  %v2949_v43 = vshll.u32 %v4814_v4, 16  ;;  %v2981_v23 = vsel %vm913_vm0, %v2936_v56, 0  ;;  %s3988_s30 = sshra.s32 %s3243_s20, 4  ;;  %s3989_s30 = int_to_ptr.hbm [resolvable:$true] %s3988_s30 }
  0xfd   : > { %v1466_v25 = vadd.f32 %v4656_v34, %v1464_v16  ;;  %2971 = vmatpush.bf16.msrb.mxu3 %v2962_v21  ;;  %v1540_v61 = vadd.f32 %v1539_v10, %v1520_v17  ;;  %v2776_v3 = vrot.slane %v2774_v52, 1  ;;  %v4820_v10 = vpack.c.b16 %v2859_v24, %v2859_v24  ;;  %p3995_p0 = scmp.lt.s32.totalorder %s3989_s30, %s5021_s15 }
  0xfe   : > { %v2709_v20 = vsel %vm952_vm2, %v2707_v8, %v2708_v9  ;;  %v2861_v21 = vshrl.u32 %v4807_v60, 16  ;;  %v2951_v29 = vrot.slane %v2949_v43, 1 }
  0xff   : > { %vm1468_vm7 = vcmp.ge.f32.partialorder %v1466_v25, 0.0  ;;  %v1470_v28 = vmul.f32 0.2, %v1466_v25  ;;  %v1594_v32 = vpop.f32.mrf.mxu1  ;;  %v1655_v39 = vpop.f32.mrf.mxu3  ;;  %v2777_v15 = vsel %vm896_vm3, %v2772_v1, %v2776_v3  ;;  %v2896_v53 = vrot.slane %v4820_v10, 1 }
 0x100   : > { %v1561_v31 = vpop.f32.mrf.mxu0  ;;  %v3060_v3 = vshll.u32 %v4860_v54, 16 }
 0x101   : > { %v1472_v38 = vsel %vm1468_vm7, %v1466_v25, %v1470_v28  ;;  %3752 = vmatmul.msk.bf16.vlgmr.msrb.gmra.mxu2 %vm909_vm1, %v2666_v26  ;;  %v1566_v45 = vadd.f32 %v1561_v31, %v1538_v36  ;;  %v2868_v25 = vshll.u32 %v4820_v10, 16  ;;  %v2947_v28 = vshrl.u32 %v4814_v4, 16 }
 0x102   : > { %v3849_v41 = vpack.c.bf16 %v1472_v38, %v1471_v35  ;;  %2911 = vmatpush.bf16.msrb.mxu2 %v2902_v30  ;;  %v2866_v35 = vor.u32 %v2865_v22, %v2861_v21 }
 0x103   : > { %3742 = vmatmul.msk.bf16.vlgmr.msrb.gmra.mxu0 %vm909_vm1, %v2580_v33  ;;  %v1597_v44 = vadd.f32 %v1592_v48, %v1566_v45  ;;  %v2943_v48 = vunpack.c.l.b16 %v2935_v55  ;;  %v2870_v36 = vrot.slane %v2868_v25, 1  ;;  %v2952_v38 = vor.u32 %v2951_v29, %v2947_v28  ;;  %v3797_v55 = vld [vmem:[%s4990_s10 + $0xc] sm:$0x3] }
 0x104   : > { %3881 = vst [vmem:[%s4704_s12 + $0x8] sm:$0xff] %v3849_v41   ;;  %v1629_v47 = vpop.f32.mrf.mxu2  ;;  %2848 = vmatpush.bf16.msrb.mxu0 %v2839_v40  ;;  %v3130_v24 = vsel %vm913_vm0, %v3797_v55, 0 }
 0x105   : > { %v1634_v5 = vadd.f32 %v1629_v47, %v1597_v44  ;;  %v4829_v16 = vpack.c.b16 %v2943_v48, %v2943_v48  ;;  %v2871_v46 = vsel %vm896_vm3, %v2866_v35, %v2870_v36  ;;  %v3025_v47 = vld [vmem:[%s4797_s17 + $0x8] sm:$0x1]  ;;  %v2895_v44 = vrot.slane %v4807_v60, 1  ;;  %v3795_v48 = vld [vmem:[%s4990_s10 + $0xa] sm:$0x3] }
 0x106   : > { %v3099_v13 = vsel %vm913_vm0, %v3795_v48, 0  ;;  %v3092_v48 = vrot.slane %v4860_v54, 1 }
 0x107   : > { %v1723_v59 = vpop.f32.mrf.mxu1  ;;  %v1657_v62 = vpop.f32.mrf.mxu3  ;;  %v1660_v17 = vadd.f32 %v1655_v39, %v1634_v5  ;;  %v2954_v30 = vshll.u32 %v4829_v16, 16  ;;  %v2897_v1 = vsel %vm952_vm2, %v2895_v44, %v2896_v53 }
 0x108   : > { %v1563_v58 = vpop.f32.mrf.mxu0 }
 0x109   : > { %v1567_v6 = vadd.f32 %v1563_v58, %v1540_v61  ;;  %v2956_v39 = vrot.slane %v2954_v30, 1 }
 0x10a   : > { %3761 = vmatmul.msk.bf16.vlgmr.msra.gmra.mxu1 %vm909_vm1, %v3835_v27 }
 0x10b   : > { %3014 = vmatpush.bf16.msra.mxu1 %v3005_v37  ;;  %v1598_v12 = vadd.f32 %v1594_v32, %v1567_v6  ;;  %v2957_v52 = vsel %vm896_vm3, %v2952_v38, %v2956_v39 }
 0x10c   : > { %v1631_v63 = vpop.f32.mrf.mxu2  ;;  %3765 = vmatmul.msk.bf16.vlgmr.msra.gmra.mxu3 %vm909_vm1, %v2803_v7 }
 0x10d   : > { %3082 = vmatpush.bf16.msra.mxu3 %v3073_v14  ;;  %v1635_v31 = vadd.f32 %v1631_v63, %v1598_v12  ;;  %v3058_v14 = vshrl.u32 %v4860_v54, 16 }
 0x10f   : > { %v1725_v2 = vpop.f32.mrf.mxu1  ;;  %v4839_v27 = vpop.f32.mrf.mxu3  ;;  %v1661_v41 = vadd.f32 %v1657_v62, %v1635_v31  ;;  %v3803_v62 = vld [vmem:[%s4990_s10 + $0xe] sm:$0x3]  ;;  %v3119_v31 = vld [vmem:[%s876_s21 + $0x8] sm:$0x1] }
 0x110   : > { %v1686_v19 = vpop.f32.mrf.mxu0  ;;  %v3167_v8 = vsel %vm913_vm0, %v3803_v62, 0  ;;  %v3150_v36 = vunpack.c.l.b16 %v3119_v31 }
 0x111   : > { %v1691_v26 = vadd.f32 %v1686_v19, %v1660_v17  ;;  %3763 = vmatmul.msk.bf16.vlgmr.msra.gmra.mxu2 %vm909_vm1, %v2777_v15  ;;  %v3062_v15 = vrot.slane %v3060_v3, 1 }
 0x112   : > { %3045 = vmatpush.bf16.msra.mxu2 %v3036_v18 }
 0x113   : > { %3755 = vmatmul.msk.bf16.vlgmr.msra.gmra.mxu0 %vm909_vm1, %v2709_v20  ;;  %v1728_v32 = vadd.f32 %v1723_v59, %v1691_v26  ;;  %v3056_v59 = vunpack.c.l.b16 %v3025_v47  ;;  %v2999_v20 = vrot.slane %v4829_v16, 1  ;;  %v3063_v22 = vor.u32 %v3062_v15, %v3058_v14 }
 0x114   : > { %v1749_v33 = vpop.f32.mrf.mxu2  ;;  %2990 = vmatpush.bf16.msra.mxu0 %v2981_v23  ;;  %v3151_v47 = vpack.c.b16 %v3150_v36, %v3150_v36 }
 0x115   : > { %v1754_v40 = vadd.f32 %v1749_v33, %v1728_v32  ;;  %v4883_v7 = vpack.c.b16 %v3056_v59, %v3056_v59  ;;  %v3839_v32 = vld [vmem:[%s876_s21] sm:$0xff]  ;;  %s3990_s21 = scalar_lea.hbm %s3989_s30, 64 }
 0x116   : > { %v3152_v51 = vshrl.u32 %v3839_v32, 16  ;;  %v3159_v44 = vshll.u32 %v3151_v47, 16  ;;  %v3186_v55 = vrot.slane %v3839_v32, 1  ;;  %p3991_p11 = scmp.ne.s32.totalorder %s3989_s30, %s3990_s21  ;;  %p3996_p1 = scmp.lt.s32.totalorder %s3994_s14, %s3990_s21 }
 0x117   : > { %v1852_v45 = vpop.f32.mrf.mxu1  ;;  %v1811_v50 = vpop.f32.mrf.mxu3  ;;  %v1756_v57 = vadd.f32 %v4656_v34, %v1754_v40  ;;  %v3065_v17 = vshll.u32 %v4883_v7, 16 }
 0x118   : > { %v1688_v42 = vpop.f32.mrf.mxu0  ;;  %p3992_p12 = pnand %p3991_p11, %p4188_p3  ;;  %p3997_p2 = por %p3996_p1, %p3995_p0 }
 0x119   : > { %v1692_v49 = vadd.f32 %v1688_v42, %v1661_v41  ;;  %v1760_v5 = vmul.f32 0.2, %v1756_v57  ;;  %vm1758_vm8 = vcmp.ge.f32.partialorder %v1756_v57, 0.0  ;;  %v3067_v25 = vrot.slane %v3065_v17, 1 }
 0x11a   : > { %3773 = vmatmul.msk.bf16.vlgmr.msrb.gmra.mxu1 %vm909_vm1, %v2871_v46  ;;  %v3154_v42 = vshll.u32 %v3839_v32, 16  ;;  %p3993_p13 = pneg %p3992_p12 }
 0x11b   : > { %v1729_v58 = vadd.f32 %v1725_v2, %v1692_v49  ;;  %3139 = vmatpush.bf16.msrb.mxu1 %v3130_v24  ;;  %v1762_v43 = vsel %vm1758_vm8, %v1756_v57, %v1760_v5  ;;  %v2998_v2 = vrot.slane %v4814_v4, 1  ;;  %v3068_v16 = vsel %vm896_vm3, %v3063_v22, %v3067_v25 }
 0x11c   : > { %v1751_v61 = vpop.f32.mrf.mxu2  ;;  %3783 = vmatmul.msk.bf16.vlgmr.msrb.gmra.mxu3 %vm909_vm1, %v2957_v52  ;;  %v3156_v52 = vrot.slane %v3154_v42, 1  ;;  %v3187_v57 = vrot.slane %v3151_v47, 1  ;;  %v3093_v5 = vrot.slane %v4883_v7, 1  ;;  %p3998_p4 = pnand %p3997_p2, %p3993_p13 }
 0x11d   : > { %v1755_v37 = vadd.f32 %v1751_v61, %v1729_v58  ;;  %3202 = vmatpush.bf16.msrb.mxu3 %v3193_v0  ;;  %v3000_v23 = vsel %vm952_vm2, %v2998_v2, %v2999_v20 }
 0x11e   : > { %v3157_v0 = vor.u32 %v3156_v52, %v3152_v51 }
 0x11f   : > { %v1757_v6 = vadd.f32 %v4656_v34, %v1755_v37  ;;  %v1854_v9 = vpop.f32.mrf.mxu1  ;;  %v1920_v11 = vpop.f32.mrf.mxu3  ;;  %v3161_v37 = vrot.slane %v3159_v44, 1 }
 0x120   : > { %v1828_v63 = vpop.f32.mrf.mxu0 }
 0x121   : > { %vm1759_vm9 = vcmp.ge.f32.partialorder %v1757_v6, 0.0  ;;  %v1761_v10 = vmul.f32 0.2, %v1757_v6  ;;  %3775 = vmatmul.msk.bf16.vlgmr.msrb.gmra.mxu2 %vm909_vm1, %v2897_v1  ;;  %v1829_v12 = vadd.f32 %v1828_v63, %v4839_v27  ;;  %v3162_v63 = vsel %vm896_vm3, %v3157_v0, %v3161_v37 }
 0x122   : > { %3176 = vmatpush.bf16.msrb.mxu2 %v3167_v8 }
 0x123   : > { %v1763_v56 = vsel %vm1759_vm9, %v1757_v6, %v1761_v10  ;;  %3771 = vmatmul.msk.bf16.vlgmr.msrb.gmra.mxu0 %vm909_vm1, %v4807_v60  ;;  %v1857_v21 = vadd.f32 %v1852_v45, %v1829_v12 }
 0x124   : > { %v3854_v18 = vpack.c.bf16 %v1763_v56, %v1762_v43  ;;  %v1883_v19 = vpop.f32.mrf.mxu2  ;;  %3108 = vmatpush.bf16.msrb.mxu0 %v3099_v13  ;;  %v3094_v13 = vsel %vm952_vm2, %v3092_v48, %v3093_v5 }
 0x125   : > { %v1888_v28 = vadd.f32 %v1883_v19, %v1857_v21 }
 0x126   : > { %3882 = vst [vmem:[%s4704_s12 + $0x10] sm:$0xff] %v3854_v18  }
 0x127   : > { %v1977_v27 = vpop.f32.mrf.mxu1  ;;  %v1922_v60 = vpop.f32.mrf.mxu3  ;;  %v1925_v35 = vadd.f32 %v1920_v11, %v1888_v28 }
 0x128   : > { %v1830_v26 = vpop.f32.mrf.mxu0 }
 0x129   : > { %v1831_v29 = vadd.f32 %v1830_v26, %v1811_v50 }
 0x12a   : > { %3786 = vmatmul.msk.bf16.vlgmr.msra.gmra.mxu1 %vm909_vm1, %v3000_v23 }
 0x12b   : > { %v1858_v33 = vadd.f32 %v1854_v9, %v1831_v29 }
 0x12c   : > { %v1885_v30 = vpop.f32.mrf.mxu2  ;;  %3794 = vmatmul.msk.bf16.vlgmr.msra.gmra.mxu3 %vm909_vm1, %v3068_v16 }
 0x12d   : > { %v1889_v45 = vadd.f32 %v1885_v30, %v1858_v33 }
 0x12f   : > { %v1979_v39 = vpop.f32.mrf.mxu1  ;;  %v2040_v41 = vpop.f32.mrf.mxu3  ;;  %v1926_v53 = vadd.f32 %v1922_v60, %v1889_v45 }
 0x130   : > { %v1946_v38 = vpop.f32.mrf.mxu0 }
 0x131   : > { %v1951_v40 = vadd.f32 %v1946_v38, %v1925_v35  ;;  %3792 = vmatmul.msk.bf16.vlgmr.msra.gmra.mxu2 %vm909_vm1, %v4860_v54 }
 0x133   : > { %3784 = vmatmul.msk.bf16.vlgmr.msra.gmra.mxu0 %vm909_vm1, %v4814_v4  ;;  %v1982_v46 = vadd.f32 %v1977_v27, %v1951_v40  ;;  %v3188_v4 = vsel %vm952_vm2, %v3186_v55, %v3187_v57 }
 0x134   : > { %v2014_v49 = vpop.f32.mrf.mxu2 }
 0x135   : > { %v2019_v50 = vadd.f32 %v2014_v49, %v1982_v46 }
 0x137   : > { %v2119_v59 = vpop.f32.mrf.mxu1  ;;  %v2045_v24 = vadd.f32 %v2040_v41, %v2019_v50  ;;  %v2042_v62 = vpop.f32.mrf.mxu3 }
 0x138   : > { %v1948_v58 = vpop.f32.mrf.mxu0 }
 0x139   : > { %v1952_v61 = vadd.f32 %v1948_v58, %v1926_v53  ;;  %v2047_v6 = vadd.f32 %v4656_v34, %v2045_v24 }
 0x13a   : > { %3802 = vmatmul.msk.bf16.vlgmr.msrb.gmra.mxu1 %vm909_vm1, %v3839_v32 }
 0x13b   : > { %v1983_v1 = vadd.f32 %v1979_v39, %v1952_v61  ;;  %v2051_v14 = vmul.f32 0.2, %v2047_v6  ;;  %vm2049_vm10 = vcmp.ge.f32.partialorder %v2047_v6, 0.0 }
 0x13c   : > { %v2016_v3 = vpop.f32.mrf.mxu2  ;;  %3806 = vmatmul.msk.bf16.vlgmr.msrb.gmra.mxu3 %vm909_vm1, %v3188_v4 }
 0x13d   : > { %v2020_v8 = vadd.f32 %v2016_v3, %v1983_v1  ;;  %v2053_v56 = vsel %vm2049_vm10, %v2047_v6, %v2051_v14 }
 0x13f   : > { %v2046_v9 = vadd.f32 %v2042_v62, %v2020_v8  ;;  %v2121_v11 = vpop.f32.mrf.mxu1  ;;  %v2174_v43 = vpop.f32.mrf.mxu3 }
 0x140   : > { %v2100_v10 = vpop.f32.mrf.mxu0 }
 0x141   : > { %v2048_v15 = vadd.f32 %v4656_v34, %v2046_v9  ;;  %3804 = vmatmul.msk.bf16.vlgmr.msrb.gmra.mxu2 %vm909_vm1, %v3162_v63  ;;  %v2120_v21 = vadd.f32 %v2119_v59, %v2100_v10 }
 0x143   : > { %vm2050_vm11 = vcmp.ge.f32.partialorder %v2048_v15, 0.0  ;;  %v2052_v54 = vmul.f32 0.2, %v2048_v15  ;;  %3796 = vmatmul.msk.bf16.vlgmr.msrb.gmra.mxu0 %vm909_vm1, %v3094_v13 }
 0x144   : > { %v2143_v7 = vpop.f32.mrf.mxu2 }
 0x145   : > { %v2054_v12 = vsel %vm2050_vm11, %v2048_v15, %v2052_v54  ;;  %v2148_v22 = vadd.f32 %v2143_v7, %v2120_v21 }
 0x146   : > { %v3859_v17 = vpack.c.bf16 %v2054_v12, %v2053_v56 }
 0x147   : > { %v2237_v19 = vpop.f32.mrf.mxu1  ;;  %v2176_v2 = vpop.f32.mrf.mxu3  ;;  %v2179_v60 = vadd.f32 %v2174_v43, %v2148_v22 }
 0x148   : > { %3883 = vst [vmem:[%s4704_s12 + $0x18] sm:$0xff] %v3859_v17   ;;  %v2102_v18 = vpop.f32.mrf.mxu0 }
 0x149   : > { %v2122_v23 = vadd.f32 %v2121_v11, %v2102_v18 }
 0x14c   : > { %v2145_v20 = vpop.f32.mrf.mxu2 }
 0x14d   : > { %v2149_v29 = vadd.f32 %v2145_v20, %v2122_v23 }
 0x14f   : > { %v2239_v26 = vpop.f32.mrf.mxu1  ;;  %v2305_v27 = vpop.f32.mrf.mxu3  ;;  %v2180_v33 = vadd.f32 %v2176_v2, %v2149_v29 }
 0x150   : > { %v2211_v25 = vpop.f32.mrf.mxu0 }
 0x151   : > { %v2216_v16 = vadd.f32 %v2211_v25, %v2179_v60 }
 0x153   : > { %v2242_v32 = vadd.f32 %v2237_v19, %v2216_v16 }
 0x154   : > { %v2268_v28 = vpop.f32.mrf.mxu2 }
 0x155   : > { %v2273_v39 = vadd.f32 %v2268_v28, %v2242_v32 }
 0x157   : > { %v2391_v31 = vpop.f32.mrf.mxu1  ;;  %v2307_v35 = vpop.f32.mrf.mxu3  ;;  %v2310_v45 = vadd.f32 %v2305_v27, %v2273_v39 }
 0x158   : > { %v2213_v30 = vpop.f32.mrf.mxu0 }
 0x159   : > { %v2217_v36 = vadd.f32 %v2213_v30, %v2180_v33 }
 0x15b   : > { %v2243_v40 = vadd.f32 %v2239_v26, %v2217_v36 }
 0x15c   : > { %v2270_v38 = vpop.f32.mrf.mxu2 }
 0x15d   : > { %v2274_v47 = vadd.f32 %v2270_v38, %v2243_v40 }
 0x15f   : > { %v2393_v42 = vpop.f32.mrf.mxu1  ;;  %v2434_v46 = vpop.f32.mrf.mxu3  ;;  %v2311_v52 = vadd.f32 %v2307_v35, %v2274_v47 }
 0x160   : > { %v2331_v41 = vpop.f32.mrf.mxu0 }
 0x161   : > { %v2336_v49 = vadd.f32 %v2331_v41, %v2310_v45 }
 0x163   : > { %v2338_v51 = vadd.f32 %v4656_v34, %v2336_v49 }
 0x164   : > { %v2410_v50 = vpop.f32.mrf.mxu2 }
 0x165   : > { %v2342_v58 = vmul.f32 0.2, %v2338_v51  ;;  %vm2340_vm12 = vcmp.ge.f32.partialorder %v2338_v51, 0.0  ;;  %v2411_v61 = vadd.f32 %v2410_v50, %v2391_v31 }
 0x167   : > { %v2502_v53 = vpop.f32.mrf.mxu1  ;;  %v2436_v57 = vpop.f32.mrf.mxu3  ;;  %v2344_v0 = vsel %vm2340_vm12, %v2338_v51, %v2342_v58  ;;  %v2439_v48 = vadd.f32 %v2434_v46, %v2411_v61 }
 0x168   : > { %v2333_v44 = vpop.f32.mrf.mxu0 }
 0x169   : > { %v2337_v55 = vadd.f32 %v2333_v44, %v2311_v52 }
 0x16b   : > { %v2339_v59 = vadd.f32 %v4656_v34, %v2337_v55 }
 0x16c   : > { %v2412_v24 = vpop.f32.mrf.mxu2 }
 0x16d   : > { %vm2341_vm13 = vcmp.ge.f32.partialorder %v2339_v59, 0.0  ;;  %v2343_v62 = vmul.f32 0.2, %v2339_v59  ;;  %v2413_v63 = vadd.f32 %v2412_v24, %v2393_v42 }
 0x16f   : > { %v2345_v37 = vsel %vm2341_vm13, %v2339_v59, %v2343_v62  ;;  %v2504_v3 = vpop.f32.mrf.mxu1  ;;  %v2559_v5 = vpop.f32.mrf.mxu3  ;;  %v2440_v13 = vadd.f32 %v2436_v57, %v2413_v63 }
 0x170   : > { %v3864_v1 = vpack.c.bf16 %v2345_v37, %v2344_v0  ;;  %v2465_v4 = vpop.f32.mrf.mxu0 }
 0x171   : > { %v2470_v6 = vadd.f32 %v2465_v4, %v2439_v48 }
 0x172   : > { %3884 = vst [vmem:[%s4704_s12 + $0x20] sm:$0xff] %v3864_v1  }
 0x173   : > { %v2507_v9 = vadd.f32 %v2502_v53, %v2470_v6 }
 0x174   : > { %v2528_v8 = vpop.f32.mrf.mxu2 }
 0x175   : > { %v2533_v15 = vadd.f32 %v2528_v8, %v2507_v9 }
 0x177   : > { %v2622_v11 = vpop.f32.mrf.mxu1  ;;  %v2561_v14 = vpop.f32.mrf.mxu3  ;;  %v2564_v56 = vadd.f32 %v2559_v5, %v2533_v15 }
 0x178   : > { %v2467_v10 = vpop.f32.mrf.mxu0 }
 0x179   : > { %v2471_v43 = vadd.f32 %v2467_v10, %v2440_v13 }
 0x17b   : > { %v2508_v7 = vadd.f32 %v2504_v3, %v2471_v43 }
 0x17c   : > { %v2530_v54 = vpop.f32.mrf.mxu2 }
 0x17d   : > { %v2534_v2 = vadd.f32 %v2530_v54, %v2508_v7 }
 0x17f   : > { %v2624_v17 = vpop.f32.mrf.mxu1  ;;  %v2701_v19 = vpop.f32.mrf.mxu3  ;;  %v2565_v22 = vadd.f32 %v2561_v14, %v2534_v2 }
 0x180   : > { %v2596_v12 = vpop.f32.mrf.mxu0 }
 0x181   : > { %v2601_v18 = vadd.f32 %v2596_v12, %v2564_v56 }
 0x183   : > { %v2627_v21 = vadd.f32 %v2622_v11, %v2601_v18 }
 0x184   : > { %v2682_v20 = vpop.f32.mrf.mxu2 }
 0x185   : > { %v2629_v27 = vadd.f32 %v4656_v34, %v2627_v21  ;;  %v2702_v36 = vadd.f32 %v2701_v19, %v2682_v20 }
 0x187   : > { %v2756_v26 = vpop.f32.mrf.mxu1  ;;  %v2703_v60 = vpop.f32.mrf.mxu3  ;;  %v2633_v16 = vmul.f32 0.2, %v2629_v27  ;;  %vm2631_vm14 = vcmp.ge.f32.partialorder %v2629_v27, 0.0 }
 0x188   : > { %v2598_v25 = vpop.f32.mrf.mxu0 }
 0x189   : > { %v2602_v23 = vadd.f32 %v2598_v25, %v2565_v22  ;;  %v2635_v35 = vsel %vm2631_vm14, %v2629_v27, %v2633_v16 }
 0x18b   : > { %v2628_v28 = vadd.f32 %v2624_v17, %v2602_v23 }
 0x18c   : > { %v2684_v29 = vpop.f32.mrf.mxu2 }
 0x18d   : > { %v2630_v30 = vadd.f32 %v4656_v34, %v2628_v28  ;;  %v2704_v49 = vadd.f32 %v2703_v60, %v2684_v29 }
 0x18f   : > { %vm2632_vm15 = vcmp.ge.f32.partialorder %v2630_v30, 0.0  ;;  %v2634_v31 = vmul.f32 0.2, %v2630_v30  ;;  %v2758_v33 = vpop.f32.mrf.mxu1  ;;  %v2819_v39 = vpop.f32.mrf.mxu3 }
 0x190   : > { %v2725_v32 = vpop.f32.mrf.mxu0 }
 0x191   : > { %v2636_v38 = vsel %vm2632_vm15, %v2630_v30, %v2634_v31  ;;  %v2730_v41 = vadd.f32 %v2725_v32, %v2702_v36 }
 0x192   : > { %v3869_v40 = vpack.c.bf16 %v2636_v38, %v2635_v35 }
 0x193   : > { %v2761_v45 = vadd.f32 %v2756_v26, %v2730_v41 }
 0x194   : > { %3885 = vst [vmem:[%s4704_s12 + $0x28] sm:$0xff] %v3869_v40   ;;  %v2793_v42 = vpop.f32.mrf.mxu2  ;;  %v3973_v40 = vld [vmem:[%s4991_s11] ss:$0 sm:$0xff] }
 0x195   : > { %v2798_v51 = vadd.f32 %v2793_v42, %v2761_v45 }
 0x197   : > { %v2887_v47 = vpop.f32.mrf.mxu1  ;;  %v2821_v50 = vpop.f32.mrf.mxu3  ;;  %v2824_v55 = vadd.f32 %v2819_v39, %v2798_v51 }
 0x198   : > { %v2727_v46 = vpop.f32.mrf.mxu0 }
 0x199   : > { %v2731_v52 = vadd.f32 %v2727_v46, %v2704_v49 }
 0x19b   : > { %v2762_v53 = vadd.f32 %v2758_v33, %v2731_v52 }
 0x19c   : > { %v2795_v44 = vpop.f32.mrf.mxu2 }
 0x19d   : > { %v2799_v61 = vadd.f32 %v2795_v44, %v2762_v53 }
 0x19f   : > { %v2973_v59 = vpop.f32.mrf.mxu3  ;;  %v2889_v24 = vpop.f32.mrf.mxu1  ;;  %v2825_v1 = vadd.f32 %v2821_v50, %v2799_v61 }
 0x1a0   : > { %v2850_v57 = vpop.f32.mrf.mxu0 }
 0x1a1   : > { %v2855_v58 = vadd.f32 %v2850_v57, %v2824_v55 }
 0x1a3   : > { %v2892_v62 = vadd.f32 %v2887_v47, %v2855_v58 }
 0x1a4   : > { %v2913_v0 = vpop.f32.mrf.mxu2 }
 0x1a5   : > { %v2918_v37 = vadd.f32 %v2913_v0, %v2892_v62 }
 0x1a7   : > { %v2975_v48 = vpop.f32.mrf.mxu3  ;;  %v2920_v5 = vadd.f32 %v4656_v34, %v2918_v37  ;;  %v3016_v8 = vpop.f32.mrf.mxu1 }
 0x1a8   : > { %v2852_v4 = vpop.f32.mrf.mxu0 }
 0x1a9   : > { %v2856_v3 = vadd.f32 %v2852_v4, %v2825_v1  ;;  %v2924_v10 = vmul.f32 0.2, %v2920_v5  ;;  %vm2922_vm0 = vcmp.ge.f32.partialorder %v2920_v5, 0.0 }
 0x1ab   : > { %v2893_v6 = vadd.f32 %v2889_v24, %v2856_v3  ;;  %v2926_v43 = vsel %vm2922_vm0, %v2920_v5, %v2924_v10 }
 0x1ac   : > { %v2915_v63 = vpop.f32.mrf.mxu2 }
 0x1ad   : > { %v2919_v9 = vadd.f32 %v2915_v63, %v2893_v6 }
 0x1af   : > { %v2921_v11 = vadd.f32 %v4656_v34, %v2919_v9  ;;  %v3084_v15 = vpop.f32.mrf.mxu3  ;;  %v3018_v17 = vpop.f32.mrf.mxu1 }
 0x1b0   : > { %v2992_v13 = vpop.f32.mrf.mxu0 }
 0x1b1   : > { %vm2923_vm1 = vcmp.ge.f32.partialorder %v2921_v11, 0.0  ;;  %v2925_v14 = vmul.f32 0.2, %v2921_v11  ;;  %v2993_v7 = vadd.f32 %v2992_v13, %v2973_v59 }
 0x1b3   : > { %v2927_v54 = vsel %vm2923_vm1, %v2921_v11, %v2925_v14  ;;  %v3021_v18 = vadd.f32 %v3016_v8, %v2993_v7 }
 0x1b4   : > { %v3874_v56 = vpack.c.bf16 %v2927_v54, %v2926_v43  ;;  %v3047_v12 = vpop.f32.mrf.mxu2 }
 0x1b5   : > { %v3052_v20 = vadd.f32 %v3047_v12, %v3021_v18 }
 0x1b6   : > { %3886 = vst [vmem:[%s4704_s12 + $0x30] sm:$0xff] %v3874_v56  }
 0x1b7   : > { %v3086_v2 = vpop.f32.mrf.mxu3  ;;  %v3089_v25 = vadd.f32 %v3084_v15, %v3052_v20  ;;  %v3141_v26 = vpop.f32.mrf.mxu1 }
 0x1b8   : > { %v2994_v19 = vpop.f32.mrf.mxu0 }
 0x1b9   : > { %v2995_v21 = vadd.f32 %v2994_v19, %v2975_v48 }
 0x1bb   : > { %v3022_v22 = vadd.f32 %v3018_v17, %v2995_v21 }
 0x1bc   : > { %v3049_v34 = vpop.f32.mrf.mxu2 }
 0x1bd   : > { %v3053_v60 = vadd.f32 %v3049_v34, %v3022_v22 }
 0x1bf   : > { %v3204_v29 = vpop.f32.mrf.mxu3  ;;  %v3090_v31 = vadd.f32 %v3086_v2, %v3053_v60  ;;  %v3143_v36 = vpop.f32.mrf.mxu1 }
 0x1c0   : > { %v3110_v27 = vpop.f32.mrf.mxu0 }
 0x1c1   : > { %v3115_v23 = vadd.f32 %v3110_v27, %v3089_v25 }
 0x1c3   : > { %v3146_v28 = vadd.f32 %v3141_v26, %v3115_v23 }
 0x1c4   : > { %v3178_v16 = vpop.f32.mrf.mxu2 }
 0x1c5   : > { %v3183_v30 = vadd.f32 %v3178_v16, %v3146_v28 }
 0x1c7   : > { %v3209_v33 = vadd.f32 %v3204_v29, %v3183_v30  ;;  %v3206_v45 = vpop.f32.mrf.mxu3 }
 0x1c8   : > { %v3112_v32 = vpop.f32.mrf.mxu0 }
 0x1c9   : > { %v3116_v35 = vadd.f32 %v3112_v32, %v3090_v31  ;;  %v3211_v41 = vadd.f32 %v3973_v40, %v3209_v33 }
 0x1cb   : > { %v3147_v38 = vadd.f32 %v3143_v36, %v3116_v35  ;;  %v3215_v47 = vmul.f32 0.2, %v3211_v41  ;;  %vm3213_vm2 = vcmp.ge.f32.partialorder %v3211_v41, 0.0 }
 0x1cc   : > { %v3180_v39 = vpop.f32.mrf.mxu2 }
 0x1cd   : > { %v3184_v42 = vadd.f32 %v3180_v39, %v3147_v38  ;;  %v3217_v51 = vsel %vm3213_vm2, %v3211_v41, %v3215_v47 }
 0x1cf   : > { %v3210_v46 = vadd.f32 %v3206_v45, %v3184_v42 }
 0x1d1   : > { %v3212_v49 = vadd.f32 %v3973_v40, %v3210_v46 }
 0x1d3   : > { %vm3214_vm3 = vcmp.ge.f32.partialorder %v3212_v49, 0.0  ;;  %v3216_v50 = vmul.f32 0.2, %v3212_v49 }
 0x1d5   : > { %v3218_v52 = vsel %vm3214_vm3, %v3212_v49, %v3216_v50 }
 0x1d6   : > { %v3879_v44 = vpack.c.bf16 %v3218_v52, %v3217_v51 }
 0x1d8   : > { %3887 = vst [vmem:[%s4704_s12 + $0x38] sm:$0xff] %v3879_v44  }
 0x1d9   : > { %4001 = shalt.err (!%p3998_p4)
}
 0x1da   : > { %s4070_s27 = smov 64   ;;  %s4071_s12 = smov 4  }
 0x1db   : > { %3899 = dma.vmem_to_hbm [thread:$0]  (%p4188_p3), %s3241_s13, 1024, %s3243_s20, %s3225_s23, %s4070_s27, %s4070_s27, %s4071_s12  }
 0x1dc PF: > { %s5023_s17 = sld [smem:[#allocation9_spill]] }
 0x1dd   : > { %s5024_s24 = sld [smem:[#allocation5_spill]] }
 0x1e2   : > { %p3905_p5 = scmp.ge.s32.totalorder %s5023_s17, 2 }
 0x1e3   : > { %s3257_s16 = sand.u32 1, %s5024_s24  }
 0x1e4   : > { %p3902_p6 = pnand %p3905_p5, %p4197_p8  ;;  %s3258_s29 = scalar_lea.sflag [#allocation3], %s3257_s16 }
 0x1e6   : > { %p3903_p7 = pneg %p3902_p6 }
 0x1e8   : > { %4035 = dma.done.wait (%p3903_p7), %s3258_s29, 1024  }
 0x1e9   : > { %4037 = vsyncadd (%p3903_p7), %s3258_s29, 4294966272  ;;  %s25_s28 = sadd.s32 1, %s5023_s17   ;;  %s5026_s30 = sld [smem:[#allocation6_spill]] }
 0x1ea   : > { %p22_p9 = scmp.ge.s32.totalorder %s25_s28, 6   ;;  %s5027_s23 = sld [smem:[#allocation14_spill]] }
 0x1eb   : > { %s5028_s24 = sld [smem:[#allocation7_spill]]  ;;  %s5032_s21 = smov %s4044_s22 }
 0x1ec   : > { %s5029_s25 = sld [smem:[#allocation8_spill]]  ;;  %24 = sbr.rel (!%p22_p9) target bundleno = 7 (0x7), region = 145 }
 0x1ed   : > { %s5030_s26 = sld [smem:[#allocation10_spill]] }
 0x1ee   : > { %s5031_s27 = sld [smem:[#allocation12_spill]] }
 0x1ef   : > { %s5033_s22 = smov %s5026_s30 }
 0x1f1   :  { %3264 = vsyncpa [#allocation3], 1 }
 0x1f2   :  { %3266 = vsyncpa [#allocation3 + $0x1], 1 }

</bundles_post_ra>
